<compile_context>
chip_gen: v5e
topology: v5e:2x2
jax: 0.10.0
libtpu: 0.0.40
codegen_flags: <defaults>
</compile_context>

<pallas_src>
import functools
import math
from dataclasses import dataclass

import jax
import jax.numpy as jnp
from jax import lax
from jax.experimental import pallas as pl
from jax.experimental.pallas import tpu as pltpu

LN_EPS = 1e-4  # glow-tts modules.LayerNorm default eps


# ---------------------------------------------------------------------------
# Config (synthetic, small)
# ---------------------------------------------------------------------------
@dataclass
class TextEncoderConfig:
    n_vocab: int = 40
    hidden_channels: int = 32
    filter_channels: int = 64
    filter_channels_dp: int = 32
    n_heads: int = 2
    n_layers: int = 2
    kernel_size: int = 3
    p_dropout: float = 0.1
    window_size: int = None   # TODO(synk): relative-position attention (window_size != None) not implemented
    block_length: int = None
    mean_only: bool = False
    prenet: bool = False      # TODO(synk): prenet ConvReluNorm not implemented; disabled via config


# ---------------------------------------------------------------------------
# The fused kernel: everything after the embedding gather, one batch element
# per grid step.
# ---------------------------------------------------------------------------
def _text_encoder_kernel(
    # scalar prefetch (SMEM)
    len_ref,
    # batch-tiled inputs
    x_ref, g_ref,
    # stacked encoder-layer params
    wqkv_ref, bqkv_ref, wo_ref, bo_ref, ln1g_ref, ln1b_ref,
    fw1_ref, fb1_ref, fw2_ref, fb2_ref, ln2g_ref, ln2b_ref,
    # fused mean / log-std projection
    wms_ref, bms_ref,
    # duration predictor
    dw1_ref, db1_ref, dg1_ref, dbe1_ref,
    dw2_ref, db2_ref, dg2_ref, dbe2_ref,
    dwp_ref, dbp_ref,
    # outputs
    ms_ref, lw_ref,
    *, n_layers, n_heads, K, has_g):
    f32 = jnp.float32
    b = pl.program_id(0)
    x = x_ref[0]                       # (T, H)
    T, H = x.shape
    d = H // n_heads
    scale = 1.0 / math.sqrt(d)

    # ---- masks built in-kernel from one SMEM scalar (sequence length) ------
    L = len_ref[b]
    row = lax.broadcasted_iota(jnp.int32, (T, T), 0)
    col = lax.broadcasted_iota(jnp.int32, (T, T), 1)
    m = (lax.broadcasted_iota(jnp.int32, (T, 1), 0) < L).astype(f32)   # (T, 1)
    valid = (row < L) & (col < L)                                      # (T, T) bool

    # Shift matrices for the odd-K 'same' Conv1d taps: one tiny (T,T) MXU
    # matmul per off-center tap -> no misaligned sublane slices, no padding.
    half = K // 2
    offs = list(range(-half, half + 1))
    shift = {off: (col == row + off).astype(f32) for off in offs if off != 0}

    def conv_same(h, w, bias):
        # h: (T, Cin), already masked.  w: (K*Cin, Cout), rows grouped tap-major.
        cols = [h if off == 0 else
                jnp.dot(shift[off], h, preferred_element_type=f32)
                for off in offs]
        col2 = jnp.concatenate(cols, axis=-1)             # (T, K*Cin) im2col
        return jnp.dot(col2, w, preferred_element_type=f32) + bias

    def layer_norm(z, gamma, beta):                       # channel LayerNorm
        mu = jnp.mean(z, axis=-1, keepdims=True)
        zc = z - mu
        var = jnp.mean(zc * zc, axis=-1, keepdims=True)
        return zc * lax.rsqrt(var + LN_EPS) * gamma + beta

    # -------------------- attentions.Encoder (eval-mode dropout = id) ------
    for l in range(n_layers):                             # static unroll
        xm = x * m
        qkv = jnp.dot(xm, wqkv_ref[l], preferred_element_type=f32) + bqkv_ref[l]
        q = qkv[:, :H] * scale
        k = qkv[:, H:2 * H]
        v = qkv[:, 2 * H:]
        # (n_heads, T, d) views, batched over heads
        qh = jnp.concatenate([q[None, :, h * d:(h + 1) * d] for h in range(n_heads)], axis=0)
        kh = jnp.concatenate([k[None, :, h * d:(h + 1) * d] for h in range(n_heads)], axis=0)
        vh = jnp.concatenate([v[None, :, h * d:(h + 1) * d] for h in range(n_heads)], axis=0)
        s = lax.dot_general(qh, kh, (((2,), (2,)), ((0,), (0,))),
                            preferred_element_type=f32)   # (nH, T, T)
        s = jnp.where(valid[None, :, :], s, f32(-1e4))    # masked_fill
        s = s - jnp.max(s, axis=-1, keepdims=True)
        e = jnp.exp(s)
        p = e * pl.reciprocal(jnp.sum(e, axis=-1, keepdims=True), approx=True)
        oh = lax.dot_general(p, vh, (((2,), (1,)), ((0,), (0,))),
                             preferred_element_type=f32)  # (nH, T, d)
        attn = jnp.concatenate([oh[h] for h in range(n_heads)], axis=-1)
        y = jnp.dot(attn, wo_ref[l], preferred_element_type=f32) + bo_ref[l]
        x = layer_norm(xm + y, ln1g_ref[l], ln1b_ref[l])
        # FFN: conv -> relu -> conv, mask before each conv and on the output
        h1 = jnp.maximum(conv_same(x * m, fw1_ref[l], fb1_ref[l]), 0.0)
        y2 = conv_same(h1 * m, fw2_ref[l], fb2_ref[l]) * m
        x = layer_norm(x + y2, ln2g_ref[l], ln2b_ref[l])
    x = x * m

    # -------------------- fused proj_m / proj_s ----------------------------
    ms = jnp.dot(x, wms_ref[...], preferred_element_type=f32) + bms_ref[...]
    ms_ref[0] = ms * m

    # -------------------- DurationPredictor --------------------------------
    # TODO(synk): modules.Conv1DBlock source not provided; assumed
    #             conv(x*mask) -> relu -> channel-LayerNorm -> dropout(eval=id).
    if has_g:
        gb = jnp.broadcast_to(g_ref[0], (T, g_ref.shape[2]))
        x_dp = jnp.concatenate([x, gb], axis=-1)          # detach == identity in fwd
    else:
        x_dp = x
    h = jnp.maximum(conv_same(x_dp * m, dw1_ref[...], db1_ref[...]), 0.0)
    h = layer_norm(h, dg1_ref[...], dbe1_ref[...])
    h = jnp.maximum(conv_same(h * m, dw2_ref[...], db2_ref[...]), 0.0)
    h = layer_norm(h, dg2_ref[...], dbe2_ref[...])
    # Width-1 projection as VPU multiply + lane reduce.  NOTE: this module's
    # DurationPredictor returns proj(x*mask) with NO output mask, matched here.
    lw_ref[0] = jnp.sum((h * m) * dwp_ref[...], axis=-1, keepdims=True) + dbp_ref[...]


# ---------------------------------------------------------------------------
# Forward wrapper: packs params, builds specs, one pallas_call.
# ---------------------------------------------------------------------------
def text_encoder_forward(params, cfg, tokens, x_lengths, g=None):
    B, T = tokens.shape
    H = cfg.hidden_channels
    F = cfg.filter_channels
    Fdp = cfg.filter_channels_dp
    K = cfg.kernel_size
    O = params["proj_m_w"].shape[1]
    assert K % 2 == 1, "only odd kernel sizes supported ('same' padding)"

    # embedding gather + scale (plain XLA glue)
    x = params["emb"][tokens] * math.sqrt(H)                        # (B, T, H)

    # commons.sequence_mask (returned as x_mask; in-kernel masks are rebuilt
    # from x_lengths via scalar prefetch, no mask arrays are DMA'd)
    mask = (jnp.arange(T)[None, :] < x_lengths[:, None]).astype(jnp.float32)
    x_mask = mask[:, None, :]                                       # (B, 1, T)

    has_g = g is not None
    g3 = g[:, None, :] if has_g else jnp.zeros((B, 1, 1), jnp.float32)

    # ---- pack per-layer params into stacked / fused arrays -----------------
    enc = params["encoder"]

    def stack(fn):
        return jnp.stack([fn(lp) for lp in enc], axis=0)

    wqkv = stack(lambda lp: jnp.concatenate(
        [lp["attn"]["wq"], lp["attn"]["wk"], lp["attn"]["wv"]], axis=1))   # (L, H, 3H)
    bqkv = stack(lambda lp: jnp.concatenate(
        [lp["attn"]["bq"], lp["attn"]["bk"], lp["attn"]["bv"]], axis=0)[None, :])
    wo = stack(lambda lp: lp["attn"]["wo"])
    bo = stack(lambda lp: lp["attn"]["bo"][None, :])
    ln1g = stack(lambda lp: lp["g1"][None, :])
    ln1b = stack(lambda lp: lp["b1"][None, :])
    ln2g = stack(lambda lp: lp["g2"][None, :])
    ln2b = stack(lambda lp: lp["b2"][None, :])
    fw1 = stack(lambda lp: lp["ffn_w1"].reshape(K * H, F))                 # im2col weights
    fb1 = stack(lambda lp: lp["ffn_b1"][None, :])
    fw2 = stack(lambda lp: lp["ffn_w2"].reshape(K * F, H))
    fb2 = stack(lambda lp: lp["ffn_b2"][None, :])

    if cfg.mean_only:
        ws = jnp.zeros_like(params["proj_m_w"])
        bs = jnp.zeros_like(params["proj_m_b"])
    else:
        ws = params["proj_s_w"]
        bs = params["proj_s_b"]
    wms = jnp.concatenate([params["proj_m_w"], ws], axis=1)                # (H, 2*O)
    bms = jnp.concatenate([params["proj_m_b"], bs], axis=0)[None, :]

    dp = params["dp"]
    Cdp = dp["w1"].shape[1]
    dw1 = dp["w1"].reshape(K * Cdp, Fdp); db1 = dp["b1"][None, :]
    dg1 = dp["g1"][None, :];              dbe1 = dp["be1"][None, :]
    dw2 = dp["w2"].reshape(K * Fdp, Fdp); db2 = dp["b2"][None, :]
    dg2 = dp["g2"][None, :];              dbe2 = dp["be2"][None, :]
    dwp = dp["wp"].reshape(1, Fdp)
    dbp = dp["bp"].reshape(1, 1)

    batch_arrays = [x, g3]
    shared_arrays = [wqkv, bqkv, wo, bo, ln1g, ln1b,
                     fw1, fb1, fw2, fb2, ln2g, ln2b,
                     wms, bms,
                     dw1, db1, dg1, dbe1, dw2, db2, dg2, dbe2, dwp, dbp]

    # index_maps receive (grid_idx, *scalar_prefetch_refs)
    bmap = lambda b, lens: (b, 0, 0)
    smap3 = lambda b, lens: (0, 0, 0)
    smap2 = lambda b, lens: (0, 0)

    in_specs = [pl.BlockSpec((1,) + a.shape[1:], bmap) for a in batch_arrays]
    for a in shared_arrays:
        in_specs.append(pl.BlockSpec(a.shape, smap3 if a.ndim == 3 else smap2))

    kern = functools.partial(_text_encoder_kernel, n_layers=cfg.n_layers,
                             n_heads=cfg.n_heads, K=K, has_g=has_g)

    grid_spec = pltpu.PrefetchScalarGridSpec(
        num_scalar_prefetch=1,
        grid=(B,),   # "parallel": batch elements can go to separate TCs (v7x)
        in_specs=in_specs,
        out_specs=(pl.BlockSpec((1, T, 2 * O), bmap),
                   pl.BlockSpec((1, T, 1), bmap)),
    )

    ms, logw = pl.pallas_call(
        kern,
        grid_spec=grid_spec,
        out_shape=(jax.ShapeDtypeStruct((B, T, 2 * O), jnp.float32),
                   jax.ShapeDtypeStruct((B, T, 1), jnp.float32)),
        compiler_params=pltpu.CompilerParams(dimension_semantics=("parallel",)),
    )(x_lengths.astype(jnp.int32), *batch_arrays, *shared_arrays)

    # back to PyTorch NCT layout
    x_m = jnp.transpose(ms[:, :, :O], (0, 2, 1))          # (B, out_ch, T)
    x_logs = jnp.transpose(ms[:, :, O:], (0, 2, 1))       # (B, out_ch, T)
    logw = jnp.transpose(logw, (0, 2, 1))                 # (B, 1, T)
    return x_m, x_logs, logw, x_mask                      # x_mask = (B, 1, T)


# ---------------------------------------------------------------------------
# Parameter init (deterministic, synthetic; non-zero biases on purpose)
# ---------------------------------------------------------------------------
def init_params(key, cfg, out_channels, gin_channels):
    H, F = cfg.hidden_channels, cfg.filter_channels
    Fdp, K = cfg.filter_channels_dp, cfg.kernel_size
    keys = iter(jax.random.split(key, 256))

    def nrm(shape, scale):
        return (scale * jax.random.normal(next(keys), shape)).astype(jnp.float32)

    p = {"emb": nrm((cfg.n_vocab, H), H ** -0.5)}   # nn.init.normal_(0, H^-0.5)

    enc = []
    for _ in range(cfg.n_layers):
        enc.append({
            "attn": {
                "wq": nrm((H, H), 0.1), "bq": nrm((H,), 0.02),
                "wk": nrm((H, H), 0.1), "bk": nrm((H,), 0.02),
                "wv": nrm((H, H), 0.1), "bv": nrm((H,), 0.02),
                "wo": nrm((H, H), 0.1), "bo": nrm((H,), 0.02),
            },
            "g1": 1.0 + nrm((H,), 0.05), "b1": nrm((H,), 0.02),
            "ffn_w1": nrm((K, H, F), 0.1), "ffn_b1": nrm((F,), 0.02),
            "ffn_w2": nrm((K, F, H), 0.1), "ffn_b2": nrm((H,), 0.02),
            "g2": 1.0 + nrm((H,), 0.05), "b2": nrm((H,), 0.02),
        })
    p["encoder"] = enc

    p["proj_m_w"] = nrm((H, out_channels), 0.1)
    p["proj_m_b"] = nrm((out_channels,), 0.02)
    p["proj_s_w"] = nrm((H, out_channels), 0.1)
    p["proj_s_b"] = nrm((out_channels,), 0.02)

    Cdp = H + gin_channels
    p["dp"] = {
        "w1": nrm((K, Cdp, Fdp), 0.1), "b1": nrm((Fdp,), 0.02),
        "g1": 1.0 + nrm((Fdp,), 0.05), "be1": nrm((Fdp,), 0.02),
        "w2": nrm((K, Fdp, Fdp), 0.1), "b2": nrm((Fdp,), 0.02),
        "g2": 1.0 + nrm((Fdp,), 0.05), "be2": nrm((Fdp,), 0.02),
        "wp": nrm((Fdp, 1), 0.1), "bp": nrm((1,), 0.5),
    }
    return p


# ---------------------------------------------------------------------------
# Pure-jnp reference of the same forward (for an in-script correctness check)
# ---------------------------------------------------------------------------
def _ref_ln(z, gamma, beta):
    mu = jnp.mean(z, axis=-1, keepdims=True)
    zc = z - mu
    var = jnp.mean(zc * zc, axis=-1, keepdims=True)
    return zc * lax.rsqrt(var + LN_EPS) * gamma + beta


def _ref_conv_same(x, w_kio, b):
    K = w_kio.shape[0]
    pad = K // 2
    T = x.shape[1]
    xp = jnp.pad(x, ((0, 0), (pad, pad), (0, 0)))
    out = b
    for k in range(K):
        out = out + jnp.einsum("btc,cd->btd", xp[:, k:k + T], w_kio[k])
    return out


def _ref_mha(x, amask, ap, n_heads):
    B, T, H = x.shape
    d = H // n_heads
    q = x @ ap["wq"] + ap["bq"]
    k = x @ ap["wk"] + ap["bk"]
    v = x @ ap["wv"] + ap["bv"]

    def split(t):
        return t.reshape(B, T, n_heads, d).transpose(0, 2, 1, 3)

    qh = split(q) / math.sqrt(d)
    kh = split(k)
    vh = split(v)
    s = jnp.einsum("bhtd,bhsd->bhts", qh, kh)
    s = jnp.where(amask[:, None] > 0, s, -1e4)
    p = jax.nn.softmax(s, axis=-1)
    o = jnp.einsum("bhts,bhsd->bhtd", p, vh)
    o = o.transpose(0, 2, 1, 3).reshape(B, T, H)
    return o @ ap["wo"] + ap["bo"]


def reference_forward(params, cfg, tokens, x_lengths, g=None):
    B, T = tokens.shape
    H = cfg.hidden_channels
    x = params["emb"][tokens] * math.sqrt(H)
    mask = (jnp.arange(T)[None, :] < x_lengths[:, None]).astype(jnp.float32)
    m = mask[:, :, None]
    amask = m * mask[:, None, :]
    for lp in params["encoder"]:
        xm = x * m
        y = _ref_mha(xm, amask, lp["attn"], cfg.n_heads)
        x = _ref_ln(xm + y, lp["g1"], lp["b1"])
        h = jax.nn.relu(_ref_conv_same(x * m, lp["ffn_w1"], lp["ffn_b1"]))
        y2 = _ref_conv_same(h * m, lp["ffn_w2"], lp["ffn_b2"]) * m
        x = _ref_ln(x + y2, lp["g2"], lp["b2"])
    x = x * m
    x_m = (x @ params["proj_m_w"] + params["proj_m_b"]) * m
    if cfg.mean_only:
        x_logs = jnp.zeros_like(x_m)
    else:
        x_logs = (x @ params["proj_s_w"] + params["proj_s_b"]) * m
    if g is not None:
        gexp = jnp.broadcast_to(g[:, None, :], (B, T, g.shape[-1]))
        x_dp = jnp.concatenate([x, gexp], axis=-1)
    else:
        x_dp = x
    dp = params["dp"]
    h = _ref_ln(jax.nn.relu(_ref_conv_same(x_dp * m, dp["w1"], dp["b1"])), dp["g1"], dp["be1"])
    h = _ref_ln(jax.nn.relu(_ref_conv_same(h * m, dp["w2"], dp["b2"])), dp["g2"], dp["be2"])
    logw = (h * m) @ dp["wp"] + dp["bp"]
    return (jnp.transpose(x_m, (0, 2, 1)), jnp.transpose(x_logs, (0, 2, 1)),
            jnp.transpose(logw, (0, 2, 1)), jnp.transpose(m, (0, 2, 1)))


# ---------------------------------------------------------------------------
if __name__ == "__main__":
    cfg = TextEncoderConfig()
    out_channels = 8
    gin_channels = 16
    B, T = 2, 16

    key = jax.random.PRNGKey(0)
    k_tok, k_g, k_par = jax.random.split(key, 3)
    tokens = jax.random.randint(k_tok, (B, T), 0, cfg.n_vocab, dtype=jnp.int32)
    x_lengths = jnp.array([16, 11], dtype=jnp.int32)
    g = (0.1 * jax.random.normal(k_g, (B, gin_channels))).astype(jnp.float32)

    params = init_params(k_par, cfg, out_channels, gin_channels)

    fwd = jax.jit(lambda p, tok, xl, gg: text_encoder_forward(p, cfg, tok, xl, gg))
    x_m, x_logs, logw, x_mask = fwd(params, tokens, x_lengths, g)
    jax.block_until_ready((x_m, x_logs, logw, x_mask))

    assert x_m.shape == (B, out_channels, T)
    assert x_logs.shape == (B, out_channels, T)
    assert logw.shape == (B, 1, T)
    assert x_mask.shape == (B, 1, T)

    # Compare against a pure-jnp reference of the same forward (loose tol
    # covers the approximate EUP reciprocal used for softmax normalization).
    with jax.default_matmul_precision("highest"):
        r_m, r_logs, r_w, r_mask = reference_forward(params, cfg, tokens, x_lengths, g)
    for got, ref, name in ((x_m, r_m, "x_m"), (x_logs, r_logs, "x_logs"),
                           (logw, r_w, "logw"), (x_mask, r_mask, "x_mask")):
        assert bool(jnp.all(jnp.isfinite(got))), name
        err = float(jnp.max(jnp.abs(got - ref)))
        assert err < 5e-2, f"{name} mismatch vs reference: max|diff|={err}"

    print("KERNEL_OK")
</pallas_src>

<mosaic_0001>
module attributes {stable_mosaic.version = 11 : i64} {
  func.func @_text_encoder_kernel(%arg0: i32, %arg1: memref<2xi32, #tpu.memory_space<smem>>, %arg2: memref<1x16x32xf32, #tpu.memory_space<vmem>>, %arg3: memref<1x1x16xf32, #tpu.memory_space<vmem>>, %arg4: memref<2x32x96xf32, #tpu.memory_space<vmem>>, %arg5: memref<2x1x96xf32, #tpu.memory_space<vmem>>, %arg6: memref<2x32x32xf32, #tpu.memory_space<vmem>>, %arg7: memref<2x1x32xf32, #tpu.memory_space<vmem>>, %arg8: memref<2x1x32xf32, #tpu.memory_space<vmem>>, %arg9: memref<2x1x32xf32, #tpu.memory_space<vmem>>, %arg10: memref<2x96x64xf32, #tpu.memory_space<vmem>>, %arg11: memref<2x1x64xf32, #tpu.memory_space<vmem>>, %arg12: memref<2x192x32xf32, #tpu.memory_space<vmem>>, %arg13: memref<2x1x32xf32, #tpu.memory_space<vmem>>, %arg14: memref<2x1x32xf32, #tpu.memory_space<vmem>>, %arg15: memref<2x1x32xf32, #tpu.memory_space<vmem>>, %arg16: memref<32x16xf32, #tpu.memory_space<vmem>>, %arg17: memref<1x16xf32, #tpu.memory_space<vmem>>, %arg18: memref<144x32xf32, #tpu.memory_space<vmem>>, %arg19: memref<1x32xf32, #tpu.memory_space<vmem>>, %arg20: memref<1x32xf32, #tpu.memory_space<vmem>>, %arg21: memref<1x32xf32, #tpu.memory_space<vmem>>, %arg22: memref<96x32xf32, #tpu.memory_space<vmem>>, %arg23: memref<1x32xf32, #tpu.memory_space<vmem>>, %arg24: memref<1x32xf32, #tpu.memory_space<vmem>>, %arg25: memref<1x32xf32, #tpu.memory_space<vmem>>, %arg26: memref<1x32xf32, #tpu.memory_space<vmem>>, %arg27: memref<1x1xf32, #tpu.memory_space<vmem>>, %arg28: memref<1x16x16xf32, #tpu.memory_space<vmem>>, %arg29: memref<1x16x1xf32, #tpu.memory_space<vmem>>) attributes {dimension_semantics = [#tpu.dimension_semantics<parallel>], iteration_bounds = array<i64: 2>, scalar_prefetch = 1 : i64, scratch_operands = 0 : i64, tpu.core_type = #tpu.core_type<tc>, window_params = [{transform_indices = @transform_0, window_bounds = array<i64: 1, 16, 32>}, {transform_indices = @transform_1, window_bounds = array<i64: 1, 1, 16>}, {pipeline_mode = #tpu.pipeline_mode<synchronous>, transform_indices = @transform_2, window_bounds = array<i64: 2, 32, 96>}, {pipeline_mode = #tpu.pipeline_mode<synchronous>, transform_indices = @transform_3, window_bounds = array<i64: 2, 1, 96>}, {pipeline_mode = #tpu.pipeline_mode<synchronous>, transform_indices = @transform_4, window_bounds = array<i64: 2, 32, 32>}, {pipeline_mode = #tpu.pipeline_mode<synchronous>, transform_indices = @transform_5, window_bounds = array<i64: 2, 1, 32>}, {pipeline_mode = #tpu.pipeline_mode<synchronous>, transform_indices = @transform_6, window_bounds = array<i64: 2, 1, 32>}, {pipeline_mode = #tpu.pipeline_mode<synchronous>, transform_indices = @transform_7, window_bounds = array<i64: 2, 1, 32>}, {pipeline_mode = #tpu.pipeline_mode<synchronous>, transform_indices = @transform_8, window_bounds = array<i64: 2, 96, 64>}, {pipeline_mode = #tpu.pipeline_mode<synchronous>, transform_indices = @transform_9, window_bounds = array<i64: 2, 1, 64>}, {pipeline_mode = #tpu.pipeline_mode<synchronous>, transform_indices = @transform_10, window_bounds = array<i64: 2, 192, 32>}, {pipeline_mode = #tpu.pipeline_mode<synchronous>, transform_indices = @transform_11, window_bounds = array<i64: 2, 1, 32>}, {pipeline_mode = #tpu.pipeline_mode<synchronous>, transform_indices = @transform_12, window_bounds = array<i64: 2, 1, 32>}, {pipeline_mode = #tpu.pipeline_mode<synchronous>, transform_indices = @transform_13, window_bounds = array<i64: 2, 1, 32>}, {pipeline_mode = #tpu.pipeline_mode<synchronous>, transform_indices = @transform_14, window_bounds = array<i64: 32, 16>}, {pipeline_mode = #tpu.pipeline_mode<synchronous>, transform_indices = @transform_15, window_bounds = array<i64: 1, 16>}, {pipeline_mode = #tpu.pipeline_mode<synchronous>, transform_indices = @transform_16, window_bounds = array<i64: 144, 32>}, {pipeline_mode = #tpu.pipeline_mode<synchronous>, transform_indices = @transform_17, window_bounds = array<i64: 1, 32>}, {pipeline_mode = #tpu.pipeline_mode<synchronous>, transform_indices = @transform_18, window_bounds = array<i64: 1, 32>}, {pipeline_mode = #tpu.pipeline_mode<synchronous>, transform_indices = @transform_19, window_bounds = array<i64: 1, 32>}, {pipeline_mode = #tpu.pipeline_mode<synchronous>, transform_indices = @transform_20, window_bounds = array<i64: 96, 32>}, {pipeline_mode = #tpu.pipeline_mode<synchronous>, transform_indices = @transform_21, window_bounds = array<i64: 1, 32>}, {pipeline_mode = #tpu.pipeline_mode<synchronous>, transform_indices = @transform_22, window_bounds = array<i64: 1, 32>}, {pipeline_mode = #tpu.pipeline_mode<synchronous>, transform_indices = @transform_23, window_bounds = array<i64: 1, 32>}, {pipeline_mode = #tpu.pipeline_mode<synchronous>, transform_indices = @transform_24, window_bounds = array<i64: 1, 32>}, {pipeline_mode = #tpu.pipeline_mode<synchronous>, transform_indices = @transform_25, window_bounds = array<i64: 1, 1>}, {transform_indices = @transform_26, window_bounds = array<i64: 1, 16, 16>}, {transform_indices = @transform_27, window_bounds = array<i64: 1, 16, 1>}]} {
    %c0 = arith.constant 0 : index
    %c0_0 = arith.constant 0 : index
    %c0_1 = arith.constant 0 : index
    %0 = vector.load %arg2[%c0, %c0_0, %c0_1] : memref<1x16x32xf32, #tpu.memory_space<vmem>>, vector<1x16x32xf32>
    %1 = vector.shape_cast %0 : vector<1x16x32xf32> to vector<16x32xf32>
    %2 = arith.index_cast %arg0 : i32 to index
    %3 = memref.load %arg1[%2] : memref<2xi32, #tpu.memory_space<smem>>
    %4 = tpu.iota {dimensions = array<i32: 0>} : vector<16x16xi32>
    %5 = tpu.iota {dimensions = array<i32: 1>} : vector<16x16xi32>
    %6 = tpu.iota {dimensions = array<i32: 0>} : vector<16x1xi32>
    %7 = vector.broadcast %3 : i32 to vector<16x1xi32>
    %8 = arith.cmpi slt, %6, %7 : vector<16x1xi32>
    %9 = arith.extui %8 : vector<16x1xi1> to vector<16x1xi32>
    %10 = arith.sitofp %9 : vector<16x1xi32> to vector<16x1xf32>
    %11 = vector.broadcast %3 : i32 to vector<16x16xi32>
    %12 = arith.cmpi slt, %4, %11 : vector<16x16xi32>
    %13 = vector.broadcast %3 : i32 to vector<16x16xi32>
    %14 = arith.cmpi slt, %5, %13 : vector<16x16xi32>
    %15 = arith.andi %12, %14 : vector<16x16xi1>
    %c-1_i32 = arith.constant -1 : i32
    %16 = vector.broadcast %c-1_i32 : i32 to vector<16x16xi32>
    %17 = arith.addi %4, %16 : vector<16x16xi32>
    %18 = arith.cmpi eq, %5, %17 : vector<16x16xi32>
    %19 = arith.extui %18 : vector<16x16xi1> to vector<16x16xi32>
    %20 = arith.sitofp %19 : vector<16x16xi32> to vector<16x16xf32>
    %c1_i32 = arith.constant 1 : i32
    %21 = vector.broadcast %c1_i32 : i32 to vector<16x16xi32>
    %22 = arith.addi %4, %21 : vector<16x16xi32>
    %23 = arith.cmpi eq, %5, %22 : vector<16x16xi32>
    %24 = arith.extui %23 : vector<16x16xi1> to vector<16x16xi32>
    %25 = arith.sitofp %24 : vector<16x16xi32> to vector<16x16xf32>
    %26 = vector.broadcast %10 : vector<16x1xf32> to vector<16x32xf32>
    %27 = arith.mulf %1, %26 : vector<16x32xf32>
    %c0_2 = arith.constant 0 : index
    %c0_3 = arith.constant 0 : index
    %c0_4 = arith.constant 0 : index
    %28 = vector.load %arg4[%c0_2, %c0_3, %c0_4] : memref<2x32x96xf32, #tpu.memory_space<vmem>>, vector<1x32x96xf32>
    %29 = vector.shape_cast %28 : vector<1x32x96xf32> to vector<32x96xf32>
    %cst = arith.constant dense<0.000000e+00> : vector<16x96xf32>
    %30 = tpu.matmul %27, %29, %cst {dimension_numbers = #tpu.dot_dimension_numbers<[1], [0], [0], [1], [0, 0, 1, 1], [], []>} : vector<16x32xf32>, vector<32x96xf32>, vector<16x96xf32> -> vector<16x96xf32>
    %c0_5 = arith.constant 0 : index
    %c0_6 = arith.constant 0 : index
    %c0_7 = arith.constant 0 : index
    %31 = vector.load %arg5[%c0_5, %c0_6, %c0_7] : memref<2x1x96xf32, #tpu.memory_space<vmem>>, vector<1x1x96xf32>
    %32 = vector.shape_cast %31 : vector<1x1x96xf32> to vector<1x96xf32>
    %33 = vector.broadcast %32 : vector<1x96xf32> to vector<16x96xf32>
    %34 = arith.addf %30, %33 : vector<16x96xf32>
    %35 = vector.extract_strided_slice %34 {offsets = [0, 0], sizes = [16, 32], strides = [1, 1]} : vector<16x96xf32> to vector<16x32xf32>
    %cst_8 = arith.constant 2.500000e-01 : f32
    %36 = vector.broadcast %cst_8 : f32 to vector<16x32xf32>
    %37 = arith.mulf %35, %36 : vector<16x32xf32>
    %38 = vector.extract_strided_slice %34 {offsets = [0, 32], sizes = [16, 32], strides = [1, 1]} : vector<16x96xf32> to vector<16x32xf32>
    %39 = vector.extract_strided_slice %34 {offsets = [0, 64], sizes = [16, 32], strides = [1, 1]} : vector<16x96xf32> to vector<16x32xf32>
    %40 = vector.extract_strided_slice %37 {offsets = [0, 0], sizes = [16, 16], strides = [1, 1]} : vector<16x32xf32> to vector<16x16xf32>
    %41 = vector.shape_cast %40 : vector<16x16xf32> to vector<1x16x16xf32>
    %42 = vector.extract_strided_slice %37 {offsets = [0, 16], sizes = [16, 16], strides = [1, 1]} : vector<16x32xf32> to vector<16x16xf32>
    %43 = vector.shape_cast %42 : vector<16x16xf32> to vector<1x16x16xf32>
    %44 = tpu.concatenate %41, %43 in 0 : vector<1x16x16xf32>, vector<1x16x16xf32> -> vector<2x16x16xf32>
    %45 = vector.extract_strided_slice %38 {offsets = [0, 0], sizes = [16, 16], strides = [1, 1]} : vector<16x32xf32> to vector<16x16xf32>
    %46 = vector.shape_cast %45 : vector<16x16xf32> to vector<1x16x16xf32>
    %47 = vector.extract_strided_slice %38 {offsets = [0, 16], sizes = [16, 16], strides = [1, 1]} : vector<16x32xf32> to vector<16x16xf32>
    %48 = vector.shape_cast %47 : vector<16x16xf32> to vector<1x16x16xf32>
    %49 = tpu.concatenate %46, %48 in 0 : vector<1x16x16xf32>, vector<1x16x16xf32> -> vector<2x16x16xf32>
    %50 = vector.extract_strided_slice %39 {offsets = [0, 0], sizes = [16, 16], strides = [1, 1]} : vector<16x32xf32> to vector<16x16xf32>
    %51 = vector.shape_cast %50 : vector<16x16xf32> to vector<1x16x16xf32>
    %52 = vector.extract_strided_slice %39 {offsets = [0, 16], sizes = [16, 16], strides = [1, 1]} : vector<16x32xf32> to vector<16x16xf32>
    %53 = vector.shape_cast %52 : vector<16x16xf32> to vector<1x16x16xf32>
    %54 = tpu.concatenate %51, %53 in 0 : vector<1x16x16xf32>, vector<1x16x16xf32> -> vector<2x16x16xf32>
    %cst_9 = arith.constant dense<0.000000e+00> : vector<2x16x16xf32>
    %55 = tpu.matmul %44, %49, %cst_9 {dimension_numbers = #tpu.dot_dimension_numbers<[2], [2], [1], [1], [0, 0, 0, 1, 1, 1], [0], [0]>} : vector<2x16x16xf32>, vector<2x16x16xf32>, vector<2x16x16xf32> -> vector<2x16x16xf32>
    %56 = vector.shape_cast %15 : vector<16x16xi1> to vector<1x16x16xi1>
    %cst_10 = arith.constant -1.000000e+04 : f32
    %57 = vector.shape_cast %56 : vector<1x16x16xi1> to vector<1x16x16xi1>
    %58 = vector.broadcast %57 : vector<1x16x16xi1> to vector<2x16x16xi1>
    %59 = vector.broadcast %cst_10 : f32 to vector<2x16x16xf32>
    %60 = arith.select %58, %55, %59 : vector<2x16x16xi1>, vector<2x16x16xf32>
    %cst_11 = arith.constant dense<0xFF800000> : vector<2x16xf32>
    %61 = vector.multi_reduction <maximumf>, %60, %cst_11 [2] : vector<2x16x16xf32> to vector<2x16xf32>
    %62 = vector.shape_cast %61 : vector<2x16xf32> to vector<2x16x1xf32>
    %63 = vector.broadcast %62 : vector<2x16x1xf32> to vector<2x16x16xf32>
    %64 = arith.subf %60, %63 : vector<2x16x16xf32>
    %65 = math.exp %64 : vector<2x16x16xf32>
    %cst_12 = arith.constant dense<0.000000e+00> : vector<2x16xf32>
    %66 = vector.multi_reduction <add>, %65, %cst_12 [2] : vector<2x16x16xf32> to vector<2x16xf32>
    %67 = vector.shape_cast %66 : vector<2x16xf32> to vector<2x16x1xf32>
    %68 = tpu.reciprocal %67 {approx = true} : vector<2x16x1xf32> -> vector<2x16x1xf32>
    %69 = vector.broadcast %68 : vector<2x16x1xf32> to vector<2x16x16xf32>
    %70 = arith.mulf %65, %69 : vector<2x16x16xf32>
    %cst_13 = arith.constant dense<0.000000e+00> : vector<2x16x16xf32>
    %71 = tpu.matmul %70, %54, %cst_13 {dimension_numbers = #tpu.dot_dimension_numbers<[2], [1], [1], [2], [0, 0, 0, 1, 1, 2], [0], [0]>} : vector<2x16x16xf32>, vector<2x16x16xf32>, vector<2x16x16xf32> -> vector<2x16x16xf32>
    %72 = vector.extract_strided_slice %71 {offsets = [0, 0, 0], sizes = [1, 16, 16], strides = [1, 1, 1]} : vector<2x16x16xf32> to vector<1x16x16xf32>
    %73 = vector.shape_cast %72 : vector<1x16x16xf32> to vector<16x16xf32>
    %74 = vector.extract_strided_slice %71 {offsets = [1, 0, 0], sizes = [1, 16, 16], strides = [1, 1, 1]} : vector<2x16x16xf32> to vector<1x16x16xf32>
    %75 = vector.shape_cast %74 : vector<1x16x16xf32> to vector<16x16xf32>
    %76 = tpu.concatenate %73, %75 in 1 : vector<16x16xf32>, vector<16x16xf32> -> vector<16x32xf32>
    %c0_14 = arith.constant 0 : index
    %c0_15 = arith.constant 0 : index
    %c0_16 = arith.constant 0 : index
    %77 = vector.load %arg6[%c0_14, %c0_15, %c0_16] : memref<2x32x32xf32, #tpu.memory_space<vmem>>, vector<1x32x32xf32>
    %78 = vector.shape_cast %77 : vector<1x32x32xf32> to vector<32x32xf32>
    %cst_17 = arith.constant dense<0.000000e+00> : vector<16x32xf32>
    %79 = tpu.matmul %76, %78, %cst_17 {dimension_numbers = #tpu.dot_dimension_numbers<[1], [0], [0], [1], [0, 0, 1, 1], [], []>} : vector<16x32xf32>, vector<32x32xf32>, vector<16x32xf32> -> vector<16x32xf32>
    %c0_18 = arith.constant 0 : index
    %c0_19 = arith.constant 0 : index
    %c0_20 = arith.constant 0 : index
    %80 = vector.load %arg7[%c0_18, %c0_19, %c0_20] : memref<2x1x32xf32, #tpu.memory_space<vmem>>, vector<1x1x32xf32>
    %81 = vector.shape_cast %80 : vector<1x1x32xf32> to vector<1x32xf32>
    %82 = vector.broadcast %81 : vector<1x32xf32> to vector<16x32xf32>
    %83 = arith.addf %79, %82 : vector<16x32xf32>
    %84 = arith.addf %27, %83 : vector<16x32xf32>
    %c0_21 = arith.constant 0 : index
    %c0_22 = arith.constant 0 : index
    %c0_23 = arith.constant 0 : index
    %85 = vector.load %arg8[%c0_21, %c0_22, %c0_23] : memref<2x1x32xf32, #tpu.memory_space<vmem>>, vector<1x1x32xf32>
    %86 = vector.shape_cast %85 : vector<1x1x32xf32> to vector<1x32xf32>
    %c0_24 = arith.constant 0 : index
    %c0_25 = arith.constant 0 : index
    %c0_26 = arith.constant 0 : index
    %87 = vector.load %arg9[%c0_24, %c0_25, %c0_26] : memref<2x1x32xf32, #tpu.memory_space<vmem>>, vector<1x1x32xf32>
    %88 = vector.shape_cast %87 : vector<1x1x32xf32> to vector<1x32xf32>
    %cst_27 = arith.constant dense<0.000000e+00> : vector<16xf32>
    %89 = vector.multi_reduction <add>, %84, %cst_27 [1] : vector<16x32xf32> to vector<16xf32>
    %90 = vector.shape_cast %89 : vector<16xf32> to vector<16x1xf32>
    %cst_28 = arith.constant 3.200000e+01 : f32
    %91 = vector.broadcast %cst_28 : f32 to vector<16x1xf32>
    %92 = arith.divf %90, %91 : vector<16x1xf32>
    %93 = vector.broadcast %92 : vector<16x1xf32> to vector<16x32xf32>
    %94 = arith.subf %84, %93 : vector<16x32xf32>
    %95 = arith.mulf %94, %94 : vector<16x32xf32>
    %cst_29 = arith.constant dense<0.000000e+00> : vector<16xf32>
    %96 = vector.multi_reduction <add>, %95, %cst_29 [1] : vector<16x32xf32> to vector<16xf32>
    %97 = vector.shape_cast %96 : vector<16xf32> to vector<16x1xf32>
    %cst_30 = arith.constant 3.200000e+01 : f32
    %98 = vector.broadcast %cst_30 : f32 to vector<16x1xf32>
    %99 = arith.divf %97, %98 : vector<16x1xf32>
    %cst_31 = arith.constant 9.99999974E-5 : f32
    %100 = vector.broadcast %cst_31 : f32 to vector<16x1xf32>
    %101 = arith.addf %99, %100 : vector<16x1xf32>
    %102 = math.rsqrt %101 : vector<16x1xf32>
    %103 = vector.broadcast %102 : vector<16x1xf32> to vector<16x32xf32>
    %104 = arith.mulf %94, %103 : vector<16x32xf32>
    %105 = vector.broadcast %86 : vector<1x32xf32> to vector<16x32xf32>
    %106 = arith.mulf %104, %105 : vector<16x32xf32>
    %107 = vector.broadcast %88 : vector<1x32xf32> to vector<16x32xf32>
    %108 = arith.addf %106, %107 : vector<16x32xf32>
    %109 = vector.broadcast %10 : vector<16x1xf32> to vector<16x32xf32>
    %110 = arith.mulf %108, %109 : vector<16x32xf32>
    %c0_32 = arith.constant 0 : index
    %c0_33 = arith.constant 0 : index
    %c0_34 = arith.constant 0 : index
    %111 = vector.load %arg10[%c0_32, %c0_33, %c0_34] : memref<2x96x64xf32, #tpu.memory_space<vmem>>, vector<1x96x64xf32>
    %112 = vector.shape_cast %111 : vector<1x96x64xf32> to vector<96x64xf32>
    %c0_35 = arith.constant 0 : index
    %c0_36 = arith.constant 0 : index
    %c0_37 = arith.constant 0 : index
    %113 = vector.load %arg11[%c0_35, %c0_36, %c0_37] : memref<2x1x64xf32, #tpu.memory_space<vmem>>, vector<1x1x64xf32>
    %114 = vector.shape_cast %113 : vector<1x1x64xf32> to vector<1x64xf32>
    %cst_38 = arith.constant dense<0.000000e+00> : vector<16x32xf32>
    %115 = tpu.matmul %20, %110, %cst_38 {dimension_numbers = #tpu.dot_dimension_numbers<[1], [0], [0], [1], [0, 0, 1, 1], [], []>} : vector<16x16xf32>, vector<16x32xf32>, vector<16x32xf32> -> vector<16x32xf32>
    %cst_39 = arith.constant dense<0.000000e+00> : vector<16x32xf32>
    %116 = tpu.matmul %25, %110, %cst_39 {dimension_numbers = #tpu.dot_dimension_numbers<[1], [0], [0], [1], [0, 0, 1, 1], [], []>} : vector<16x16xf32>, vector<16x32xf32>, vector<16x32xf32> -> vector<16x32xf32>
    %117 = tpu.concatenate %115, %110, %116 in 1 : vector<16x32xf32>, vector<16x32xf32>, vector<16x32xf32> -> vector<16x96xf32>
    %cst_40 = arith.constant dense<0.000000e+00> : vector<16x64xf32>
    %118 = tpu.matmul %117, %112, %cst_40 {dimension_numbers = #tpu.dot_dimension_numbers<[1], [0], [0], [1], [0, 0, 1, 1], [], []>} : vector<16x96xf32>, vector<96x64xf32>, vector<16x64xf32> -> vector<16x64xf32>
    %119 = vector.broadcast %114 : vector<1x64xf32> to vector<16x64xf32>
    %120 = arith.addf %118, %119 : vector<16x64xf32>
    %cst_41 = arith.constant 0.000000e+00 : f32
    %121 = vector.broadcast %cst_41 : f32 to vector<16x64xf32>
    %122 = arith.maximumf %120, %121 : vector<16x64xf32>
    %123 = vector.broadcast %10 : vector<16x1xf32> to vector<16x64xf32>
    %124 = arith.mulf %122, %123 : vector<16x64xf32>
    %c0_42 = arith.constant 0 : index
    %c0_43 = arith.constant 0 : index
    %c0_44 = arith.constant 0 : index
    %125 = vector.load %arg12[%c0_42, %c0_43, %c0_44] : memref<2x192x32xf32, #tpu.memory_space<vmem>>, vector<1x192x32xf32>
    %126 = vector.shape_cast %125 : vector<1x192x32xf32> to vector<192x32xf32>
    %c0_45 = arith.constant 0 : index
    %c0_46 = arith.constant 0 : index
    %c0_47 = arith.constant 0 : index
    %127 = vector.load %arg13[%c0_45, %c0_46, %c0_47] : memref<2x1x32xf32, #tpu.memory_space<vmem>>, vector<1x1x32xf32>
    %128 = vector.shape_cast %127 : vector<1x1x32xf32> to vector<1x32xf32>
    %cst_48 = arith.constant dense<0.000000e+00> : vector<16x64xf32>
    %129 = tpu.matmul %20, %124, %cst_48 {dimension_numbers = #tpu.dot_dimension_numbers<[1], [0], [0], [1], [0, 0, 1, 1], [], []>} : vector<16x16xf32>, vector<16x64xf32>, vector<16x64xf32> -> vector<16x64xf32>
    %cst_49 = arith.constant dense<0.000000e+00> : vector<16x64xf32>
    %130 = tpu.matmul %25, %124, %cst_49 {dimension_numbers = #tpu.dot_dimension_numbers<[1], [0], [0], [1], [0, 0, 1, 1], [], []>} : vector<16x16xf32>, vector<16x64xf32>, vector<16x64xf32> -> vector<16x64xf32>
    %131 = tpu.concatenate %129, %124, %130 in 1 : vector<16x64xf32>, vector<16x64xf32>, vector<16x64xf32> -> vector<16x192xf32>
    %cst_50 = arith.constant dense<0.000000e+00> : vector<16x32xf32>
    %132 = tpu.matmul %131, %126, %cst_50 {dimension_numbers = #tpu.dot_dimension_numbers<[1], [0], [0], [1], [0, 0, 1, 1], [], []>} : vector<16x192xf32>, vector<192x32xf32>, vector<16x32xf32> -> vector<16x32xf32>
    %133 = vector.broadcast %128 : vector<1x32xf32> to vector<16x32xf32>
    %134 = arith.addf %132, %133 : vector<16x32xf32>
    %135 = vector.broadcast %10 : vector<16x1xf32> to vector<16x32xf32>
    %136 = arith.mulf %134, %135 : vector<16x32xf32>
    %137 = arith.addf %108, %136 : vector<16x32xf32>
    %c0_51 = arith.constant 0 : index
    %c0_52 = arith.constant 0 : index
    %c0_53 = arith.constant 0 : index
    %138 = vector.load %arg14[%c0_51, %c0_52, %c0_53] : memref<2x1x32xf32, #tpu.memory_space<vmem>>, vector<1x1x32xf32>
    %139 = vector.shape_cast %138 : vector<1x1x32xf32> to vector<1x32xf32>
    %c0_54 = arith.constant 0 : index
    %c0_55 = arith.constant 0 : index
    %c0_56 = arith.constant 0 : index
    %140 = vector.load %arg15[%c0_54, %c0_55, %c0_56] : memref<2x1x32xf32, #tpu.memory_space<vmem>>, vector<1x1x32xf32>
    %141 = vector.shape_cast %140 : vector<1x1x32xf32> to vector<1x32xf32>
    %cst_57 = arith.constant dense<0.000000e+00> : vector<16xf32>
    %142 = vector.multi_reduction <add>, %137, %cst_57 [1] : vector<16x32xf32> to vector<16xf32>
    %143 = vector.shape_cast %142 : vector<16xf32> to vector<16x1xf32>
    %cst_58 = arith.constant 3.200000e+01 : f32
    %144 = vector.broadcast %cst_58 : f32 to vector<16x1xf32>
    %145 = arith.divf %143, %144 : vector<16x1xf32>
    %146 = vector.broadcast %145 : vector<16x1xf32> to vector<16x32xf32>
    %147 = arith.subf %137, %146 : vector<16x32xf32>
    %148 = arith.mulf %147, %147 : vector<16x32xf32>
    %cst_59 = arith.constant dense<0.000000e+00> : vector<16xf32>
    %149 = vector.multi_reduction <add>, %148, %cst_59 [1] : vector<16x32xf32> to vector<16xf32>
    %150 = vector.shape_cast %149 : vector<16xf32> to vector<16x1xf32>
    %cst_60 = arith.constant 3.200000e+01 : f32
    %151 = vector.broadcast %cst_60 : f32 to vector<16x1xf32>
    %152 = arith.divf %150, %151 : vector<16x1xf32>
    %cst_61 = arith.constant 9.99999974E-5 : f32
    %153 = vector.broadcast %cst_61 : f32 to vector<16x1xf32>
    %154 = arith.addf %152, %153 : vector<16x1xf32>
    %155 = math.rsqrt %154 : vector<16x1xf32>
    %156 = vector.broadcast %155 : vector<16x1xf32> to vector<16x32xf32>
    %157 = arith.mulf %147, %156 : vector<16x32xf32>
    %158 = vector.broadcast %139 : vector<1x32xf32> to vector<16x32xf32>
    %159 = arith.mulf %157, %158 : vector<16x32xf32>
    %160 = vector.broadcast %141 : vector<1x32xf32> to vector<16x32xf32>
    %161 = arith.addf %159, %160 : vector<16x32xf32>
    %162 = vector.broadcast %10 : vector<16x1xf32> to vector<16x32xf32>
    %163 = arith.mulf %161, %162 : vector<16x32xf32>
    %c1 = arith.constant 1 : index
    %c0_62 = arith.constant 0 : index
    %c0_63 = arith.constant 0 : index
    %164 = vector.load %arg4[%c1, %c0_62, %c0_63] : memref<2x32x96xf32, #tpu.memory_space<vmem>>, vector<1x32x96xf32>
    %165 = vector.shape_cast %164 : vector<1x32x96xf32> to vector<32x96xf32>
    %cst_64 = arith.constant dense<0.000000e+00> : vector<16x96xf32>
    %166 = tpu.matmul %163, %165, %cst_64 {dimension_numbers = #tpu.dot_dimension_numbers<[1], [0], [0], [1], [0, 0, 1, 1], [], []>} : vector<16x32xf32>, vector<32x96xf32>, vector<16x96xf32> -> vector<16x96xf32>
    %c1_65 = arith.constant 1 : index
    %c0_66 = arith.constant 0 : index
    %c0_67 = arith.constant 0 : index
    %167 = vector.load %arg5[%c1_65, %c0_66, %c0_67] : memref<2x1x96xf32, #tpu.memory_space<vmem>>, vector<1x1x96xf32>
    %168 = vector.shape_cast %167 : vector<1x1x96xf32> to vector<1x96xf32>
    %169 = vector.broadcast %168 : vector<1x96xf32> to vector<16x96xf32>
    %170 = arith.addf %166, %169 : vector<16x96xf32>
    %171 = vector.extract_strided_slice %170 {offsets = [0, 0], sizes = [16, 32], strides = [1, 1]} : vector<16x96xf32> to vector<16x32xf32>
    %cst_68 = arith.constant 2.500000e-01 : f32
    %172 = vector.broadcast %cst_68 : f32 to vector<16x32xf32>
    %173 = arith.mulf %171, %172 : vector<16x32xf32>
    %174 = vector.extract_strided_slice %170 {offsets = [0, 32], sizes = [16, 32], strides = [1, 1]} : vector<16x96xf32> to vector<16x32xf32>
    %175 = vector.extract_strided_slice %170 {offsets = [0, 64], sizes = [16, 32], strides = [1, 1]} : vector<16x96xf32> to vector<16x32xf32>
    %176 = vector.extract_strided_slice %173 {offsets = [0, 0], sizes = [16, 16], strides = [1, 1]} : vector<16x32xf32> to vector<16x16xf32>
    %177 = vector.shape_cast %176 : vector<16x16xf32> to vector<1x16x16xf32>
    %178 = vector.extract_strided_slice %173 {offsets = [0, 16], sizes = [16, 16], strides = [1, 1]} : vector<16x32xf32> to vector<16x16xf32>
    %179 = vector.shape_cast %178 : vector<16x16xf32> to vector<1x16x16xf32>
    %180 = tpu.concatenate %177, %179 in 0 : vector<1x16x16xf32>, vector<1x16x16xf32> -> vector<2x16x16xf32>
    %181 = vector.extract_strided_slice %174 {offsets = [0, 0], sizes = [16, 16], strides = [1, 1]} : vector<16x32xf32> to vector<16x16xf32>
    %182 = vector.shape_cast %181 : vector<16x16xf32> to vector<1x16x16xf32>
    %183 = vector.extract_strided_slice %174 {offsets = [0, 16], sizes = [16, 16], strides = [1, 1]} : vector<16x32xf32> to vector<16x16xf32>
    %184 = vector.shape_cast %183 : vector<16x16xf32> to vector<1x16x16xf32>
    %185 = tpu.concatenate %182, %184 in 0 : vector<1x16x16xf32>, vector<1x16x16xf32> -> vector<2x16x16xf32>
    %186 = vector.extract_strided_slice %175 {offsets = [0, 0], sizes = [16, 16], strides = [1, 1]} : vector<16x32xf32> to vector<16x16xf32>
    %187 = vector.shape_cast %186 : vector<16x16xf32> to vector<1x16x16xf32>
    %188 = vector.extract_strided_slice %175 {offsets = [0, 16], sizes = [16, 16], strides = [1, 1]} : vector<16x32xf32> to vector<16x16xf32>
    %189 = vector.shape_cast %188 : vector<16x16xf32> to vector<1x16x16xf32>
    %190 = tpu.concatenate %187, %189 in 0 : vector<1x16x16xf32>, vector<1x16x16xf32> -> vector<2x16x16xf32>
    %cst_69 = arith.constant dense<0.000000e+00> : vector<2x16x16xf32>
    %191 = tpu.matmul %180, %185, %cst_69 {dimension_numbers = #tpu.dot_dimension_numbers<[2], [2], [1], [1], [0, 0, 0, 1, 1, 1], [0], [0]>} : vector<2x16x16xf32>, vector<2x16x16xf32>, vector<2x16x16xf32> -> vector<2x16x16xf32>
    %192 = vector.shape_cast %15 : vector<16x16xi1> to vector<1x16x16xi1>
    %cst_70 = arith.constant -1.000000e+04 : f32
    %193 = vector.shape_cast %192 : vector<1x16x16xi1> to vector<1x16x16xi1>
    %194 = vector.broadcast %193 : vector<1x16x16xi1> to vector<2x16x16xi1>
    %195 = vector.broadcast %cst_70 : f32 to vector<2x16x16xf32>
    %196 = arith.select %194, %191, %195 : vector<2x16x16xi1>, vector<2x16x16xf32>
    %cst_71 = arith.constant dense<0xFF800000> : vector<2x16xf32>
    %197 = vector.multi_reduction <maximumf>, %196, %cst_71 [2] : vector<2x16x16xf32> to vector<2x16xf32>
    %198 = vector.shape_cast %197 : vector<2x16xf32> to vector<2x16x1xf32>
    %199 = vector.broadcast %198 : vector<2x16x1xf32> to vector<2x16x16xf32>
    %200 = arith.subf %196, %199 : vector<2x16x16xf32>
    %201 = math.exp %200 : vector<2x16x16xf32>
    %cst_72 = arith.constant dense<0.000000e+00> : vector<2x16xf32>
    %202 = vector.multi_reduction <add>, %201, %cst_72 [2] : vector<2x16x16xf32> to vector<2x16xf32>
    %203 = vector.shape_cast %202 : vector<2x16xf32> to vector<2x16x1xf32>
    %204 = tpu.reciprocal %203 {approx = true} : vector<2x16x1xf32> -> vector<2x16x1xf32>
    %205 = vector.broadcast %204 : vector<2x16x1xf32> to vector<2x16x16xf32>
    %206 = arith.mulf %201, %205 : vector<2x16x16xf32>
    %cst_73 = arith.constant dense<0.000000e+00> : vector<2x16x16xf32>
    %207 = tpu.matmul %206, %190, %cst_73 {dimension_numbers = #tpu.dot_dimension_numbers<[2], [1], [1], [2], [0, 0, 0, 1, 1, 2], [0], [0]>} : vector<2x16x16xf32>, vector<2x16x16xf32>, vector<2x16x16xf32> -> vector<2x16x16xf32>
    %208 = vector.extract_strided_slice %207 {offsets = [0, 0, 0], sizes = [1, 16, 16], strides = [1, 1, 1]} : vector<2x16x16xf32> to vector<1x16x16xf32>
    %209 = vector.shape_cast %208 : vector<1x16x16xf32> to vector<16x16xf32>
    %210 = vector.extract_strided_slice %207 {offsets = [1, 0, 0], sizes = [1, 16, 16], strides = [1, 1, 1]} : vector<2x16x16xf32> to vector<1x16x16xf32>
    %211 = vector.shape_cast %210 : vector<1x16x16xf32> to vector<16x16xf32>
    %212 = tpu.concatenate %209, %211 in 1 : vector<16x16xf32>, vector<16x16xf32> -> vector<16x32xf32>
    %c1_74 = arith.constant 1 : index
    %c0_75 = arith.constant 0 : index
    %c0_76 = arith.constant 0 : index
    %213 = vector.load %arg6[%c1_74, %c0_75, %c0_76] : memref<2x32x32xf32, #tpu.memory_space<vmem>>, vector<1x32x32xf32>
    %214 = vector.shape_cast %213 : vector<1x32x32xf32> to vector<32x32xf32>
    %cst_77 = arith.constant dense<0.000000e+00> : vector<16x32xf32>
    %215 = tpu.matmul %212, %214, %cst_77 {dimension_numbers = #tpu.dot_dimension_numbers<[1], [0], [0], [1], [0, 0, 1, 1], [], []>} : vector<16x32xf32>, vector<32x32xf32>, vector<16x32xf32> -> vector<16x32xf32>
    %c1_78 = arith.constant 1 : index
    %c0_79 = arith.constant 0 : index
    %c0_80 = arith.constant 0 : index
    %216 = vector.load %arg7[%c1_78, %c0_79, %c0_80] : memref<2x1x32xf32, #tpu.memory_space<vmem>>, vector<1x1x32xf32>
    %217 = vector.shape_cast %216 : vector<1x1x32xf32> to vector<1x32xf32>
    %218 = vector.broadcast %217 : vector<1x32xf32> to vector<16x32xf32>
    %219 = arith.addf %215, %218 : vector<16x32xf32>
    %220 = arith.addf %163, %219 : vector<16x32xf32>
    %c1_81 = arith.constant 1 : index
    %c0_82 = arith.constant 0 : index
    %c0_83 = arith.constant 0 : index
    %221 = vector.load %arg8[%c1_81, %c0_82, %c0_83] : memref<2x1x32xf32, #tpu.memory_space<vmem>>, vector<1x1x32xf32>
    %222 = vector.shape_cast %221 : vector<1x1x32xf32> to vector<1x32xf32>
    %c1_84 = arith.constant 1 : index
    %c0_85 = arith.constant 0 : index
    %c0_86 = arith.constant 0 : index
    %223 = vector.load %arg9[%c1_84, %c0_85, %c0_86] : memref<2x1x32xf32, #tpu.memory_space<vmem>>, vector<1x1x32xf32>
    %224 = vector.shape_cast %223 : vector<1x1x32xf32> to vector<1x32xf32>
    %cst_87 = arith.constant dense<0.000000e+00> : vector<16xf32>
    %225 = vector.multi_reduction <add>, %220, %cst_87 [1] : vector<16x32xf32> to vector<16xf32>
    %226 = vector.shape_cast %225 : vector<16xf32> to vector<16x1xf32>
    %cst_88 = arith.constant 3.200000e+01 : f32
    %227 = vector.broadcast %cst_88 : f32 to vector<16x1xf32>
    %228 = arith.divf %226, %227 : vector<16x1xf32>
    %229 = vector.broadcast %228 : vector<16x1xf32> to vector<16x32xf32>
    %230 = arith.subf %220, %229 : vector<16x32xf32>
    %231 = arith.mulf %230, %230 : vector<16x32xf32>
    %cst_89 = arith.constant dense<0.000000e+00> : vector<16xf32>
    %232 = vector.multi_reduction <add>, %231, %cst_89 [1] : vector<16x32xf32> to vector<16xf32>
    %233 = vector.shape_cast %232 : vector<16xf32> to vector<16x1xf32>
    %cst_90 = arith.constant 3.200000e+01 : f32
    %234 = vector.broadcast %cst_90 : f32 to vector<16x1xf32>
    %235 = arith.divf %233, %234 : vector<16x1xf32>
    %cst_91 = arith.constant 9.99999974E-5 : f32
    %236 = vector.broadcast %cst_91 : f32 to vector<16x1xf32>
    %237 = arith.addf %235, %236 : vector<16x1xf32>
    %238 = math.rsqrt %237 : vector<16x1xf32>
    %239 = vector.broadcast %238 : vector<16x1xf32> to vector<16x32xf32>
    %240 = arith.mulf %230, %239 : vector<16x32xf32>
    %241 = vector.broadcast %222 : vector<1x32xf32> to vector<16x32xf32>
    %242 = arith.mulf %240, %241 : vector<16x32xf32>
    %243 = vector.broadcast %224 : vector<1x32xf32> to vector<16x32xf32>
    %244 = arith.addf %242, %243 : vector<16x32xf32>
    %245 = vector.broadcast %10 : vector<16x1xf32> to vector<16x32xf32>
    %246 = arith.mulf %244, %245 : vector<16x32xf32>
    %c1_92 = arith.constant 1 : index
    %c0_93 = arith.constant 0 : index
    %c0_94 = arith.constant 0 : index
    %247 = vector.load %arg10[%c1_92, %c0_93, %c0_94] : memref<2x96x64xf32, #tpu.memory_space<vmem>>, vector<1x96x64xf32>
    %248 = vector.shape_cast %247 : vector<1x96x64xf32> to vector<96x64xf32>
    %c1_95 = arith.constant 1 : index
    %c0_96 = arith.constant 0 : index
    %c0_97 = arith.constant 0 : index
    %249 = vector.load %arg11[%c1_95, %c0_96, %c0_97] : memref<2x1x64xf32, #tpu.memory_space<vmem>>, vector<1x1x64xf32>
    %250 = vector.shape_cast %249 : vector<1x1x64xf32> to vector<1x64xf32>
    %cst_98 = arith.constant dense<0.000000e+00> : vector<16x32xf32>
    %251 = tpu.matmul %20, %246, %cst_98 {dimension_numbers = #tpu.dot_dimension_numbers<[1], [0], [0], [1], [0, 0, 1, 1], [], []>} : vector<16x16xf32>, vector<16x32xf32>, vector<16x32xf32> -> vector<16x32xf32>
    %cst_99 = arith.constant dense<0.000000e+00> : vector<16x32xf32>
    %252 = tpu.matmul %25, %246, %cst_99 {dimension_numbers = #tpu.dot_dimension_numbers<[1], [0], [0], [1], [0, 0, 1, 1], [], []>} : vector<16x16xf32>, vector<16x32xf32>, vector<16x32xf32> -> vector<16x32xf32>
    %253 = tpu.concatenate %251, %246, %252 in 1 : vector<16x32xf32>, vector<16x32xf32>, vector<16x32xf32> -> vector<16x96xf32>
    %cst_100 = arith.constant dense<0.000000e+00> : vector<16x64xf32>
    %254 = tpu.matmul %253, %248, %cst_100 {dimension_numbers = #tpu.dot_dimension_numbers<[1], [0], [0], [1], [0, 0, 1, 1], [], []>} : vector<16x96xf32>, vector<96x64xf32>, vector<16x64xf32> -> vector<16x64xf32>
    %255 = vector.broadcast %250 : vector<1x64xf32> to vector<16x64xf32>
    %256 = arith.addf %254, %255 : vector<16x64xf32>
    %cst_101 = arith.constant 0.000000e+00 : f32
    %257 = vector.broadcast %cst_101 : f32 to vector<16x64xf32>
    %258 = arith.maximumf %256, %257 : vector<16x64xf32>
    %259 = vector.broadcast %10 : vector<16x1xf32> to vector<16x64xf32>
    %260 = arith.mulf %258, %259 : vector<16x64xf32>
    %c1_102 = arith.constant 1 : index
    %c0_103 = arith.constant 0 : index
    %c0_104 = arith.constant 0 : index
    %261 = vector.load %arg12[%c1_102, %c0_103, %c0_104] : memref<2x192x32xf32, #tpu.memory_space<vmem>>, vector<1x192x32xf32>
    %262 = vector.shape_cast %261 : vector<1x192x32xf32> to vector<192x32xf32>
    %c1_105 = arith.constant 1 : index
    %c0_106 = arith.constant 0 : index
    %c0_107 = arith.constant 0 : index
    %263 = vector.load %arg13[%c1_105, %c0_106, %c0_107] : memref<2x1x32xf32, #tpu.memory_space<vmem>>, vector<1x1x32xf32>
    %264 = vector.shape_cast %263 : vector<1x1x32xf32> to vector<1x32xf32>
    %cst_108 = arith.constant dense<0.000000e+00> : vector<16x64xf32>
    %265 = tpu.matmul %20, %260, %cst_108 {dimension_numbers = #tpu.dot_dimension_numbers<[1], [0], [0], [1], [0, 0, 1, 1], [], []>} : vector<16x16xf32>, vector<16x64xf32>, vector<16x64xf32> -> vector<16x64xf32>
    %cst_109 = arith.constant dense<0.000000e+00> : vector<16x64xf32>
    %266 = tpu.matmul %25, %260, %cst_109 {dimension_numbers = #tpu.dot_dimension_numbers<[1], [0], [0], [1], [0, 0, 1, 1], [], []>} : vector<16x16xf32>, vector<16x64xf32>, vector<16x64xf32> -> vector<16x64xf32>
    %267 = tpu.concatenate %265, %260, %266 in 1 : vector<16x64xf32>, vector<16x64xf32>, vector<16x64xf32> -> vector<16x192xf32>
    %cst_110 = arith.constant dense<0.000000e+00> : vector<16x32xf32>
    %268 = tpu.matmul %267, %262, %cst_110 {dimension_numbers = #tpu.dot_dimension_numbers<[1], [0], [0], [1], [0, 0, 1, 1], [], []>} : vector<16x192xf32>, vector<192x32xf32>, vector<16x32xf32> -> vector<16x32xf32>
    %269 = vector.broadcast %264 : vector<1x32xf32> to vector<16x32xf32>
    %270 = arith.addf %268, %269 : vector<16x32xf32>
    %271 = vector.broadcast %10 : vector<16x1xf32> to vector<16x32xf32>
    %272 = arith.mulf %270, %271 : vector<16x32xf32>
    %273 = arith.addf %244, %272 : vector<16x32xf32>
    %c1_111 = arith.constant 1 : index
    %c0_112 = arith.constant 0 : index
    %c0_113 = arith.constant 0 : index
    %274 = vector.load %arg14[%c1_111, %c0_112, %c0_113] : memref<2x1x32xf32, #tpu.memory_space<vmem>>, vector<1x1x32xf32>
    %275 = vector.shape_cast %274 : vector<1x1x32xf32> to vector<1x32xf32>
    %c1_114 = arith.constant 1 : index
    %c0_115 = arith.constant 0 : index
    %c0_116 = arith.constant 0 : index
    %276 = vector.load %arg15[%c1_114, %c0_115, %c0_116] : memref<2x1x32xf32, #tpu.memory_space<vmem>>, vector<1x1x32xf32>
    %277 = vector.shape_cast %276 : vector<1x1x32xf32> to vector<1x32xf32>
    %cst_117 = arith.constant dense<0.000000e+00> : vector<16xf32>
    %278 = vector.multi_reduction <add>, %273, %cst_117 [1] : vector<16x32xf32> to vector<16xf32>
    %279 = vector.shape_cast %278 : vector<16xf32> to vector<16x1xf32>
    %cst_118 = arith.constant 3.200000e+01 : f32
    %280 = vector.broadcast %cst_118 : f32 to vector<16x1xf32>
    %281 = arith.divf %279, %280 : vector<16x1xf32>
    %282 = vector.broadcast %281 : vector<16x1xf32> to vector<16x32xf32>
    %283 = arith.subf %273, %282 : vector<16x32xf32>
    %284 = arith.mulf %283, %283 : vector<16x32xf32>
    %cst_119 = arith.constant dense<0.000000e+00> : vector<16xf32>
    %285 = vector.multi_reduction <add>, %284, %cst_119 [1] : vector<16x32xf32> to vector<16xf32>
    %286 = vector.shape_cast %285 : vector<16xf32> to vector<16x1xf32>
    %cst_120 = arith.constant 3.200000e+01 : f32
    %287 = vector.broadcast %cst_120 : f32 to vector<16x1xf32>
    %288 = arith.divf %286, %287 : vector<16x1xf32>
    %cst_121 = arith.constant 9.99999974E-5 : f32
    %289 = vector.broadcast %cst_121 : f32 to vector<16x1xf32>
    %290 = arith.addf %288, %289 : vector<16x1xf32>
    %291 = math.rsqrt %290 : vector<16x1xf32>
    %292 = vector.broadcast %291 : vector<16x1xf32> to vector<16x32xf32>
    %293 = arith.mulf %283, %292 : vector<16x32xf32>
    %294 = vector.broadcast %275 : vector<1x32xf32> to vector<16x32xf32>
    %295 = arith.mulf %293, %294 : vector<16x32xf32>
    %296 = vector.broadcast %277 : vector<1x32xf32> to vector<16x32xf32>
    %297 = arith.addf %295, %296 : vector<16x32xf32>
    %298 = vector.broadcast %10 : vector<16x1xf32> to vector<16x32xf32>
    %299 = arith.mulf %297, %298 : vector<16x32xf32>
    %c0_122 = arith.constant 0 : index
    %c0_123 = arith.constant 0 : index
    %300 = vector.load %arg16[%c0_122, %c0_123] : memref<32x16xf32, #tpu.memory_space<vmem>>, vector<32x16xf32>
    %cst_124 = arith.constant dense<0.000000e+00> : vector<16x16xf32>
    %301 = tpu.matmul %299, %300, %cst_124 {dimension_numbers = #tpu.dot_dimension_numbers<[1], [0], [0], [1], [0, 0, 1, 1], [], []>} : vector<16x32xf32>, vector<32x16xf32>, vector<16x16xf32> -> vector<16x16xf32>
    %c0_125 = arith.constant 0 : index
    %c0_126 = arith.constant 0 : index
    %302 = vector.load %arg17[%c0_125, %c0_126] : memref<1x16xf32, #tpu.memory_space<vmem>>, vector<1x16xf32>
    %303 = vector.broadcast %302 : vector<1x16xf32> to vector<16x16xf32>
    %304 = arith.addf %301, %303 : vector<16x16xf32>
    %305 = vector.broadcast %10 : vector<16x1xf32> to vector<16x16xf32>
    %306 = arith.mulf %304, %305 : vector<16x16xf32>
    %c0_127 = arith.constant 0 : index
    %c0_128 = arith.constant 0 : index
    %c0_129 = arith.constant 0 : index
    %307 = vector.load %arg28[%c0_127, %c0_128, %c0_129] : memref<1x16x16xf32, #tpu.memory_space<vmem>>, vector<1x16x16xf32>
    %308 = vector.shape_cast %307 : vector<1x16x16xf32> to vector<16x16xf32>
    %309 = vector.shape_cast %306 : vector<16x16xf32> to vector<1x16x16xf32>
    tpu.vector_store %arg28[%c0_127, %c0_128, %c0_129], %309 {strides = array<i32>} : memref<1x16x16xf32, #tpu.memory_space<vmem>>, vector<1x16x16xf32>,
    %c0_130 = arith.constant 0 : index
    %c0_131 = arith.constant 0 : index
    %c0_132 = arith.constant 0 : index
    %310 = vector.load %arg3[%c0_130, %c0_131, %c0_132] : memref<1x1x16xf32, #tpu.memory_space<vmem>>, vector<1x1x16xf32>
    %311 = vector.shape_cast %310 : vector<1x1x16xf32> to vector<1x16xf32>
    %312 = vector.shape_cast %311 : vector<1x16xf32> to vector<1x16xf32>
    %313 = vector.broadcast %312 : vector<1x16xf32> to vector<16x16xf32>
    %314 = tpu.concatenate %299, %313 in 1 : vector<16x32xf32>, vector<16x16xf32> -> vector<16x48xf32>
    %315 = vector.broadcast %10 : vector<16x1xf32> to vector<16x48xf32>
    %316 = arith.mulf %314, %315 : vector<16x48xf32>
    %c0_133 = arith.constant 0 : index
    %c0_134 = arith.constant 0 : index
    %317 = vector.load %arg18[%c0_133, %c0_134] : memref<144x32xf32, #tpu.memory_space<vmem>>, vector<144x32xf32>
    %c0_135 = arith.constant 0 : index
    %c0_136 = arith.constant 0 : index
    %318 = vector.load %arg19[%c0_135, %c0_136] : memref<1x32xf32, #tpu.memory_space<vmem>>, vector<1x32xf32>
    %cst_137 = arith.constant dense<0.000000e+00> : vector<16x48xf32>
    %319 = tpu.matmul %20, %316, %cst_137 {dimension_numbers = #tpu.dot_dimension_numbers<[1], [0], [0], [1], [0, 0, 1, 1], [], []>} : vector<16x16xf32>, vector<16x48xf32>, vector<16x48xf32> -> vector<16x48xf32>
    %cst_138 = arith.constant dense<0.000000e+00> : vector<16x48xf32>
    %320 = tpu.matmul %25, %316, %cst_138 {dimension_numbers = #tpu.dot_dimension_numbers<[1], [0], [0], [1], [0, 0, 1, 1], [], []>} : vector<16x16xf32>, vector<16x48xf32>, vector<16x48xf32> -> vector<16x48xf32>
    %321 = tpu.concatenate %319, %316, %320 in 1 : vector<16x48xf32>, vector<16x48xf32>, vector<16x48xf32> -> vector<16x144xf32>
    %cst_139 = arith.constant dense<0.000000e+00> : vector<16x32xf32>
    %322 = tpu.matmul %321, %317, %cst_139 {dimension_numbers = #tpu.dot_dimension_numbers<[1], [0], [0], [1], [0, 0, 1, 1], [], []>} : vector<16x144xf32>, vector<144x32xf32>, vector<16x32xf32> -> vector<16x32xf32>
    %323 = vector.broadcast %318 : vector<1x32xf32> to vector<16x32xf32>
    %324 = arith.addf %322, %323 : vector<16x32xf32>
    %cst_140 = arith.constant 0.000000e+00 : f32
    %325 = vector.broadcast %cst_140 : f32 to vector<16x32xf32>
    %326 = arith.maximumf %324, %325 : vector<16x32xf32>
    %c0_141 = arith.constant 0 : index
    %c0_142 = arith.constant 0 : index
    %327 = vector.load %arg20[%c0_141, %c0_142] : memref<1x32xf32, #tpu.memory_space<vmem>>, vector<1x32xf32>
    %c0_143 = arith.constant 0 : index
    %c0_144 = arith.constant 0 : index
    %328 = vector.load %arg21[%c0_143, %c0_144] : memref<1x32xf32, #tpu.memory_space<vmem>>, vector<1x32xf32>
    %cst_145 = arith.constant dense<0.000000e+00> : vector<16xf32>
    %329 = vector.multi_reduction <add>, %326, %cst_145 [1] : vector<16x32xf32> to vector<16xf32>
    %330 = vector.shape_cast %329 : vector<16xf32> to vector<16x1xf32>
    %cst_146 = arith.constant 3.200000e+01 : f32
    %331 = vector.broadcast %cst_146 : f32 to vector<16x1xf32>
    %332 = arith.divf %330, %331 : vector<16x1xf32>
    %333 = vector.broadcast %332 : vector<16x1xf32> to vector<16x32xf32>
    %334 = arith.subf %326, %333 : vector<16x32xf32>
    %335 = arith.mulf %334, %334 : vector<16x32xf32>
    %cst_147 = arith.constant dense<0.000000e+00> : vector<16xf32>
    %336 = vector.multi_reduction <add>, %335, %cst_147 [1] : vector<16x32xf32> to vector<16xf32>
    %337 = vector.shape_cast %336 : vector<16xf32> to vector<16x1xf32>
    %cst_148 = arith.constant 3.200000e+01 : f32
    %338 = vector.broadcast %cst_148 : f32 to vector<16x1xf32>
    %339 = arith.divf %337, %338 : vector<16x1xf32>
    %cst_149 = arith.constant 9.99999974E-5 : f32
    %340 = vector.broadcast %cst_149 : f32 to vector<16x1xf32>
    %341 = arith.addf %339, %340 : vector<16x1xf32>
    %342 = math.rsqrt %341 : vector<16x1xf32>
    %343 = vector.broadcast %342 : vector<16x1xf32> to vector<16x32xf32>
    %344 = arith.mulf %334, %343 : vector<16x32xf32>
    %345 = vector.broadcast %327 : vector<1x32xf32> to vector<16x32xf32>
    %346 = arith.mulf %344, %345 : vector<16x32xf32>
    %347 = vector.broadcast %328 : vector<1x32xf32> to vector<16x32xf32>
    %348 = arith.addf %346, %347 : vector<16x32xf32>
    %349 = vector.broadcast %10 : vector<16x1xf32> to vector<16x32xf32>
    %350 = arith.mulf %348, %349 : vector<16x32xf32>
    %c0_150 = arith.constant 0 : index
    %c0_151 = arith.constant 0 : index
    %351 = vector.load %arg22[%c0_150, %c0_151] : memref<96x32xf32, #tpu.memory_space<vmem>>, vector<96x32xf32>
    %c0_152 = arith.constant 0 : index
    %c0_153 = arith.constant 0 : index
    %352 = vector.load %arg23[%c0_152, %c0_153] : memref<1x32xf32, #tpu.memory_space<vmem>>, vector<1x32xf32>
    %cst_154 = arith.constant dense<0.000000e+00> : vector<16x32xf32>
    %353 = tpu.matmul %20, %350, %cst_154 {dimension_numbers = #tpu.dot_dimension_numbers<[1], [0], [0], [1], [0, 0, 1, 1], [], []>} : vector<16x16xf32>, vector<16x32xf32>, vector<16x32xf32> -> vector<16x32xf32>
    %cst_155 = arith.constant dense<0.000000e+00> : vector<16x32xf32>
    %354 = tpu.matmul %25, %350, %cst_155 {dimension_numbers = #tpu.dot_dimension_numbers<[1], [0], [0], [1], [0, 0, 1, 1], [], []>} : vector<16x16xf32>, vector<16x32xf32>, vector<16x32xf32> -> vector<16x32xf32>
    %355 = tpu.concatenate %353, %350, %354 in 1 : vector<16x32xf32>, vector<16x32xf32>, vector<16x32xf32> -> vector<16x96xf32>
    %cst_156 = arith.constant dense<0.000000e+00> : vector<16x32xf32>
    %356 = tpu.matmul %355, %351, %cst_156 {dimension_numbers = #tpu.dot_dimension_numbers<[1], [0], [0], [1], [0, 0, 1, 1], [], []>} : vector<16x96xf32>, vector<96x32xf32>, vector<16x32xf32> -> vector<16x32xf32>
    %357 = vector.broadcast %352 : vector<1x32xf32> to vector<16x32xf32>
    %358 = arith.addf %356, %357 : vector<16x32xf32>
    %cst_157 = arith.constant 0.000000e+00 : f32
    %359 = vector.broadcast %cst_157 : f32 to vector<16x32xf32>
    %360 = arith.maximumf %358, %359 : vector<16x32xf32>
    %c0_158 = arith.constant 0 : index
    %c0_159 = arith.constant 0 : index
    %361 = vector.load %arg24[%c0_158, %c0_159] : memref<1x32xf32, #tpu.memory_space<vmem>>, vector<1x32xf32>
    %c0_160 = arith.constant 0 : index
    %c0_161 = arith.constant 0 : index
    %362 = vector.load %arg25[%c0_160, %c0_161] : memref<1x32xf32, #tpu.memory_space<vmem>>, vector<1x32xf32>
    %cst_162 = arith.constant dense<0.000000e+00> : vector<16xf32>
    %363 = vector.multi_reduction <add>, %360, %cst_162 [1] : vector<16x32xf32> to vector<16xf32>
    %364 = vector.shape_cast %363 : vector<16xf32> to vector<16x1xf32>
    %cst_163 = arith.constant 3.200000e+01 : f32
    %365 = vector.broadcast %cst_163 : f32 to vector<16x1xf32>
    %366 = arith.divf %364, %365 : vector<16x1xf32>
    %367 = vector.broadcast %366 : vector<16x1xf32> to vector<16x32xf32>
    %368 = arith.subf %360, %367 : vector<16x32xf32>
    %369 = arith.mulf %368, %368 : vector<16x32xf32>
    %cst_164 = arith.constant dense<0.000000e+00> : vector<16xf32>
    %370 = vector.multi_reduction <add>, %369, %cst_164 [1] : vector<16x32xf32> to vector<16xf32>
    %371 = vector.shape_cast %370 : vector<16xf32> to vector<16x1xf32>
    %cst_165 = arith.constant 3.200000e+01 : f32
    %372 = vector.broadcast %cst_165 : f32 to vector<16x1xf32>
    %373 = arith.divf %371, %372 : vector<16x1xf32>
    %cst_166 = arith.constant 9.99999974E-5 : f32
    %374 = vector.broadcast %cst_166 : f32 to vector<16x1xf32>
    %375 = arith.addf %373, %374 : vector<16x1xf32>
    %376 = math.rsqrt %375 : vector<16x1xf32>
    %377 = vector.broadcast %376 : vector<16x1xf32> to vector<16x32xf32>
    %378 = arith.mulf %368, %377 : vector<16x32xf32>
    %379 = vector.broadcast %361 : vector<1x32xf32> to vector<16x32xf32>
    %380 = arith.mulf %378, %379 : vector<16x32xf32>
    %381 = vector.broadcast %362 : vector<1x32xf32> to vector<16x32xf32>
    %382 = arith.addf %380, %381 : vector<16x32xf32>
    %383 = vector.broadcast %10 : vector<16x1xf32> to vector<16x32xf32>
    %384 = arith.mulf %382, %383 : vector<16x32xf32>
    %c0_167 = arith.constant 0 : index
    %c0_168 = arith.constant 0 : index
    %385 = vector.load %arg26[%c0_167, %c0_168] : memref<1x32xf32, #tpu.memory_space<vmem>>, vector<1x32xf32>
    %386 = vector.broadcast %385 : vector<1x32xf32> to vector<16x32xf32>
    %387 = arith.mulf %384, %386 : vector<16x32xf32>
    %cst_169 = arith.constant dense<0.000000e+00> : vector<16xf32>
    %388 = vector.multi_reduction <add>, %387, %cst_169 [1] : vector<16x32xf32> to vector<16xf32>
    %389 = vector.shape_cast %388 : vector<16xf32> to vector<16x1xf32>
    %c0_170 = arith.constant 0 : index
    %c0_171 = arith.constant 0 : index
    %390 = vector.load %arg27[%c0_170, %c0_171] : memref<1x1xf32, #tpu.memory_space<vmem>>, vector<1x1xf32>
    %391 = vector.broadcast %390 : vector<1x1xf32> to vector<16x1xf32>
    %392 = arith.addf %389, %391 : vector<16x1xf32>
    %c0_172 = arith.constant 0 : index
    %c0_173 = arith.constant 0 : index
    %c0_174 = arith.constant 0 : index
    %393 = vector.load %arg29[%c0_172, %c0_173, %c0_174] : memref<1x16x1xf32, #tpu.memory_space<vmem>>, vector<1x16x1xf32>
    %394 = vector.shape_cast %393 : vector<1x16x1xf32> to vector<16x1xf32>
    %395 = vector.shape_cast %392 : vector<16x1xf32> to vector<1x16x1xf32>
    tpu.vector_store %arg29[%c0_172, %c0_173, %c0_174], %395 {strides = array<i32>} : memref<1x16x1xf32, #tpu.memory_space<vmem>>, vector<1x16x1xf32>,
    return
  }
  func.func @transform_0(%arg0: i32, %arg1: memref<2xi32, #tpu.memory_space<smem>>) -> (i32, i32, i32) {
    %c0_i32 = arith.constant 0 : i32
    %c0_i32_0 = arith.constant 0 : i32
    %c0_i32_1 = arith.constant 0 : i32
    return %arg0, %c0_i32, %c0_i32_0 : i32, i32, i32
  }
  func.func @transform_1(%arg0: i32, %arg1: memref<2xi32, #tpu.memory_space<smem>>) -> (i32, i32, i32) {
    %c0_i32 = arith.constant 0 : i32
    %c0_i32_0 = arith.constant 0 : i32
    %c0_i32_1 = arith.constant 0 : i32
    return %arg0, %c0_i32, %c0_i32_0 : i32, i32, i32
  }
  func.func @transform_2(%arg0: i32, %arg1: memref<2xi32, #tpu.memory_space<smem>>) -> (i32, i32, i32) {
    %c0_i32 = arith.constant 0 : i32
    %c0_i32_0 = arith.constant 0 : i32
    %c0_i32_1 = arith.constant 0 : i32
    %c0_i32_2 = arith.constant 0 : i32
    return %c0_i32, %c0_i32_0, %c0_i32_1 : i32, i32, i32
  }
  func.func @transform_3(%arg0: i32, %arg1: memref<2xi32, #tpu.memory_space<smem>>) -> (i32, i32, i32) {
    %c0_i32 = arith.constant 0 : i32
    %c0_i32_0 = arith.constant 0 : i32
    %c0_i32_1 = arith.constant 0 : i32
    %c0_i32_2 = arith.constant 0 : i32
    return %c0_i32, %c0_i32_0, %c0_i32_1 : i32, i32, i32
  }
  func.func @transform_4(%arg0: i32, %arg1: memref<2xi32, #tpu.memory_space<smem>>) -> (i32, i32, i32) {
    %c0_i32 = arith.constant 0 : i32
    %c0_i32_0 = arith.constant 0 : i32
    %c0_i32_1 = arith.constant 0 : i32
    %c0_i32_2 = arith.constant 0 : i32
    return %c0_i32, %c0_i32_0, %c0_i32_1 : i32, i32, i32
  }
  func.func @transform_5(%arg0: i32, %arg1: memref<2xi32, #tpu.memory_space<smem>>) -> (i32, i32, i32) {
    %c0_i32 = arith.constant 0 : i32
    %c0_i32_0 = arith.constant 0 : i32
    %c0_i32_1 = arith.constant 0 : i32
    %c0_i32_2 = arith.constant 0 : i32
    return %c0_i32, %c0_i32_0, %c0_i32_1 : i32, i32, i32
  }
  func.func @transform_6(%arg0: i32, %arg1: memref<2xi32, #tpu.memory_space<smem>>) -> (i32, i32, i32) {
    %c0_i32 = arith.constant 0 : i32
    %c0_i32_0 = arith.constant 0 : i32
    %c0_i32_1 = arith.constant 0 : i32
    %c0_i32_2 = arith.constant 0 : i32
    return %c0_i32, %c0_i32_0, %c0_i32_1 : i32, i32, i32
  }
  func.func @transform_7(%arg0: i32, %arg1: memref<2xi32, #tpu.memory_space<smem>>) -> (i32, i32, i32) {
    %c0_i32 = arith.constant 0 : i32
    %c0_i32_0 = arith.constant 0 : i32
    %c0_i32_1 = arith.constant 0 : i32
    %c0_i32_2 = arith.constant 0 : i32
    return %c0_i32, %c0_i32_0, %c0_i32_1 : i32, i32, i32
  }
  func.func @transform_8(%arg0: i32, %arg1: memref<2xi32, #tpu.memory_space<smem>>) -> (i32, i32, i32) {
    %c0_i32 = arith.constant 0 : i32
    %c0_i32_0 = arith.constant 0 : i32
    %c0_i32_1 = arith.constant 0 : i32
    %c0_i32_2 = arith.constant 0 : i32
    return %c0_i32, %c0_i32_0, %c0_i32_1 : i32, i32, i32
  }
  func.func @transform_9(%arg0: i32, %arg1: memref<2xi32, #tpu.memory_space<smem>>) -> (i32, i32, i32) {
    %c0_i32 = arith.constant 0 : i32
    %c0_i32_0 = arith.constant 0 : i32
    %c0_i32_1 = arith.constant 0 : i32
    %c0_i32_2 = arith.constant 0 : i32
    return %c0_i32, %c0_i32_0, %c0_i32_1 : i32, i32, i32
  }
  func.func @transform_10(%arg0: i32, %arg1: memref<2xi32, #tpu.memory_space<smem>>) -> (i32, i32, i32) {
    %c0_i32 = arith.constant 0 : i32
    %c0_i32_0 = arith.constant 0 : i32
    %c0_i32_1 = arith.constant 0 : i32
    %c0_i32_2 = arith.constant 0 : i32
    return %c0_i32, %c0_i32_0, %c0_i32_1 : i32, i32, i32
  }
  func.func @transform_11(%arg0: i32, %arg1: memref<2xi32, #tpu.memory_space<smem>>) -> (i32, i32, i32) {
    %c0_i32 = arith.constant 0 : i32
    %c0_i32_0 = arith.constant 0 : i32
    %c0_i32_1 = arith.constant 0 : i32
    %c0_i32_2 = arith.constant 0 : i32
    return %c0_i32, %c0_i32_0, %c0_i32_1 : i32, i32, i32
  }
  func.func @transform_12(%arg0: i32, %arg1: memref<2xi32, #tpu.memory_space<smem>>) -> (i32, i32, i32) {
    %c0_i32 = arith.constant 0 : i32
    %c0_i32_0 = arith.constant 0 : i32
    %c0_i32_1 = arith.constant 0 : i32
    %c0_i32_2 = arith.constant 0 : i32
    return %c0_i32, %c0_i32_0, %c0_i32_1 : i32, i32, i32
  }
  func.func @transform_13(%arg0: i32, %arg1: memref<2xi32, #tpu.memory_space<smem>>) -> (i32, i32, i32) {
    %c0_i32 = arith.constant 0 : i32
    %c0_i32_0 = arith.constant 0 : i32
    %c0_i32_1 = arith.constant 0 : i32
    %c0_i32_2 = arith.constant 0 : i32
    return %c0_i32, %c0_i32_0, %c0_i32_1 : i32, i32, i32
  }
  func.func @transform_14(%arg0: i32, %arg1: memref<2xi32, #tpu.memory_space<smem>>) -> (i32, i32) {
    %c0_i32 = arith.constant 0 : i32
    %c0_i32_0 = arith.constant 0 : i32
    %c0_i32_1 = arith.constant 0 : i32
    return %c0_i32, %c0_i32_0 : i32, i32
  }
  func.func @transform_15(%arg0: i32, %arg1: memref<2xi32, #tpu.memory_space<smem>>) -> (i32, i32) {
    %c0_i32 = arith.constant 0 : i32
    %c0_i32_0 = arith.constant 0 : i32
    %c0_i32_1 = arith.constant 0 : i32
    return %c0_i32, %c0_i32_0 : i32, i32
  }
  func.func @transform_16(%arg0: i32, %arg1: memref<2xi32, #tpu.memory_space<smem>>) -> (i32, i32) {
    %c0_i32 = arith.constant 0 : i32
    %c0_i32_0 = arith.constant 0 : i32
    %c0_i32_1 = arith.constant 0 : i32
    return %c0_i32, %c0_i32_0 : i32, i32
  }
  func.func @transform_17(%arg0: i32, %arg1: memref<2xi32, #tpu.memory_space<smem>>) -> (i32, i32) {
    %c0_i32 = arith.constant 0 : i32
    %c0_i32_0 = arith.constant 0 : i32
    %c0_i32_1 = arith.constant 0 : i32
    return %c0_i32, %c0_i32_0 : i32, i32
  }
  func.func @transform_18(%arg0: i32, %arg1: memref<2xi32, #tpu.memory_space<smem>>) -> (i32, i32) {
    %c0_i32 = arith.constant 0 : i32
    %c0_i32_0 = arith.constant 0 : i32
    %c0_i32_1 = arith.constant 0 : i32
    return %c0_i32, %c0_i32_0 : i32, i32
  }
  func.func @transform_19(%arg0: i32, %arg1: memref<2xi32, #tpu.memory_space<smem>>) -> (i32, i32) {
    %c0_i32 = arith.constant 0 : i32
    %c0_i32_0 = arith.constant 0 : i32
    %c0_i32_1 = arith.constant 0 : i32
    return %c0_i32, %c0_i32_0 : i32, i32
  }
  func.func @transform_20(%arg0: i32, %arg1: memref<2xi32, #tpu.memory_space<smem>>) -> (i32, i32) {
    %c0_i32 = arith.constant 0 : i32
    %c0_i32_0 = arith.constant 0 : i32
    %c0_i32_1 = arith.constant 0 : i32
    return %c0_i32, %c0_i32_0 : i32, i32
  }
  func.func @transform_21(%arg0: i32, %arg1: memref<2xi32, #tpu.memory_space<smem>>) -> (i32, i32) {
    %c0_i32 = arith.constant 0 : i32
    %c0_i32_0 = arith.constant 0 : i32
    %c0_i32_1 = arith.constant 0 : i32
    return %c0_i32, %c0_i32_0 : i32, i32
  }
  func.func @transform_22(%arg0: i32, %arg1: memref<2xi32, #tpu.memory_space<smem>>) -> (i32, i32) {
    %c0_i32 = arith.constant 0 : i32
    %c0_i32_0 = arith.constant 0 : i32
    %c0_i32_1 = arith.constant 0 : i32
    return %c0_i32, %c0_i32_0 : i32, i32
  }
  func.func @transform_23(%arg0: i32, %arg1: memref<2xi32, #tpu.memory_space<smem>>) -> (i32, i32) {
    %c0_i32 = arith.constant 0 : i32
    %c0_i32_0 = arith.constant 0 : i32
    %c0_i32_1 = arith.constant 0 : i32
    return %c0_i32, %c0_i32_0 : i32, i32
  }
  func.func @transform_24(%arg0: i32, %arg1: memref<2xi32, #tpu.memory_space<smem>>) -> (i32, i32) {
    %c0_i32 = arith.constant 0 : i32
    %c0_i32_0 = arith.constant 0 : i32
    %c0_i32_1 = arith.constant 0 : i32
    return %c0_i32, %c0_i32_0 : i32, i32
  }
  func.func @transform_25(%arg0: i32, %arg1: memref<2xi32, #tpu.memory_space<smem>>) -> (i32, i32) {
    %c0_i32 = arith.constant 0 : i32
    %c0_i32_0 = arith.constant 0 : i32
    %c0_i32_1 = arith.constant 0 : i32
    return %c0_i32, %c0_i32_0 : i32, i32
  }
  func.func @transform_26(%arg0: i32, %arg1: memref<2xi32, #tpu.memory_space<smem>>) -> (i32, i32, i32) {
    %c0_i32 = arith.constant 0 : i32
    %c0_i32_0 = arith.constant 0 : i32
    %c0_i32_1 = arith.constant 0 : i32
    return %arg0, %c0_i32, %c0_i32_0 : i32, i32, i32
  }
  func.func @transform_27(%arg0: i32, %arg1: memref<2xi32, #tpu.memory_space<smem>>) -> (i32, i32, i32) {
    %c0_i32 = arith.constant 0 : i32
    %c0_i32_0 = arith.constant 0 : i32
    %c0_i32_1 = arith.constant 0 : i32
    return %arg0, %c0_i32, %c0_i32_0 : i32, i32, i32
  }
}

</mosaic_0001>

<bundles_post_ra>
// kernel: _lambda_.1
= control target key start
LH: loop header
LB: loop body
LE: loop exit
PB: predicated region body
PF: predicated region fallthrough
CT: control target
= control target key end

     0   :  { %s4077_s0 = inlined_call_operand.vmem [shape: s32[2], index: 0, kind: input, shape index: {}]   ;;  %s4078_s1 = inlined_call_operand.vmem [shape: f32[2,16,32], index: 1, kind: input, shape index: {}]   ;;  %s4079_s2 = inlined_call_operand.vmem [shape: f32[2,1,16], index: 2, kind: input, shape index: {}]   ;;  %s4080_s3 = inlined_call_operand.vmem [shape: f32[2,32,96], index: 3, kind: input, shape index: {}]   ;;  %s4081_s4 = inlined_call_operand.vmem [shape: f32[2,1,96], index: 4, kind: input, shape index: {}]   ;;  %s4082_s5 = inlined_call_operand.vmem [shape: f32[2,32,32], index: 5, kind: input, shape index: {}]   ;;  %s4083_s6 = inlined_call_operand.vmem [shape: f32[2,1,32], index: 6, kind: input, shape index: {}]   ;;  %s4084_s7 = inlined_call_operand.vmem [shape: f32[2,1,32], index: 7, kind: input, shape index: {}]   ;;  %s4085_s8 = inlined_call_operand.vmem [shape: f32[2,1,32], index: 8, kind: input, shape index: {}]   ;;  %s4086_s9 = inlined_call_operand.vmem [shape: f32[2,96,64], index: 9, kind: input, shape index: {}]   ;;  %s4087_s10 = inlined_call_operand.vmem [shape: f32[2,1,64], index: 10, kind: input, shape index: {}]   ;;  %s4088_s11 = inlined_call_operand.vmem [shape: f32[2,192,32], index: 11, kind: input, shape index: {}]   ;;  %s4089_s12 = inlined_call_operand.vmem [shape: f32[2,1,32], index: 12, kind: input, shape index: {}]   ;;  %s4090_s13 = inlined_call_operand.vmem [shape: f32[2,1,32], index: 13, kind: input, shape index: {}]   ;;  %s4091_s14 = inlined_call_operand.vmem [shape: f32[2,1,32], index: 14, kind: input, shape index: {}]   ;;  %s4092_s15 = inlined_call_operand.vmem [shape: f32[32,16], index: 15, kind: input, shape index: {}]   ;;  %s4093_s16 = inlined_call_operand.vmem [shape: f32[1,16], index: 16, kind: input, shape index: {}]   ;;  %s4094_s17 = inlined_call_operand.vmem [shape: f32[144,32], index: 17, kind: input, shape index: {}]   ;;  %s4095_s18 = inlined_call_operand.vmem [shape: f32[1,32], index: 18, kind: input, shape index: {}]   ;;  %s4096_s19 = inlined_call_operand.vmem [shape: f32[1,32], index: 19, kind: input, shape index: {}]   ;;  %s4097_s20 = inlined_call_operand.vmem [shape: f32[1,32], index: 20, kind: input, shape index: {}]   ;;  %s4098_s21 = inlined_call_operand.vmem [shape: f32[96,32], index: 21, kind: input, shape index: {}]   ;;  %s4099_s22 = inlined_call_operand.vmem [shape: f32[1,32], index: 22, kind: input, shape index: {}]   ;;  %s4100_s23 = inlined_call_operand.vmem [shape: f32[1,32], index: 23, kind: input, shape index: {}]   ;;  %s4101_s24 = inlined_call_operand.vmem [shape: f32[1,32], index: 24, kind: input, shape index: {}]   ;;  %s4102_s25 = inlined_call_operand.vmem [shape: f32[1,32], index: 25, kind: input, shape index: {}]   ;;  %s4103_s27 = inlined_call_operand.vmem [shape: f32[2,16,16], index: 27, kind: output, shape index: {0}]   ;;  %s4104_s28 = inlined_call_operand.vmem [shape: f32[2,16,1], index: 28, kind: output, shape index: {1}]   ;;  %s4105_s26 = inlined_call_operand.<no memory space> [shape: f32[1,1], index: 26, kind: input, shape index: {}]  }
   0x1   :  { %4131 = sst [smem:[#allocation7_spill]] %s4077_s0  ;;  %v39_v0 = vstv %s4105_s26 }
   0x2   :  { %4132 = sst [smem:[#allocation8_spill]] %s4078_s1  ;;  %40 = vst [vmem:[#allocation4] sm:$0x1] %v39_v0 }
   0x3   :  { %4133 = sst [smem:[#allocation9_spill]] %s4079_s2 }
   0x4   :  { %4134 = sst [smem:[#allocation10_spill]] %s4080_s3 }
   0x5   :  { %4135 = sst [smem:[#allocation11_spill]] %s4081_s4 }
   0x6   :  { %4136 = sst [smem:[#allocation12_spill]] %s4082_s5 }
   0x7   :  { %4137 = sst [smem:[#allocation13_spill]] %s4083_s6  ;;  %s3078_s6 = smov [#allocation3]  }
   0x8   :  { %4138 = sst [smem:[#allocation14_spill]] %s4084_s7 }
   0x9   :  { %4139 = sst [smem:[#allocation15_spill]] %s4085_s8 }
   0xa   :  { %4140 = sst [smem:[#allocation16_spill]] %s4086_s9 }
   0xb   :  { %4141 = sst [smem:[#allocation17_spill]] %s4087_s10 }
   0xc   :  { %4142 = sst [smem:[#allocation18_spill]] %s4088_s11 }
   0xd   :  { %4143 = sst [smem:[#allocation19_spill]] %s4089_s12 }
   0xe   :  { %4144 = sst [smem:[#allocation20_spill]] %s4098_s21 }
   0xf   :  { %4145 = sst [smem:[#allocation21_spill]] %s4099_s22 }
  0x10   :  { %4146 = sst [smem:[#allocation22_spill]] %s4100_s23 }
  0x11   :  { %4147 = sst [smem:[#allocation23_spill]] %s4101_s24 }
  0x12   :  { %4148 = sst [smem:[#allocation24_spill]] %s4102_s25 }
  0x13   :  { %4149 = sst [smem:[#allocation25_spill]] %s4104_s28 }
  0x14   :  { %s4150_s9 = sld [smem:[#allocation7_spill]] }
  0x1a   :  { %s35_s22 = sshll.u32 %s4150_s9, 4  ;;  %s36_s22 = int_to_ptr.vmem [resolvable:$true] %s35_s22 }
  0x1b   :  { %38 = dma.vmem_to_smem %s36_s22, 16, %s3078_s6, [#allocation2] }
  0x1c   :  { %3072 = dma.done.wait [#allocation2], 16 }
  0x1d   :  { %3073 = vsyncadd [#allocation2], 4294967280 }
  0x1e   :  { %43 = sfence }
  0x1f   :  { %s3238_s10 = smov 0  }
  0x20 LB: > { %4151 = sst [smem:[#allocation6_spill]] %s3076_s10  ;;  %s2789_s0 = sadd.s32 4294967295, %s3076_s10   ;;  %s3076_s10 = sphi %s3238_s10, %s49_s10  }
  0x21   : > { %p2793_p0 = scmp.ge.s32.totalorder %s3076_s10, 1  ;;  %p759_p1 = scmp.lt.s32.totalorder %s3076_s10, 3 }
  0x23   : > { %p760_p2 = pnand %p2793_p0, %p759_p1 }
  0x24   : > { %s4152_s11 = sld [smem:[#allocation10_spill]] (!%p760_p2)  ;;  %p839_p3 = scmp.lt.s32.totalorder (!%p760_p2), %s2789_s0, 1 }
  0x25   : > { %763 = sbr.rel (%p760_p2) target bundleno = 6181 (0x1825), region = 124  ;;  %s859_s7 = sld [smem:[#allocation3 + %s2789_s0]] (!%p760_p2) }
  0x26   : > { %s4153_s3 = sld [smem:[#allocation8_spill]] (!%p760_p2)  ;;  %s4116_s2 = smov (!%p760_p2), 96  }
  0x27   : > { %s4154_s29 = sld [smem:[#allocation11_spill]] (!%p760_p2)  ;;  %s4124_s12 = smov (!%p760_p2), 64  }
  0x28   : > { %s4120_s1 = smov (!%p760_p2), 16   ;;  %s4159_s9 = sld [smem:[#allocation12_spill]] (!%p760_p2) }
  0x29   : > { %s4160_s30 = sld [smem:[#allocation13_spill]] (!%p760_p2)  ;;  %s4118_s8 = smov (!%p760_p2), 32  }
  0x2a   : > { %v896_v1 = vld [vmem:[%s4152_s11 + $0x18] sm:$0xff]  ;;  %v895_v2 = vld [vmem:[%s4152_s11 + $0x10] sm:$0xff]  ;;  %v860_v3 = vlaneseq  ;;  %v894_v4 = vld [vmem:[%s4152_s11 + $0x8] sm:$0xff]  ;;  %s4181_s0 = smov (!%p839_p3, %s2789_s0), 1  ;;  %v3079_v10 = vmov 0.0   ;;  %vm901_vm1 = vcmask 261120  }
  0x2b   : > { %920 = vmatpush.msra.mxu1 %v896_v1  ;;  %v893_v5 = vld [vmem:[%s4152_s11] sm:$0xff]  ;;  %s3263_s5 = sshll.u32 %s4181_s0, 4  ;;  %v865_v9 = vstv %s859_s7  ;;  %s4122_s7 = smov 112   ;;  %vm949_vm3 = vcmask 130048  }
  0x2c   : > { %v3260_v6 = vshrl.u32 %v860_v3, 7  ;;  %s843_s6 = scalar_lea.vmem %s4153_s3, %s3263_s5  ;;  %v3313_v33 = vand.u32 127, %v860_v3  ;;  %s4162_s4 = sld [smem:[#allocation15_spill]] }
  0x2d   : > { %921 = vmatpush.msra.mxu1 %v895_v2  ;;  %v857_v8 = vld [vmem:[%s843_s6] sm:$0xff]  ;;  %v858_v13 = vld [vmem:[%s843_s6 + $0x8] sm:$0xff]  ;;  %s4161_s6 = sld [smem:[#allocation14_spill]]  ;;  %s4168_s3 = smov 112  }
  0x2e   : > { %v3266_v7 = vadd.s32 8, %v3260_v6  ;;  %vm866_vm0 = vcmp.lt.s32.totalorder %v3260_v6, %v865_v9  ;;  %v2972_v17 = vld [vmem:[%s4154_s29] ss:$0 sm:$0xff]  ;;  %vm872_vm4 = vcmp.lt.s32.totalorder %v3313_v33, %v865_v9  ;;  %s4163_s26 = sld [smem:[#allocation16_spill]]  ;;  %s4170_s21 = smov 16  }
  0x2f   : > { %922 = vmatpush.msra.mxu1 %v894_v4  ;;  %v3276_v11 = vsel %vm866_vm0, 1.0, %v3079_v10  ;;  %vm3318_vm5 = vmand %vm866_vm0, %vm872_vm4  ;;  %s4166_s22 = sld [smem:[#allocation17_spill]]  ;;  %s4171_s28 = smov 32  }
  0x30   : > { %v3279_v12 = vmul.f32 %v3276_v11, %v857_v8  ;;  %vm867_vm2 = vcmp.lt.s32.totalorder %v3266_v7, %v865_v9  ;;  %s4167_s24 = sld [smem:[#allocation19_spill]] }
  0x31   : > { %923 = vmatpush.msra.mxu1 %v893_v5  ;;  %v3287_v14 = vsel %vm867_vm2, 1.0, %v3079_v10  ;;  %vm3327_vm6 = vmand %vm867_vm2, %vm872_vm4  ;;  %vm1341_vm4 = vcmask 523264   ;;  %s4177_s23 = sld [smem:[#allocation24_spill]] }
  0x32   : > { %2806 = vmatmul.msk.f32.vlgmr.msra.gmra.mxu1 %vm901_vm1, %v3279_v12  ;;  %v3290_v15 = vmul.f32 %v3287_v14, %v858_v13 }
  0x3a   : > { %2807 = vmatmul.msk.f32.gmra.mxu1 %vm901_vm1, %v3290_v15 }
  0xaf   : > { %v925_v16 = vpop.f32.mrf.mxu1 }
  0xb0   : > { %v926_v19 = vadd.f32 %v2972_v17, %v925_v16 }
  0xb2   : > { %v931_v23 = vmul.f32 0.25, %v926_v19 }
  0xb7   : > { %v928_v18 = vpop.f32.mrf.mxu1 }
  0xb8   : > { %v929_v20 = vadd.f32 %v2972_v17, %v928_v18 }
  0xba   : > { %947 = vrot.lane.b32.xlu1 %v929_v20, %s4116_s2  ;;  %943 = vrot.lane.b32.xlu0 %v929_v20, %s4122_s7  ;;  %v2952_v21 = vpack.i.bf16 %v926_v19, %v929_v20  ;;  %v932_v22 = vmul.f32 0.25, %v929_v20 }
  0xc2   : > { %945 = vrot.lane.b32.xlu1 %v926_v19, %s4116_s2  ;;  %941 = vrot.lane.b32.xlu0 %v926_v19, %s4122_s7 }
  0xca   : > { %937 = vrot.lane.b32.xlu1 %v932_v22, %s4122_s7  ;;  %935 = vrot.lane.b32.xlu0 %v931_v23, %s4122_s7  ;;  %s4169_s7 = smov 96  }
 0x12c   : > { %v948_v24 = vpop.permute.xlu1 %947  ;;  %v944_v25 = vpop.permute.xlu0 %943 }
 0x12d   : > { %2808 = vmatpush.xpose.msk.msrb.mxu1 %vm949_vm3, %v948_v24  ;;  %983 = vrot.lane.b32.xlu2 %v944_v25, %s4116_s2 }
 0x134   : > { %v946_v26 = vpop.permute.xlu1 %945  ;;  %v942_v27 = vpop.permute.xlu0 %941 }
 0x135   : > { %v2957_v28 = vpack.i.bf16 %v942_v27, %v944_v25  ;;  %2809 = vmatpush.xpose.msk.msrb.mxu1 %vm949_vm3, %v946_v26  ;;  %981 = vrot.lane.b32.xlu2 %v942_v27, %s4116_s2  ;;  %s4172_s2 = sld [smem:[#allocation9_spill]] }
 0x138   : > { %2810 = vmatmul.msk.f32.vlgmr.msrb.gmra.mxu1 %vm949_vm3, %v931_v23 }
 0x13c   : > { %v936_v31 = vpop.permute.xlu0 %935  ;;  %v938_v32 = vpop.permute.xlu1 %937 }
 0x140   : > { %2811 = vmatmul.msk.f32.gmra.mxu1 %vm949_vm3, %v932_v22 }
 0x187   : > { %v984_v29 = vpop.permute.xlu2 %983 }
 0x188   : > { %2812 = vmatpush.xpose.msk.msra.mxu2 %vm949_vm3, %v984_v29 }
 0x18f   : > { %v982_v30 = vpop.permute.xlu2 %981 }
 0x190   : > { %2813 = vmatpush.xpose.msk.msra.mxu2 %vm949_vm3, %v982_v30 }
 0x193   : > { %2814 = vmatmul.msk.f32.vlgmr.msra.gmra.mxu2 %vm949_vm3, %v936_v31 }
 0x19b   : > { %2815 = vmatmul.msk.f32.gmra.mxu2 %vm949_vm3, %v938_v32 }
 0x1b5   : > { %v975_v35 = vpop.f32.mrf.mxu1 }
 0x1b6   : > { %v1020_v36 = vsel %vm3318_vm5, %v975_v35, -10000.0  ;;  %v1151_v35 = vld [vmem:[%s4159_s9 + $0x18] sm:$0xff] }
 0x1b7   : > { %v1024_v37 = vsel %vm949_vm3, %v1020_v36, -inf  ;;  %1174 = vmatpush.msra.mxu0 %v1151_v35 }
 0x1b8   : > { %1025 = vmax.xlane.f32.xlu2 %v1024_v37  ;;  %v1149_v37 = vld [vmem:[%s4159_s9 + $0x8] sm:$0xff] }
 0x1bd   : > { %v978_v39 = vpop.f32.mrf.mxu1 }
 0x1be   : > { %v1021_v40 = vsel %vm3327_vm6, %v978_v39, -10000.0  ;;  %v1148_v39 = vld [vmem:[%s4159_s9] sm:$0xff] }
 0x1bf   : > { %v1027_v41 = vsel %vm949_vm3, %v1021_v40, -inf }
 0x1c0   : > { %1028 = vmax.xlane.f32.xlu0 %v1027_v41 }
 0x1d4   : > { %2953 = vrot.lane.b32.xlu0 %v2952_v21, %s4124_s12 }
 0x216   : > { %v1010_v42 = vpop.f32.mrf.mxu2 }
 0x217   : > { %v1022_v43 = vsel %vm3318_vm5, %v1010_v42, -10000.0 }
 0x218   : > { %v1030_v44 = vsel %vm949_vm3, %v1022_v43, -inf }
 0x219   : > { %1031 = vmax.xlane.f32.xlu1 %v1030_v44  ;;  %v2973_v44 = vld [vmem:[%s4160_s30] ss:$0 sm:$0xff] }
 0x21e   : > { %v1013_v45 = vpop.f32.mrf.mxu2 }
 0x21f   : > { %v1023_v46 = vsel %vm3327_vm6, %v1013_v45, -10000.0 }
 0x220   : > { %v1033_v47 = vsel %vm949_vm3, %v1023_v46, -inf }
 0x221   : > { %1034 = vmax.xlane.f32.xlu2 %v1033_v47 }
 0x22b   : > { %v1026_v48 = vpop.xlane.xlu2 %1025 }
 0x22c   : > { %v1036_v49 = vsub.f32 %v1020_v36, %v1026_v48  ;;  %v1150_v36 = vld [vmem:[%s4159_s9 + $0x10] sm:$0xff] }
 0x22d   : > { %1175 = vmatpush.msra.mxu0 %v1150_v36 }
 0x22e   : > { %v1040_v50 = vmul.f32 1.442695, %v1036_v49 }
 0x22f   : > { %1176 = vmatpush.msra.mxu0 %v1149_v37 }
 0x230   : > { %2998 = vpow2.f32 %v1040_v50 }
 0x231   : > { %1177 = vmatpush.msra.mxu0 %v1148_v39 }
 0x233   : > { %v1029_v51 = vpop.xlane.xlu0 %1028 }
 0x234   : > { %v1037_v52 = vsub.f32 %v1021_v40, %v1029_v51 }
 0x236   : > { %v2999_v53 = vpop.eup %2998  ;;  %v1042_v54 = vmul.f32 1.442695, %v1037_v52 }
 0x237   : > { %v1048_v55 = vsel %vm949_vm3, %v2999_v53, 0.0 }
 0x238   : > { %3000 = vpow2.f32 %v1042_v54  ;;  %1049 = vadd.xlane.f32.xlu2 %v1048_v55 }
 0x23e   : > { %v3001_v56 = vpop.eup %3000 }
 0x23f   : > { %v1051_v57 = vsel %vm949_vm3, %v3001_v56, 0.0 }
 0x240   : > { %1052 = vadd.xlane.f32.xlu1 %v1051_v57 }
 0x246   : > { %v2954_v58 = vpop.permute.xlu0 %2953 }
 0x247   : > { %v2955_v59 = vunpack.i.l.bf16 %v2954_v58  ;;  %v2956_v60 = vunpack.i.h.bf16 %v2954_v58 }
 0x249   : > { %1094 = vmatpush.msra.mxu3 %v2955_v59 }
 0x24b   : > { %1095 = vmatpush.msra.mxu3 %v2956_v60 }
 0x259   : > { %2958 = vrot.lane.b32.xlu1 %v2957_v28, %s4124_s12  ;;  %s4165_s12 = sld [smem:[#allocation18_spill]] }
 0x28c   : > { %v1032_v61 = vpop.xlane.xlu1 %1031 }
 0x28d   : > { %v1038_v62 = vsub.f32 %v1022_v43, %v1032_v61 }
 0x28f   : > { %v1044_v63 = vmul.f32 1.442695, %v1038_v62 }
 0x291   : > { %3002 = vpow2.f32 %v1044_v63 }
 0x294   : > { %v1035_v0 = vpop.xlane.xlu2 %1034 }
 0x295   : > { %v1039_v1 = vsub.f32 %v1023_v46, %v1035_v0 }
 0x297   : > { %v3003_v2 = vpop.eup %3002  ;;  %v1046_v3 = vmul.f32 1.442695, %v1039_v1 }
 0x298   : > { %v1054_v4 = vsel %vm949_vm3, %v3003_v2, 0.0 }
 0x299   : > { %3004 = vpow2.f32 %v1046_v3  ;;  %1055 = vadd.xlane.f32.xlu2 %v1054_v4 }
 0x29f   : > { %v3005_v5 = vpop.eup %3004 }
 0x2a0   : > { %v1057_v8 = vsel %vm949_vm3, %v3005_v5, 0.0 }
 0x2a1   : > { %1058 = vadd.xlane.f32.xlu2 %v1057_v8 }
 0x2ab   : > { %v1050_v9 = vpop.xlane.xlu2 %1049 }
 0x2ac   : > { %3006 = vrcp.f32 %v1050_v9 }
 0x2b2   : > { %v3007_v13 = vpop.eup %3006 }
 0x2b3   : > { %v1053_v16 = vpop.xlane.xlu1 %1052  ;;  %v1064_v17 = vmul.f32 %v3007_v13, %v2999_v53  ;;  %v3084_v53 = vmov 32.0  }
 0x2b4   : > { %3008 = vrcp.f32 %v1053_v16 }
 0x2b5   : > { %2816 = vmatmul.msk.f32.vlgmr.msra.gmra.mxu3 %vm949_vm3, %v1064_v17 }
 0x2ba   : > { %v3009_v18 = vpop.eup %3008 }
 0x2bb   : > { %v1065_v19 = vmul.f32 %v3009_v18, %v3001_v56 }
 0x2bd   : > { %2817 = vmatmul.msk.f32.gmra.mxu3 %vm949_vm3, %v1065_v19 }
 0x2cb   : > { %v2959_v20 = vpop.permute.xlu1 %2958 }
 0x2cc   : > { %v2960_v21 = vunpack.i.l.bf16 %v2959_v20  ;;  %v2961_v22 = vunpack.i.h.bf16 %v2959_v20 }
 0x2ce   : > { %1129 = vmatpush.msrb.mxu3 %v2960_v21 }
 0x2d0   : > { %1130 = vmatpush.msrb.mxu3 %v2961_v22 }
 0x30c   : > { %v1056_v23 = vpop.xlane.xlu2 %1055 }
 0x30d   : > { %3010 = vrcp.f32 %v1056_v23 }
 0x313   : > { %v3011_v24 = vpop.eup %3010 }
 0x314   : > { %v1059_v25 = vpop.xlane.xlu2 %1058  ;;  %v1066_v26 = vmul.f32 %v3011_v24, %v3003_v2 }
 0x315   : > { %3012 = vrcp.f32 %v1059_v25  ;;  %v2974_v25 = vld [vmem:[%s4161_s6] ss:$0 sm:$0xff] }
 0x316   : > { %2818 = vmatmul.msk.f32.vlgmr.msrb.gmra.mxu3 %vm949_vm3, %v1066_v26  ;;  %3014 = vrcp.f32 %v3084_v53  ;;  %v1258_v53 = vld [vmem:[%s4163_s26 + $0x30] sm:$0xff] }
 0x31b   : > { %v3013_v27 = vpop.eup %3012 }
 0x31c   : > { %v1067_v28 = vmul.f32 %v3013_v27, %v3005_v5  ;;  %v3015_v54 = vpop.eup %3014 }
 0x31d   : > { %v1196_v55 = vmul.f32 32.0, %v3015_v54  ;;  %vm1200_vm7 = vweird.f32 %v3015_v54 }
 0x31e   : > { %2819 = vmatmul.msk.f32.gmra.mxu3 %vm949_vm3, %v1067_v28 }
 0x31f   : > { %v1197_v56 = vsub.f32 1.0, %v1196_v55  ;;  %v1256_v55 = vld [vmem:[%s4163_s26 + $0x20] sm:$0xff] }
 0x321   : > { %v1198_v57 = vmul.f32 %v3015_v54, %v1197_v56  ;;  %v1255_v56 = vld [vmem:[%s4163_s26 + $0x18] sm:$0xff] }
 0x323   : > { %v1199_v58 = vadd.f32 %v3015_v54, %v1198_v57  ;;  %v1254_v57 = vld [vmem:[%s4163_s26 + $0x10] sm:$0xff] }
 0x325   : > { %v3375_v59 = vsel %vm1200_vm7, %v3015_v54, %v1199_v58  ;;  %v1257_v54 = vld [vmem:[%s4163_s26 + $0x28] sm:$0xff]  ;;  %vm1347_vm7 = vcmask 785408  }
 0x326   : > { %v1253_v58 = vld [vmem:[%s4163_s26 + $0x8] sm:$0xff] }
 0x338   : > { %v1097_v29 = vpop.f32.mrf.mxu3 }
 0x340   : > { %v1100_v30 = vpop.f32.mrf.mxu3 }
 0x399   : > { %v1132_v31 = vpop.f32.mrf.mxu3 }
 0x39a   : > { %1140 = vrot.lane.b32.xlu0 %v1132_v31, %s4120_s1 }
 0x3a1   : > { %v1135_v32 = vpop.f32.mrf.mxu3 }
 0x3a2   : > { %1142 = vrot.lane.b32.xlu2 %v1135_v32, %s4120_s1  ;;  %s4174_s1 = sld [smem:[#allocation21_spill]] }
 0x3fc   : > { %v1143_v42 = vpop.permute.xlu2 %1142 }
 0x3fd   : > { %v1147_v43 = vsel %vm949_vm3, %v1100_v30, %v1143_v42 }
 0x40c   : > { %v1141_v40 = vpop.permute.xlu0 %1140 }
 0x40d   : > { %v1146_v41 = vsel %vm949_vm3, %v1097_v29, %v1141_v40  ;;  %v2975_v29 = vld [vmem:[%s4162_s4] ss:$0 sm:$0xff] }
 0x40e   : > { %2820 = vmatmul.msk.f32.vlgmr.msra.gmra.mxu0 %vm901_vm1, %v1146_v41  ;;  %v875_v41 = vadd.s32 4294967295, %v3260_v6 }
 0x410   : > { %vm877_vm14 = vcmp.eq.s32.totalorder %v3313_v33, %v875_v41  ;;  %v1385_v41 = vld [vmem:[%s4165_s12 + $0x20] sm:$0xff] }
 0x416   : > { %2821 = vmatmul.msk.f32.gmra.mxu0 %vm901_vm1, %v1147_v43  ;;  %v883_v43 = vadd.s32 1, %v3260_v6  ;;  %v876_v6 = vadd.s32 4294967295, %v3266_v7 }
 0x418   : > { %vm885_vm15 = vcmp.eq.s32.totalorder %v3313_v33, %v883_v43  ;;  %vm878_vm0 = vcmp.eq.s32.totalorder %v3313_v33, %v876_v6  ;;  %v1383_v43 = vld [vmem:[%s4165_s12 + $0x10] sm:$0xff]  ;;  %v1381_v6 = vld [vmem:[%s4165_s12] sm:$0xff] }
 0x48b   : > { %v1179_v45 = vpop.f32.mrf.mxu0 }
 0x48c   : > { %v1180_v46 = vadd.f32 %v2973_v44, %v1179_v45 }
 0x48e   : > { %v1185_v47 = vadd.f32 %v1180_v46, %v3279_v12  ;;  %v3404_v46 = vsel %vm877_vm14, 1.0, %v3079_v10 }
 0x490   : > { %v1189_v48 = vsel %vm901_vm1, %v1185_v47, 0.0 }
 0x491   : > { %1190 = vadd.xlane.f32.xlu1 %v1189_v48  ;;  %v884_v48 = vadd.s32 1, %v3266_v7  ;;  %v1263_v7 = vld [vmem:[%s4163_s26 + $0x58] sm:$0xff] }
 0x492   : > { %1358 = vmatpush.msra.mxu3 %v1263_v7  ;;  %v1400_v7 = vld [vmem:[%s4165_s12 + $0x98] sm:$0xff] }
 0x493   : > { %v1182_v49 = vpop.f32.mrf.mxu0  ;;  %vm886_vm2 = vcmp.eq.s32.totalorder %v3313_v33, %v884_v48  ;;  %v1262_v33 = vld [vmem:[%s4163_s26 + $0x50] sm:$0xff]  ;;  %v1401_v48 = vld [vmem:[%s4165_s12 + $0xa0] sm:$0xff] }
 0x494   : > { %v1183_v50 = vadd.f32 %v2973_v44, %v1182_v49  ;;  %v3418_v49 = vsel %vm878_vm0, 1.0, %v3079_v10  ;;  %1359 = vmatpush.msra.mxu3 %v1262_v33  ;;  %v1399_v33 = vld [vmem:[%s4165_s12 + $0x90] sm:$0xff] }
 0x496   : > { %v1186_v51 = vadd.f32 %v1183_v50, %v3290_v15  ;;  %v3421_v50 = vsel %vm886_vm2, 1.0, %v3079_v10 }
 0x498   : > { %v1192_v52 = vsel %vm901_vm1, %v1186_v51, 0.0 }
 0x499   : > { %1193 = vadd.xlane.f32.xlu0 %v1192_v52  ;;  %v1259_v52 = vld [vmem:[%s4163_s26 + $0x38] sm:$0xff] }
 0x504   : > { %v1191_v12 = vpop.xlane.xlu1 %1190 }
 0x505   : > { %v1202_v60 = vmul.f32 %v3375_v59, %v1191_v12 }
 0x507   : > { %v1204_v61 = vsub.f32 %v1185_v47, %v1202_v60  ;;  %v3407_v47 = vsel %vm885_vm15, 1.0, %v3079_v10  ;;  %v1261_v10 = vld [vmem:[%s4163_s26 + $0x48] sm:$0xff] }
 0x508   : > { %1360 = vmatpush.msra.mxu3 %v1261_v10  ;;  %v1398_v10 = vld [vmem:[%s4165_s12 + $0x88] sm:$0xff] }
 0x509   : > { %v1206_v62 = vmul.f32 %v1204_v61, %v1204_v61 }
 0x50b   : > { %v1208_v15 = vsel %vm901_vm1, %v1206_v62, 0.0 }
 0x50c   : > { %1209 = vadd.xlane.f32.xlu0 %v1208_v15  ;;  %v1194_v63 = vpop.xlane.xlu0 %1193 }
 0x50d   : > { %v1203_v0 = vmul.f32 %v3375_v59, %v1194_v63 }
 0x50f   : > { %v1205_v1 = vsub.f32 %v1186_v51, %v1203_v0  ;;  %v1260_v51 = vld [vmem:[%s4163_s26 + $0x40] sm:$0xff] }
 0x510   : > { %1361 = vmatpush.msra.mxu3 %v1260_v51  ;;  %v1397_v51 = vld [vmem:[%s4165_s12 + $0x80] sm:$0xff] }
 0x511   : > { %v1207_v2 = vmul.f32 %v1205_v1, %v1205_v1 }
 0x512   : > { %1362 = vmatpush.msra.mxu3 %v1259_v52 }
 0x513   : > { %v1211_v3 = vsel %vm901_vm1, %v1207_v2, 0.0 }
 0x514   : > { %1212 = vadd.xlane.f32.xlu2 %v1211_v3  ;;  %1363 = vmatpush.msra.mxu3 %v1258_v53 }
 0x516   : > { %1364 = vmatpush.msra.mxu3 %v1257_v54 }
 0x518   : > { %1365 = vmatpush.msra.mxu3 %v1256_v55 }
 0x51a   : > { %1366 = vmatpush.msra.mxu3 %v1255_v56 }
 0x51c   : > { %1367 = vmatpush.msra.mxu3 %v1254_v57 }
 0x51e   : > { %1368 = vmatpush.msra.mxu3 %v1253_v58 }
 0x57f   : > { %v1210_v4 = vpop.xlane.xlu0 %1209 }
 0x580   : > { %v1214_v5 = vmul.f32 %v1210_v4, %v3375_v59 }
 0x582   : > { %v1216_v8 = vadd.f32 0.0001, %v1214_v5 }
 0x584   : > { %3016 = vrsqrt.f32 %v1216_v8  ;;  %vm1224_vm9 = vweird.f32 %v1216_v8 }
 0x587   : > { %v1213_v9 = vpop.xlane.xlu2 %1212 }
 0x588   : > { %v1215_v13 = vmul.f32 %v1213_v9, %v3375_v59  ;;  %v1396_v9 = vld [vmem:[%s4165_s12 + $0x78] sm:$0xff] }
 0x58a   : > { %v3017_v16 = vpop.eup %3016  ;;  %v1217_v17 = vadd.f32 0.0001, %v1215_v13  ;;  %v1395_v13 = vld [vmem:[%s4165_s12 + $0x70] sm:$0xff] }
 0x58b   : > { %v1219_v18 = vmul.f32 %v3017_v16, %v1216_v8  ;;  %vm1225_vm8 = vweird.f32 %v3017_v16 }
 0x58c   : > { %3018 = vrsqrt.f32 %v1217_v17  ;;  %vm1226_vm10 = vmor %vm1224_vm9, %vm1225_vm8  ;;  %vm1234_vm12 = vweird.f32 %v1217_v17 }
 0x58d   : > { %v1220_v19 = vmul.f32 %v3017_v16, %v1219_v18  ;;  %v1393_v18 = vld [vmem:[%s4165_s12 + $0x60] sm:$0xff] }
 0x58f   : > { %v1221_v20 = vmul.f32 0.5, %v1220_v19 }
 0x591   : > { %v1222_v21 = vsub.f32 1.5, %v1221_v20 }
 0x592   : > { %v3019_v22 = vpop.eup %3018 }
 0x593   : > { %v1223_v23 = vmul.f32 %v3017_v16, %v1222_v21  ;;  %v1229_v24 = vmul.f32 %v3019_v22, %v1217_v17  ;;  %vm1235_vm11 = vweird.f32 %v3019_v22  ;;  %v1394_v17 = vld [vmem:[%s4165_s12 + $0x68] sm:$0xff] }
 0x594   : > { %vm1236_vm13 = vmor %vm1234_vm12, %vm1235_vm11 }
 0x595   : > { %v1227_v26 = vsel %vm1226_vm10, %v3017_v16, %v1223_v23  ;;  %v1230_v27 = vmul.f32 %v3019_v22, %v1229_v24  ;;  %v2976_v16 = vld [vmem:[%s4166_s22] ss:$0 sm:$0xff] }
 0x596   : > { %v1238_v28 = vmul.f32 %v1227_v26, %v1204_v61  ;;  %v1252_v61 = vld [vmem:[%s4163_s26] sm:$0xff] }
 0x597   : > { %v1231_v30 = vmul.f32 0.5, %v1230_v27  ;;  %1369 = vmatpush.msra.mxu3 %v1252_v61  ;;  %v1392_v27 = vld [vmem:[%s4165_s12 + $0x58] sm:$0xff] }
 0x598   : > { %v1243_v31 = vmul.f32 %v2974_v25, %v1238_v28  ;;  %v1391_v28 = vld [vmem:[%s4165_s12 + $0x50] sm:$0xff] }
 0x599   : > { %v1232_v32 = vsub.f32 1.5, %v1231_v30  ;;  %v1389_v30 = vld [vmem:[%s4165_s12 + $0x40] sm:$0xff] }
 0x59a   : > { %v3389_v35 = vadd.f32 %v2975_v29, %v1243_v31  ;;  %v1388_v31 = vld [vmem:[%s4165_s12 + $0x38] sm:$0xff] }
 0x59b   : > { %v1233_v36 = vmul.f32 %v3019_v22, %v1232_v32  ;;  %v1387_v32 = vld [vmem:[%s4165_s12 + $0x30] sm:$0xff] }
 0x59c   : > { %v1250_v37 = vmul.f32 %v3276_v11, %v3389_v35 }
 0x59d   : > { %v1237_v39 = vsel %vm1236_vm13, %v3019_v22, %v1233_v36  ;;  %v1404_v36 = vld [vmem:[%s4165_s12 + $0xb8] sm:$0xff] }
 0x59e   : > { %v1239_v40 = vmul.f32 %v1237_v39, %v1205_v1  ;;  %1325 = vrot.lane.b32.xlu1 %v1250_v37, %s4118_s8  ;;  %v1403_v39 = vld [vmem:[%s4165_s12 + $0xb0] sm:$0xff] }
 0x5a0   : > { %v1244_v42 = vmul.f32 %v2974_v25, %v1239_v40  ;;  %v1402_v40 = vld [vmem:[%s4165_s12 + $0xa8] sm:$0xff] }
 0x5a2   : > { %v3396_v44 = vadd.f32 %v2975_v29, %v1244_v42  ;;  %v1390_v29 = vld [vmem:[%s4165_s12 + $0x48] sm:$0xff]  ;;  %v1384_v42 = vld [vmem:[%s4165_s12 + $0x18] sm:$0xff] }
 0x5a4   : > { %v1251_v45 = vmul.f32 %v3287_v14, %v3396_v44 }
 0x5a6   : > { %1327 = vrot.lane.b32.xlu2 %v1251_v45, %s4118_s8  ;;  %1285 = vmatpush.msra.mxu1 %v1251_v45  ;;  %s4164_s8 = smov 64  }
 0x5a7   : > { %1314 = vmatpush.msrb.mxu2 %v1251_v45  ;;  %v1382_v45 = vld [vmem:[%s4165_s12 + $0x8] sm:$0xff] }
 0x5a8   : > { %1286 = vmatpush.msra.mxu1 %v1250_v37 }
 0x5a9   : > { %1315 = vmatpush.msrb.mxu2 %v1250_v37  ;;  %2822 = vmatmul.msk.f32.vlgmr.msra.gmra.mxu1 %vm949_vm3, %v3404_v46  ;;  %v1386_v37 = vld [vmem:[%s4165_s12 + $0x28] sm:$0xff] }
 0x5aa   : > { %2824 = vmatmul.msk.f32.vlgmr.msrb.gmra.mxu2 %vm949_vm3, %v3407_v47 }
 0x5ab   : > { %1471 = vmatpush.msra.mxu2 %v1396_v9 }
 0x5ad   : > { %1472 = vmatpush.msra.mxu2 %v1395_v13 }
 0x5af   : > { %1473 = vmatpush.msra.mxu2 %v1394_v17 }
 0x5b1   : > { %2823 = vmatmul.msk.f32.gmra.mxu1 %vm949_vm3, %v3418_v49  ;;  %1474 = vmatpush.msra.mxu2 %v1393_v18 }
 0x5b2   : > { %2825 = vmatmul.msk.f32.gmra.mxu2 %vm949_vm3, %v3421_v50 }
 0x5b3   : > { %1475 = vmatpush.msra.mxu2 %v1392_v27  ;;  %v2835_v27 = vld [vmem:[%s4152_s11 + $0x28] sm:$0xff] }
 0x5b5   : > { %1476 = vmatpush.msra.mxu2 %v1391_v28  ;;  %v2834_v28 = vld [vmem:[%s4152_s11 + $0x20] sm:$0xff] }
 0x5b7   : > { %1477 = vmatpush.msra.mxu2 %v1390_v29 }
 0x5b9   : > { %1478 = vmatpush.msra.mxu2 %v1389_v30 }
 0x5bb   : > { %1479 = vmatpush.msra.mxu2 %v1388_v31 }
 0x5bd   : > { %1480 = vmatpush.msra.mxu2 %v1387_v32 }
 0x5bf   : > { %1481 = vmatpush.msra.mxu2 %v1386_v37 }
 0x5c1   : > { %1482 = vmatpush.msra.mxu2 %v1385_v41 }
 0x5c3   : > { %1483 = vmatpush.msra.mxu2 %v1384_v42 }
 0x5c5   : > { %1484 = vmatpush.msra.mxu2 %v1383_v43 }
 0x5c7   : > { %1485 = vmatpush.msra.mxu2 %v1382_v45 }
 0x5c9   : > { %1486 = vmatpush.msra.mxu2 %v1381_v6 }
 0x600   : > { %v1328_v3 = vpop.permute.xlu2 %1327 }
 0x610   : > { %v1326_v15 = vpop.permute.xlu1 %1325 }
 0x626   : > { %v1288_v62 = vpop.f32.mrf.mxu1 }
 0x627   : > { %v1339_v63 = vsel %vm901_vm1, %v1288_v62, %v1326_v15 }
 0x62d   : > { %v1317_v12 = vpop.f32.mrf.mxu2 }
 0x62e   : > { %1333 = vrot.lane.b32.xlu0 %v1317_v12, %s4164_s8  ;;  %v1291_v2 = vpop.f32.mrf.mxu1 }
 0x62f   : > { %v1340_v4 = vsel %vm901_vm1, %v1291_v2, %v1328_v3 }
 0x635   : > { %v1320_v60 = vpop.f32.mrf.mxu2 }
 0x636   : > { %1335 = vrot.lane.b32.xlu0 %v1320_v60, %s4164_s8  ;;  %v2977_v60 = vld [vmem:[%s4167_s24] ss:$0 sm:$0xff] }
 0x6a0   : > { %v1334_v0 = vpop.permute.xlu0 %1333 }
 0x6a1   : > { %v1342_v1 = vsel %vm1341_vm4, %v1339_v63, %v1334_v0 }
 0x6a2   : > { %2826 = vmatmul.msk.f32.vlgmr.msra.gmra.mxu3 %vm1347_vm7, %v1342_v1 }
 0x6a8   : > { %v1336_v5 = vpop.permute.xlu0 %1335 }
 0x6a9   : > { %v1343_v8 = vsel %vm1341_vm4, %v1340_v4, %v1336_v5 }
 0x6aa   : > { %2827 = vmatmul.msk.f32.gmra.mxu3 %vm1347_vm7, %v1343_v8 }
 0x725   : > { %v1371_v19 = vpop.f32.mrf.mxu3 }
 0x726   : > { %v1372_v20 = vadd.f32 %v2976_v16, %v1371_v19 }
 0x728   : > { %v1377_v21 = vmax.f32 %v1372_v20, 0.0 }
 0x72a   : > { %v1379_v22 = vmul.f32 %v3276_v11, %v1377_v21 }
 0x72c   : > { %1454 = vrot.lane.b32.xlu1 %v1379_v22, %s4164_s8 }
 0x72d   : > { %v1374_v23 = vpop.f32.mrf.mxu3 }
 0x72e   : > { %v1375_v24 = vadd.f32 %v2976_v16, %v1374_v23 }
 0x730   : > { %v1378_v25 = vmax.f32 %v1375_v24, 0.0 }
 0x732   : > { %v1380_v26 = vmul.f32 %v3287_v14, %v1378_v25 }
 0x734   : > { %1456 = vrot.lane.b32.xlu0 %v1380_v26, %s4164_s8  ;;  %1420 = vmatpush.msrb.mxu0 %v1380_v26 }
 0x735   : > { %1443 = vmatpush.msrb.mxu1 %v1380_v26  ;;  %2933 = vmatpush.msrb.mxu3 %v1380_v26  ;;  %v2836_v26 = vld [vmem:[%s4152_s11 + $0x30] sm:$0xff] }
 0x736   : > { %1421 = vmatpush.msrb.mxu0 %v1379_v22 }
 0x737   : > { %1444 = vmatpush.msrb.mxu1 %v1379_v22  ;;  %2934 = vmatpush.msrb.mxu3 %v1379_v22 }
 0x738   : > { %2828 = vmatmul.msk.f32.vlgmr.msrb.gmra.mxu0 %vm949_vm3, %v3404_v46  ;;  %2830 = vmatmul.msk.f32.vlgmr.msrb.gmra.mxu1 %vm949_vm3, %v3407_v47 }
 0x739   : > { %2831 = vmatmul.msk.f32.vlgmr.msrb.gmra.mxu3 %vm949_vm3, %v3421_v50  ;;  %1502 = vmatpush.msra.mxu0 %v1404_v36 }
 0x73b   : > { %1503 = vmatpush.msra.mxu0 %v1403_v39 }
 0x73d   : > { %1504 = vmatpush.msra.mxu0 %v1402_v40 }
 0x73f   : > { %1505 = vmatpush.msra.mxu0 %v1401_v48 }
 0x740   : > { %2829 = vmatmul.msk.f32.gmra.mxu0 %vm949_vm3, %v3418_v49 }
 0x741   : > { %1506 = vmatpush.msra.mxu0 %v1400_v7  ;;  %v2978_v7 = vld [vmem:[%s4090_s13] ss:$0 sm:$0xff] }
 0x743   : > { %1507 = vmatpush.msra.mxu0 %v1399_v33 }
 0x745   : > { %1508 = vmatpush.msra.mxu0 %v1398_v10 }
 0x747   : > { %1509 = vmatpush.msra.mxu0 %v1397_v51  ;;  %v2979_v51 = vld [vmem:[%s4091_s14] ss:$0 sm:$0xff] }
 0x79e   : > { %v1455_v52 = vpop.permute.xlu1 %1454 }
 0x7a6   : > { %v1457_v57 = vpop.permute.xlu0 %1456 }
 0x7b5   : > { %v1423_v53 = vpop.f32.mrf.mxu0  ;;  %v1446_v54 = vpop.f32.mrf.mxu1 }
 0x7b6   : > { %v1460_v55 = vsel %vm1341_vm4, %v1423_v53, %v1455_v52  ;;  %2832 = vmatmul.msk.f32.vlgmr.msra.gmra.mxu0 %vm1341_vm4, %v1446_v54 }
 0x7b7   : > { %1487 = vmatmul.f32.vlgmr.msra.gmra.mxu2 %v1460_v55 }
 0x7bc   : > { %v1449_v56 = vpop.f32.mrf.mxu3 }
 0x7bd   : > { %v1426_v58 = vpop.f32.mrf.mxu0 }
 0x7be   : > { %v1461_v12 = vsel %vm1341_vm4, %v1426_v58, %v1457_v57  ;;  %2833 = vmatmul.msk.f32.gmra.mxu0 %vm1341_vm4, %v1449_v56 }
 0x7bf   : > { %1490 = vmatmul.f32.gmra.mxu2 %v1461_v12 }
 0x833   : > { %v1511_v61 = vpop.f32.mrf.mxu0 }
 0x83a   : > { %v1488_v62 = vpop.f32.mrf.mxu2 }
 0x83b   : > { %v1489_v15 = vadd.f32 %v2977_v60, %v1488_v62  ;;  %v1514_v3 = vpop.f32.mrf.mxu0 }
 0x83d   : > { %v1512_v63 = vadd.f32 %v1511_v61, %v1489_v15 }
 0x83f   : > { %v1517_v0 = vmul.f32 %v3276_v11, %v1512_v63  ;;  %v2980_v63 = vld [vmem:[%s4154_s29 + $0x1] ss:$0 sm:$0xff] }
 0x841   : > { %v1519_v1 = vadd.f32 %v1517_v0, %v3389_v35 }
 0x842   : > { %v1491_v2 = vpop.f32.mrf.mxu2 }
 0x843   : > { %v1492_v4 = vadd.f32 %v2977_v60, %v1491_v2  ;;  %v1523_v5 = vsel %vm901_vm1, %v1519_v1, 0.0 }
 0x844   : > { %1524 = vadd.xlane.f32.xlu1 %v1523_v5 }
 0x845   : > { %v1515_v8 = vadd.f32 %v1514_v3, %v1492_v4 }
 0x847   : > { %v1518_v9 = vmul.f32 %v3287_v14, %v1515_v8 }
 0x849   : > { %v1520_v13 = vadd.f32 %v1518_v9, %v3396_v44  ;;  %v2837_v44 = vld [vmem:[%s4152_s11 + $0x38] sm:$0xff] }
 0x84a   : > { %1607 = vmatpush.msra.mxu1 %v2837_v44 }
 0x84b   : > { %v1526_v16 = vsel %vm901_vm1, %v1520_v13, 0.0 }
 0x84c   : > { %1527 = vadd.xlane.f32.xlu2 %v1526_v16  ;;  %1608 = vmatpush.msra.mxu1 %v2836_v26 }
 0x84e   : > { %1609 = vmatpush.msra.mxu1 %v2835_v27 }
 0x850   : > { %1610 = vmatpush.msra.mxu1 %v2834_v28 }
 0x8b7   : > { %v1525_v17 = vpop.xlane.xlu1 %1524 }
 0x8b8   : > { %v1529_v18 = vmul.f32 %v1525_v17, %v3375_v59 }
 0x8ba   : > { %v1531_v19 = vsub.f32 %v1519_v1, %v1529_v18 }
 0x8bc   : > { %v1533_v20 = vmul.f32 %v1531_v19, %v1531_v19 }
 0x8be   : > { %v1535_v35 = vsel %vm901_vm1, %v1533_v20, 0.0 }
 0x8bf   : > { %1536 = vadd.xlane.f32.xlu0 %v1535_v35  ;;  %v1528_v21 = vpop.xlane.xlu2 %1527 }
 0x8c0   : > { %v1530_v22 = vmul.f32 %v1528_v21, %v3375_v59 }
 0x8c2   : > { %v1532_v23 = vsub.f32 %v1520_v13, %v1530_v22 }
 0x8c4   : > { %v1534_v24 = vmul.f32 %v1532_v23, %v1532_v23 }
 0x8c6   : > { %v1538_v25 = vsel %vm901_vm1, %v1534_v24, 0.0 }
 0x8c7   : > { %1539 = vadd.xlane.f32.xlu1 %v1538_v25 }
 0x932   : > { %v1537_v29 = vpop.xlane.xlu0 %1536 }
 0x933   : > { %v1541_v30 = vmul.f32 %v1537_v29, %v3375_v59 }
 0x935   : > { %v1543_v31 = vadd.f32 0.0001, %v1541_v30 }
 0x937   : > { %3020 = vrsqrt.f32 %v1543_v31  ;;  %vm1551_vm9 = vweird.f32 %v1543_v31 }
 0x93a   : > { %v1540_v32 = vpop.xlane.xlu1 %1539 }
 0x93b   : > { %v1542_v36 = vmul.f32 %v1540_v32, %v3375_v59 }
 0x93d   : > { %v3021_v37 = vpop.eup %3020  ;;  %v1544_v39 = vadd.f32 0.0001, %v1542_v36 }
 0x93e   : > { %v1546_v40 = vmul.f32 %v3021_v37, %v1543_v31  ;;  %vm1552_vm8 = vweird.f32 %v3021_v37 }
 0x93f   : > { %3022 = vrsqrt.f32 %v1544_v39  ;;  %vm1553_vm10 = vmor %vm1551_vm9, %vm1552_vm8  ;;  %vm1561_vm12 = vweird.f32 %v1544_v39 }
 0x940   : > { %v1547_v41 = vmul.f32 %v3021_v37, %v1546_v40 }
 0x942   : > { %v1548_v42 = vmul.f32 0.5, %v1547_v41 }
 0x944   : > { %v1549_v43 = vsub.f32 1.5, %v1548_v42 }
 0x945   : > { %v3023_v45 = vpop.eup %3022 }
 0x946   : > { %v1550_v6 = vmul.f32 %v3021_v37, %v1549_v43  ;;  %v1556_v48 = vmul.f32 %v3023_v45, %v1544_v39  ;;  %vm1562_vm11 = vweird.f32 %v3023_v45 }
 0x947   : > { %vm1563_vm13 = vmor %vm1561_vm12, %vm1562_vm11 }
 0x948   : > { %v1554_v33 = vsel %vm1553_vm10, %v3021_v37, %v1550_v6  ;;  %v1557_v10 = vmul.f32 %v3023_v45, %v1556_v48 }
 0x949   : > { %v1565_v52 = vmul.f32 %v1554_v33, %v1531_v19 }
 0x94a   : > { %v1558_v53 = vmul.f32 0.5, %v1557_v10 }
 0x94b   : > { %v1570_v54 = vmul.f32 %v2978_v7, %v1565_v52 }
 0x94c   : > { %v1559_v55 = vsub.f32 1.5, %v1558_v53 }
 0x94d   : > { %v1575_v56 = vadd.f32 %v2979_v51, %v1570_v54 }
 0x94e   : > { %v1560_v57 = vmul.f32 %v3023_v45, %v1559_v55 }
 0x94f   : > { %v3596_v58 = vmul.f32 %v3276_v11, %v1575_v56 }
 0x950   : > { %v1564_v12 = vsel %vm1563_vm13, %v3023_v45, %v1560_v57 }
 0x951   : > { %v1566_v60 = vmul.f32 %v1564_v12, %v1532_v23  ;;  %2839 = vmatmul.msk.f32.vlgmr.msra.gmra.mxu1 %vm901_vm1, %v3596_v58 }
 0x953   : > { %v1571_v61 = vmul.f32 %v2978_v7, %v1566_v60 }
 0x955   : > { %v1576_v62 = vadd.f32 %v2979_v51, %v1571_v61 }
 0x957   : > { %v3601_v15 = vmul.f32 %v3287_v14, %v1576_v62 }
 0x959   : > { %2840 = vmatmul.msk.f32.gmra.mxu1 %vm901_vm1, %v3601_v15 }
 0x9ce   : > { %v1612_v0 = vpop.f32.mrf.mxu1 }
 0x9cf   : > { %v3608_v1 = vadd.f32 %v2980_v63, %v1612_v0 }
 0x9d1   : > { %1628 = vrot.lane.b32.xlu0 %v3608_v1, %s4168_s3  ;;  %v1618_v4 = vmul.f32 0.25, %v3608_v1 }
 0x9d6   : > { %v1615_v2 = vpop.f32.mrf.mxu1 }
 0x9d7   : > { %v3612_v3 = vadd.f32 %v2980_v63, %v1615_v2 }
 0x9d9   : > { %1630 = vrot.lane.b32.xlu2 %v3612_v3, %s4168_s3  ;;  %v1619_v8 = vmul.f32 0.25, %v3612_v3  ;;  %v2967_v12 = vpack.i.bf16 %v3608_v1, %v3612_v3 }
 0x9e1   : > { %1622 = vrot.lane.b32.xlu2 %v1618_v4, %s4168_s3 }
 0x9e9   : > { %1632 = vrot.lane.b32.xlu2 %v3608_v1, %s4169_s7 }
 0xa33   : > { %v1631_v5 = vpop.permute.xlu2 %1630 }
 0xa34   : > { %1669 = vrot.lane.b32.xlu1 %v1631_v5, %s4169_s7 }
 0xa3b   : > { %v1623_v17 = vpop.permute.xlu2 %1622 }
 0xa3c   : > { %1624 = vrot.lane.b32.xlu1 %v1619_v8, %s4168_s3  ;;  %s846_s3 = scalar_lea.vmem %s4172_s2, %s4181_s0  ;;  %s851_s2 = scalar_lea.vmem %s4103_s27, %s3263_s5 }
 0xa43   : > { %v1629_v9 = vpop.permute.xlu0 %1628  ;;  %v1633_v20 = vpop.permute.xlu2 %1632 }
 0xa44   : > { %1667 = vrot.lane.b32.xlu0 %v1629_v9, %s4169_s7  ;;  %v2962_v31 = vpack.i.bf16 %v1629_v9, %v1631_v5 }
 0xa4c   : > { %1634 = vrot.lane.b32.xlu0 %v3612_v3, %s4169_s7 }
 0xaa6   : > { %v1670_v13 = vpop.permute.xlu1 %1669 }
 0xaa7   : > { %2845 = vmatpush.xpose.msk.msrb.mxu0 %vm949_vm3, %v1670_v13 }
 0xaae   : > { %v1625_v19 = vpop.permute.xlu1 %1624 }
 0xab6   : > { %v1668_v16 = vpop.permute.xlu0 %1667 }
 0xab7   : > { %2846 = vmatpush.xpose.msk.msrb.mxu0 %vm949_vm3, %v1668_v16 }
 0xaba   : > { %2847 = vmatmul.msk.f32.vlgmr.msrb.gmra.mxu0 %vm949_vm3, %v1623_v17 }
 0xabe   : > { %v1635_v18 = vpop.permute.xlu0 %1634 }
 0xabf   : > { %2841 = vmatpush.xpose.msk.msra.mxu3 %vm949_vm3, %v1635_v18 }
 0xac2   : > { %2848 = vmatmul.msk.f32.gmra.mxu0 %vm949_vm3, %v1625_v19 }
 0xac3   : > { %2842 = vmatpush.xpose.msk.msra.mxu3 %vm949_vm3, %v1633_v20  ;;  %v2856_v20 = vld [vmem:[%s4159_s9 + $0x38] sm:$0xff] }
 0xac6   : > { %2843 = vmatmul.msk.f32.vlgmr.msra.gmra.mxu3 %vm949_vm3, %v1618_v4 }
 0xac7   : > { %1858 = vmatpush.msrb.mxu3 %v2856_v20 }
 0xace   : > { %2844 = vmatmul.msk.f32.gmra.mxu3 %vm949_vm3, %v1619_v8 }
 0xb37   : > { %v1696_v35 = vpop.f32.mrf.mxu0 }
 0xb38   : > { %v1704_v21 = vsel %vm3318_vm5, %v1696_v35, -10000.0  ;;  %v2855_v35 = vld [vmem:[%s4159_s9 + $0x30] sm:$0xff] }
 0xb39   : > { %v1712_v22 = vsel %vm949_vm3, %v1704_v21, -inf  ;;  %1859 = vmatpush.msrb.mxu3 %v2855_v35 }
 0xb3a   : > { %1713 = vmax.xlane.f32.xlu1 %v1712_v22  ;;  %v2853_v22 = vld [vmem:[%s4159_s9 + $0x20] sm:$0xff] }
 0xb3f   : > { %v1699_v23 = vpop.f32.mrf.mxu0 }
 0xb40   : > { %v1705_v24 = vsel %vm3327_vm6, %v1699_v23, -10000.0 }
 0xb41   : > { %v1715_v25 = vsel %vm949_vm3, %v1705_v24, -inf }
 0xb42   : > { %1716 = vmax.xlane.f32.xlu0 %v1715_v25 }
 0xb49   : > { %v1661_v44 = vpop.f32.mrf.mxu3 }
 0xb4a   : > { %v1702_v26 = vsel %vm3318_vm5, %v1661_v44, -10000.0 }
 0xb4b   : > { %v1706_v27 = vsel %vm949_vm3, %v1702_v26, -inf }
 0xb4c   : > { %1707 = vmax.xlane.f32.xlu2 %v1706_v27 }
 0xb51   : > { %v1664_v28 = vpop.f32.mrf.mxu3 }
 0xb52   : > { %v1703_v29 = vsel %vm3327_vm6, %v1664_v28, -10000.0  ;;  %v2981_v28 = vld [vmem:[%s4160_s30 + $0x1] ss:$0 sm:$0xff] }
 0xb53   : > { %v1709_v30 = vsel %vm949_vm3, %v1703_v29, -inf }
 0xb54   : > { %1710 = vmax.xlane.f32.xlu0 %v1709_v30 }
 0xb64   : > { %2963 = vrot.lane.b32.xlu2 %v2962_v31, %s4164_s8 }
 0xbad   : > { %v1714_v32 = vpop.xlane.xlu1 %1713 }
 0xbae   : > { %v1720_v36 = vsub.f32 %v1704_v21, %v1714_v32  ;;  %v2854_v21 = vld [vmem:[%s4159_s9 + $0x28] sm:$0xff] }
 0xbaf   : > { %1860 = vmatpush.msrb.mxu3 %v2854_v21  ;;  %v2873_v21 = vld [vmem:[%s4163_s26 + $0xb8] sm:$0xff] }
 0xbb0   : > { %v1726_v37 = vmul.f32 1.442695, %v1720_v36 }
 0xbb1   : > { %1861 = vmatpush.msrb.mxu3 %v2853_v22  ;;  %v2872_v22 = vld [vmem:[%s4163_s26 + $0xb0] sm:$0xff] }
 0xbb2   : > { %3024 = vpow2.f32 %v1726_v37 }
 0xbb5   : > { %v1717_v39 = vpop.xlane.xlu0 %1716 }
 0xbb6   : > { %v1721_v34 = vsub.f32 %v1705_v24, %v1717_v39 }
 0xbb8   : > { %v3025_v40 = vpop.eup %3024  ;;  %v1728_v41 = vmul.f32 1.442695, %v1721_v34 }
 0xbb9   : > { %v1736_v42 = vsel %vm949_vm3, %v3025_v40, 0.0 }
 0xbba   : > { %3026 = vpow2.f32 %v1728_v41  ;;  %1737 = vadd.xlane.f32.xlu1 %v1736_v42 }
 0xbbf   : > { %v1708_v38 = vpop.xlane.xlu2 %1707 }
 0xbc0   : > { %v3027_v43 = vpop.eup %3026  ;;  %v1718_v45 = vsub.f32 %v1702_v26, %v1708_v38 }
 0xbc1   : > { %v1739_v6 = vsel %vm949_vm3, %v3027_v43, 0.0 }
 0xbc2   : > { %v1722_v48 = vmul.f32 1.442695, %v1718_v45  ;;  %1740 = vadd.xlane.f32.xlu1 %v1739_v6 }
 0xbc4   : > { %3028 = vpow2.f32 %v1722_v48 }
 0xbc7   : > { %v2964_v7 = vpop.permute.xlu2 %2963  ;;  %v1711_v33 = vpop.xlane.xlu0 %1710 }
 0xbc8   : > { %v2965_v10 = vunpack.i.l.bf16 %v2964_v7  ;;  %v1719_v51 = vsub.f32 %v1703_v29, %v1711_v33  ;;  %v2966_v53 = vunpack.i.h.bf16 %v2964_v7 }
 0xbca   : > { %v3029_v52 = vpop.eup %3028  ;;  %v1724_v54 = vmul.f32 1.442695, %v1719_v51  ;;  %1811 = vmatpush.msrb.mxu2 %v2965_v10 }
 0xbcb   : > { %v1730_v55 = vsel %vm949_vm3, %v3029_v52, 0.0 }
 0xbcc   : > { %3030 = vpow2.f32 %v1724_v54  ;;  %1812 = vmatpush.msrb.mxu2 %v2966_v53  ;;  %1731 = vadd.xlane.f32.xlu0 %v1730_v55 }
 0xbce   : > { %2025 = vmatpush.msra.mxu2 %v2873_v21  ;;  %v2882_v21 = vld [vmem:[%s4165_s12 + $0xc8] sm:$0xff] }
 0xbd0   : > { %2026 = vmatpush.msra.mxu2 %v2872_v22  ;;  %v2881_v22 = vld [vmem:[%s4165_s12 + $0xc0] sm:$0xff] }
 0xbd2   : > { %v3031_v56 = vpop.eup %3030 }
 0xbd3   : > { %v1733_v57 = vsel %vm949_vm3, %v3031_v56, 0.0 }
 0xbd4   : > { %1734 = vadd.xlane.f32.xlu0 %v1733_v57 }
 0xbdb   : > { %2968 = vrot.lane.b32.xlu1 %v2967_v12, %s4164_s8 }
 0xc2d   : > { %v1738_v60 = vpop.xlane.xlu1 %1737 }
 0xc2e   : > { %3032 = vrcp.f32 %v1738_v60 }
 0xc34   : > { %v3033_v61 = vpop.eup %3032 }
 0xc35   : > { %v1748_v62 = vmul.f32 %v3033_v61, %v3025_v40  ;;  %v1741_v63 = vpop.xlane.xlu1 %1740 }
 0xc36   : > { %3034 = vrcp.f32 %v1741_v63  ;;  %v2982_v63 = vld [vmem:[%s4161_s6 + $0x1] ss:$0 sm:$0xff] }
 0xc37   : > { %2851 = vmatmul.msk.f32.vlgmr.msrb.gmra.mxu2 %vm949_vm3, %v1748_v62 }
 0xc3c   : > { %v3035_v0 = vpop.eup %3034 }
 0xc3d   : > { %v1749_v2 = vmul.f32 %v3035_v0, %v3027_v43 }
 0xc3f   : > { %2852 = vmatmul.msk.f32.gmra.mxu2 %vm949_vm3, %v1749_v2  ;;  %v1732_v4 = vpop.xlane.xlu0 %1731 }
 0xc40   : > { %3036 = vrcp.f32 %v1732_v4 }
 0xc46   : > { %v3037_v9 = vpop.eup %3036 }
 0xc47   : > { %v1735_v5 = vpop.xlane.xlu0 %1734  ;;  %v1746_v13 = vmul.f32 %v3037_v9, %v3029_v52 }
 0xc48   : > { %3038 = vrcp.f32 %v1735_v5  ;;  %v2983_v5 = vld [vmem:[%s4162_s4 + $0x1] ss:$0 sm:$0xff]  ;;  %s4178_s4 = sld [smem:[#allocation25_spill]] }
 0xc4d   : > { %v2969_v8 = vpop.permute.xlu1 %2968 }
 0xc4e   : > { %v2970_v1 = vunpack.i.l.bf16 %v2969_v8  ;;  %v2971_v3 = vunpack.i.h.bf16 %v2969_v8  ;;  %v3039_v16 = vpop.eup %3038 }
 0xc4f   : > { %v1747_v17 = vmul.f32 %v3039_v16, %v3031_v56 }
 0xc50   : > { %1776 = vmatpush.msrb.mxu1 %v2970_v1 }
 0xc52   : > { %1777 = vmatpush.msrb.mxu1 %v2971_v3 }
 0xc53   : > { %2849 = vmatmul.msk.f32.vlgmr.msrb.gmra.mxu1 %vm949_vm3, %v1746_v13 }
 0xc5b   : > { %2850 = vmatmul.msk.f32.gmra.mxu1 %vm949_vm3, %v1747_v17 }
 0xcba   : > { %v1814_v18 = vpop.f32.mrf.mxu2 }
 0xcbb   : > { %1822 = vrot.lane.b32.xlu0 %v1814_v18, %s4170_s21 }
 0xcc2   : > { %v1817_v19 = vpop.f32.mrf.mxu2 }
 0xcc3   : > { %1824 = vrot.lane.b32.xlu2 %v1817_v19, %s4170_s21  ;;  %s3086_s21 = smov 48  }
 0xcd0   : > { %v1779_v23 = vpop.f32.mrf.mxu1 }
 0xcd8   : > { %v1782_v26 = vpop.f32.mrf.mxu1 }
 0xd1d   : > { %v1825_v44 = vpop.permute.xlu2 %1824 }
 0xd1e   : > { %v1829_v27 = vsel %vm949_vm3, %v1782_v26, %v1825_v44  ;;  %v2870_v44 = vld [vmem:[%s4163_s26 + $0xa0] sm:$0xff]  ;;  %v2869_v26 = vld [vmem:[%s4163_s26 + $0x98] sm:$0xff] }
 0xd2d   : > { %v1823_v24 = vpop.permute.xlu0 %1822 }
 0xd2e   : > { %v1828_v25 = vsel %vm949_vm3, %v1779_v23, %v1823_v24  ;;  %v2871_v23 = vld [vmem:[%s4163_s26 + $0xa8] sm:$0xff] }
 0xd2f   : > { %2858 = vmatmul.msk.f32.vlgmr.msrb.gmra.mxu3 %vm901_vm1, %v1828_v25  ;;  %2027 = vmatpush.msra.mxu2 %v2871_v23 }
 0xd31   : > { %2028 = vmatpush.msra.mxu2 %v2870_v44 }
 0xd33   : > { %2029 = vmatpush.msra.mxu2 %v2869_v26 }
 0xd37   : > { %2859 = vmatmul.msk.f32.gmra.mxu3 %vm901_vm1, %v1829_v27  ;;  %v2868_v27 = vld [vmem:[%s4163_s26 + $0x90] sm:$0xff] }
 0xd38   : > { %2030 = vmatpush.msra.mxu2 %v2868_v27 }
 0xdb2   : > { %v1863_v29 = vpop.f32.mrf.mxu3 }
 0xdb3   : > { %v1864_v30 = vadd.f32 %v2981_v28, %v1863_v29  ;;  %v2866_v29 = vld [vmem:[%s4163_s26 + $0x80] sm:$0xff] }
 0xdb5   : > { %v1869_v31 = vadd.f32 %v1864_v30, %v3596_v58  ;;  %v2865_v30 = vld [vmem:[%s4163_s26 + $0x78] sm:$0xff] }
 0xdb7   : > { %v1875_v32 = vsel %vm901_vm1, %v1869_v31, 0.0 }
 0xdb8   : > { %1876 = vadd.xlane.f32.xlu1 %v1875_v32  ;;  %v2863_v32 = vld [vmem:[%s4163_s26 + $0x68] sm:$0xff] }
 0xdba   : > { %v1866_v36 = vpop.f32.mrf.mxu3 }
 0xdbb   : > { %v1867_v37 = vadd.f32 %v2981_v28, %v1866_v36  ;;  %v2867_v28 = vld [vmem:[%s4163_s26 + $0x88] sm:$0xff]  ;;  %v2862_v36 = vld [vmem:[%s4163_s26 + $0x60] sm:$0xff] }
 0xdbc   : > { %2031 = vmatpush.msra.mxu2 %v2867_v28 }
 0xdbd   : > { %v1870_v39 = vadd.f32 %v1867_v37, %v3601_v15 }
 0xdbe   : > { %2032 = vmatpush.msra.mxu2 %v2866_v29 }
 0xdbf   : > { %v1878_v34 = vsel %vm901_vm1, %v1870_v39, 0.0 }
 0xdc0   : > { %1879 = vadd.xlane.f32.xlu2 %v1878_v34  ;;  %2033 = vmatpush.msra.mxu2 %v2865_v30  ;;  %v2985_v30 = vld [vmem:[%s4167_s24 + $0x1] ss:$0 sm:$0xff] }
 0xe2b   : > { %v1877_v40 = vpop.xlane.xlu1 %1876 }
 0xe2c   : > { %v1881_v41 = vmul.f32 %v1877_v40, %v3375_v59 }
 0xe2e   : > { %v1883_v42 = vsub.f32 %v1869_v31, %v1881_v41  ;;  %v2864_v31 = vld [vmem:[%s4163_s26 + $0x70] sm:$0xff] }
 0xe2f   : > { %2034 = vmatpush.msra.mxu2 %v2864_v31 }
 0xe30   : > { %v1885_v38 = vmul.f32 %v1883_v42, %v1883_v42 }
 0xe31   : > { %2035 = vmatpush.msra.mxu2 %v2863_v32 }
 0xe32   : > { %v1887_v43 = vsel %vm901_vm1, %v1885_v38, 0.0 }
 0xe33   : > { %v1880_v45 = vpop.xlane.xlu2 %1879  ;;  %1888 = vadd.xlane.f32.xlu2 %v1887_v43  ;;  %2036 = vmatpush.msra.mxu2 %v2862_v36 }
 0xe34   : > { %v1882_v58 = vmul.f32 %v1880_v45, %v3375_v59 }
 0xe36   : > { %v1884_v6 = vsub.f32 %v1870_v39, %v1882_v58 }
 0xe38   : > { %v1886_v48 = vmul.f32 %v1884_v6, %v1884_v6 }
 0xe3a   : > { %v1890_v7 = vsel %vm901_vm1, %v1886_v48, 0.0  ;;  %v2984_v48 = vld [vmem:[%s4166_s22 + $0x1] ss:$0 sm:$0xff] }
 0xe3b   : > { %1891 = vadd.xlane.f32.xlu0 %v1890_v7 }
 0xea6   : > { %v1889_v15 = vpop.xlane.xlu2 %1888 }
 0xea7   : > { %v1893_v33 = vmul.f32 %v1889_v15, %v3375_v59 }
 0xea9   : > { %v1895_v10 = vadd.f32 0.0001, %v1893_v33 }
 0xeab   : > { %3040 = vrsqrt.f32 %v1895_v10  ;;  %vm1903_vm6 = vweird.f32 %v1895_v10 }
 0xeae   : > { %v1892_v51 = vpop.xlane.xlu0 %1891 }
 0xeaf   : > { %v1894_v52 = vmul.f32 %v1892_v51, %v3375_v59 }
 0xeb1   : > { %v3041_v53 = vpop.eup %3040  ;;  %v1896_v54 = vadd.f32 0.0001, %v1894_v52 }
 0xeb2   : > { %v1898_v55 = vmul.f32 %v3041_v53, %v1895_v10  ;;  %vm1904_vm5 = vweird.f32 %v3041_v53 }
 0xeb3   : > { %3042 = vrsqrt.f32 %v1896_v54  ;;  %vm1905_vm14 = vmor %vm1903_vm6, %vm1904_vm5  ;;  %vm1913_vm0 = vweird.f32 %v1896_v54  ;;  %vm2382_vm5 = vcmask 392192  }
 0xeb4   : > { %v1899_v56 = vmul.f32 %v3041_v53, %v1898_v55  ;;  %v2895_v55 = vld [vmem:[%s4165_s12 + $0x130] sm:$0xff] }
 0xeb6   : > { %v1900_v57 = vmul.f32 0.5, %v1899_v56  ;;  %v2894_v56 = vld [vmem:[%s4165_s12 + $0x128] sm:$0xff] }
 0xeb8   : > { %v1901_v12 = vsub.f32 1.5, %v1900_v57  ;;  %v2893_v57 = vld [vmem:[%s4165_s12 + $0x120] sm:$0xff] }
 0xeb9   : > { %v3043_v60 = vpop.eup %3042 }
 0xeba   : > { %v1902_v61 = vmul.f32 %v3041_v53, %v1901_v12  ;;  %v1908_v62 = vmul.f32 %v3043_v60, %v1896_v54  ;;  %vm1914_vm15 = vweird.f32 %v3043_v60  ;;  %v2892_v12 = vld [vmem:[%s4165_s12 + $0x118] sm:$0xff] }
 0xebb   : > { %vm1915_vm2 = vmor %vm1913_vm0, %vm1914_vm15 }
 0xebc   : > { %v1906_v0 = vsel %vm1905_vm14, %v3041_v53, %v1902_v61  ;;  %v1909_v2 = vmul.f32 %v3043_v60, %v1908_v62  ;;  %v2890_v61 = vld [vmem:[%s4165_s12 + $0x108] sm:$0xff]  ;;  %v2904_v62 = vld [vmem:[%s4165_s12 + $0x178] sm:$0xff] }
 0xebd   : > { %v1917_v4 = vmul.f32 %v1906_v0, %v1883_v42  ;;  %v2889_v0 = vld [vmem:[%s4165_s12 + $0x100] sm:$0xff] }
 0xebe   : > { %v1910_v8 = vmul.f32 0.5, %v1909_v2  ;;  %v2902_v2 = vld [vmem:[%s4165_s12 + $0x168] sm:$0xff] }
 0xebf   : > { %v1922_v9 = vmul.f32 %v2982_v63, %v1917_v4  ;;  %v2888_v4 = vld [vmem:[%s4165_s12 + $0xf8] sm:$0xff] }
 0xec0   : > { %v1911_v1 = vsub.f32 1.5, %v1910_v8  ;;  %v2887_v8 = vld [vmem:[%s4165_s12 + $0xf0] sm:$0xff] }
 0xec1   : > { %v3695_v3 = vadd.f32 %v2983_v5, %v1922_v9  ;;  %v2900_v9 = vld [vmem:[%s4165_s12 + $0x158] sm:$0xff] }
 0xec2   : > { %v1912_v13 = vmul.f32 %v3043_v60, %v1911_v1  ;;  %v2886_v1 = vld [vmem:[%s4165_s12 + $0xe8] sm:$0xff] }
 0xec3   : > { %v1929_v16 = vmul.f32 %v3276_v11, %v3695_v3 }
 0xec4   : > { %v1916_v17 = vsel %vm1915_vm2, %v3043_v60, %v1912_v13  ;;  %v2891_v60 = vld [vmem:[%s4165_s12 + $0x110] sm:$0xff] }
 0xec5   : > { %v1918_v18 = vmul.f32 %v1916_v17, %v1884_v6  ;;  %1994 = vrot.lane.b32.xlu2 %v1929_v16, %s4171_s28  ;;  %v2896_v6 = vld [vmem:[%s4165_s12 + $0x138] sm:$0xff]  ;;  %v2899_v13 = vld [vmem:[%s4165_s12 + $0x150] sm:$0xff]  ;;  %v2898_v17 = vld [vmem:[%s4165_s12 + $0x148] sm:$0xff] }
 0xec7   : > { %v1923_v19 = vmul.f32 %v2982_v63, %v1918_v18  ;;  %v2903_v63 = vld [vmem:[%s4165_s12 + $0x170] sm:$0xff]  ;;  %v2884_v18 = vld [vmem:[%s4165_s12 + $0xd8] sm:$0xff] }
 0xec9   : > { %v3700_v20 = vadd.f32 %v2983_v5, %v1923_v19  ;;  %v2901_v5 = vld [vmem:[%s4165_s12 + $0x160] sm:$0xff]  ;;  %v2883_v19 = vld [vmem:[%s4165_s12 + $0xd0] sm:$0xff] }
 0xecb   : > { %v1930_v35 = vmul.f32 %v3287_v14, %v3700_v20 }
 0xecd   : > { %1996 = vrot.lane.b32.xlu0 %v1930_v35, %s4171_s28  ;;  %1960 = vmatpush.msra.mxu0 %v1930_v35 }
 0xece   : > { %1983 = vmatpush.msra.mxu1 %v1930_v35  ;;  %v2897_v35 = vld [vmem:[%s4165_s12 + $0x140] sm:$0xff] }
 0xecf   : > { %1961 = vmatpush.msra.mxu0 %v1929_v16 }
 0xed0   : > { %1984 = vmatpush.msra.mxu1 %v1929_v16  ;;  %2875 = vmatmul.msk.f32.vlgmr.msra.gmra.mxu0 %vm949_vm3, %v3404_v46  ;;  %v2885_v16 = vld [vmem:[%s4165_s12 + $0xe0] sm:$0xff] }
 0xed1   : > { %2877 = vmatmul.msk.f32.vlgmr.msra.gmra.mxu1 %vm949_vm3, %v3407_v47 }
 0xed2   : > { %2140 = vmatpush.msrb.mxu1 %v2896_v6 }
 0xed4   : > { %2141 = vmatpush.msrb.mxu1 %v2895_v55  ;;  %v2253_v55 = vld [vmem:[%s4092_s15 + $0x18] sm:$0xff] }
 0xed5   : > { %2276 = vmatpush.msrb.mxu2 %v2253_v55 }
 0xed6   : > { %2142 = vmatpush.msrb.mxu1 %v2894_v56  ;;  %v2252_v56 = vld [vmem:[%s4092_s15 + $0x10] sm:$0xff] }
 0xed7   : > { %2277 = vmatpush.msrb.mxu2 %v2252_v56  ;;  %v2305_v56 = vld [vmem:[%s4094_s17 + $0x20] sm:$0xff] }
 0xed8   : > { %2876 = vmatmul.msk.f32.gmra.mxu0 %vm949_vm3, %v3418_v49  ;;  %2143 = vmatpush.msrb.mxu1 %v2893_v57  ;;  %v2251_v57 = vld [vmem:[%s4092_s15 + $0x8] sm:$0xff] }
 0xed9   : > { %2878 = vmatmul.msk.f32.gmra.mxu1 %vm949_vm3, %v3421_v50  ;;  %2278 = vmatpush.msrb.mxu2 %v2251_v57  ;;  %v2304_v57 = vld [vmem:[%s4094_s17 + $0x18] sm:$0xff] }
 0xeda   : > { %2144 = vmatpush.msrb.mxu1 %v2892_v12  ;;  %v2250_v12 = vld [vmem:[%s4092_s15] sm:$0xff] }
 0xedb   : > { %2279 = vmatpush.msrb.mxu2 %v2250_v12 }
 0xedc   : > { %2145 = vmatpush.msrb.mxu1 %v2891_v60 }
 0xede   : > { %2146 = vmatpush.msrb.mxu1 %v2890_v61 }
 0xee0   : > { %2147 = vmatpush.msrb.mxu1 %v2889_v0 }
 0xee2   : > { %2148 = vmatpush.msrb.mxu1 %v2888_v4 }
 0xee4   : > { %2149 = vmatpush.msrb.mxu1 %v2887_v8 }
 0xee6   : > { %2150 = vmatpush.msrb.mxu1 %v2886_v1 }
 0xee8   : > { %2151 = vmatpush.msrb.mxu1 %v2885_v16 }
 0xeea   : > { %2152 = vmatpush.msrb.mxu1 %v2884_v18  ;;  %v2987_v18 = vld [vmem:[%s4090_s13 + $0x1] ss:$0 sm:$0xff] }
 0xeec   : > { %2153 = vmatpush.msrb.mxu1 %v2883_v19 }
 0xeee   : > { %2154 = vmatpush.msrb.mxu1 %v2882_v21 }
 0xef0   : > { %2155 = vmatpush.msrb.mxu1 %v2881_v22  ;;  %v2988_v22 = vld [vmem:[%s4091_s14 + $0x1] ss:$0 sm:$0xff] }
 0xf1f   : > { %v1995_v39 = vpop.permute.xlu2 %1994 }
 0xf3f   : > { %v1997_v43 = vpop.permute.xlu0 %1996 }
 0xf4d   : > { %v1963_v37 = vpop.f32.mrf.mxu0 }
 0xf4e   : > { %v1986_v24 = vpop.f32.mrf.mxu1  ;;  %v2008_v34 = vsel %vm901_vm1, %v1963_v37, %v1995_v39 }
 0xf4f   : > { %2002 = vrot.lane.b32.xlu1 %v1986_v24, %s4164_s8 }
 0xf55   : > { %v1966_v42 = vpop.f32.mrf.mxu0 }
 0xf56   : > { %v1989_v25 = vpop.f32.mrf.mxu1  ;;  %v2009_v45 = vsel %vm901_vm1, %v1966_v42, %v1997_v43 }
 0xf57   : > { %2004 = vrot.lane.b32.xlu2 %v1989_v25, %s4164_s8 }
 0xfb1   : > { %v2005_v38 = vpop.permute.xlu2 %2004 }
 0xfb2   : > { %v2011_v58 = vsel %vm1341_vm4, %v2009_v45, %v2005_v38 }
 0xfc1   : > { %v2003_v40 = vpop.permute.xlu1 %2002 }
 0xfc2   : > { %v2010_v41 = vsel %vm1341_vm4, %v2008_v34, %v2003_v40 }
 0xfc3   : > { %2879 = vmatmul.msk.f32.vlgmr.msra.gmra.mxu2 %vm1347_vm7, %v2010_v41 }
 0xfcb   : > { %2880 = vmatmul.msk.f32.gmra.mxu2 %vm1347_vm7, %v2011_v58 }
0x1046   : > { %v2038_v7 = vpop.f32.mrf.mxu2 }
0x1047   : > { %v2039_v15 = vadd.f32 %v2984_v48, %v2038_v7 }
0x1049   : > { %v2044_v33 = vmax.f32 %v2039_v15, 0.0 }
0x104b   : > { %v2046_v10 = vmul.f32 %v3276_v11, %v2044_v33 }
0x104d   : > { %2123 = vrot.lane.b32.xlu0 %v2046_v10, %s4164_s8 }
0x104e   : > { %v2041_v51 = vpop.f32.mrf.mxu2 }
0x104f   : > { %v2042_v52 = vadd.f32 %v2984_v48, %v2041_v51  ;;  %v2986_v48 = vld [vmem:[%s846_s3] ss:$0 sm:$0xff] }
0x1051   : > { %v2045_v53 = vmax.f32 %v2042_v52, 0.0 }
0x1053   : > { %v2047_v54 = vmul.f32 %v3287_v14, %v2045_v53 }
0x1055   : > { %2125 = vrot.lane.b32.xlu1 %v2047_v54, %s4164_s8  ;;  %2089 = vmatpush.msra.mxu3 %v2047_v54 }
0x1056   : > { %2112 = vmatpush.msrb.mxu0 %v2047_v54 }
0x1057   : > { %2090 = vmatpush.msra.mxu3 %v2046_v10 }
0x1058   : > { %2113 = vmatpush.msrb.mxu0 %v2046_v10  ;;  %2906 = vmatmul.msk.f32.vlgmr.msra.gmra.mxu3 %vm949_vm3, %v3404_v46 }
0x1059   : > { %2908 = vmatmul.msk.f32.vlgmr.msrb.gmra.mxu0 %vm949_vm3, %v3407_v47  ;;  %2171 = vmatpush.msrb.mxu3 %v2904_v62 }
0x105b   : > { %2172 = vmatpush.msrb.mxu3 %v2903_v63 }
0x105d   : > { %2173 = vmatpush.msrb.mxu3 %v2902_v2 }
0x105f   : > { %2174 = vmatpush.msrb.mxu3 %v2901_v5 }
0x1060   : > { %2907 = vmatmul.msk.f32.gmra.mxu3 %vm949_vm3, %v3418_v49 }
0x1061   : > { %2909 = vmatmul.msk.f32.gmra.mxu0 %vm949_vm3, %v3421_v50  ;;  %2175 = vmatpush.msrb.mxu3 %v2900_v9 }
0x1063   : > { %2176 = vmatpush.msrb.mxu3 %v2899_v13 }
0x1065   : > { %2177 = vmatpush.msrb.mxu3 %v2898_v17 }
0x1067   : > { %2178 = vmatpush.msrb.mxu3 %v2897_v35 }
0x10bf   : > { %v2124_v24 = vpop.permute.xlu0 %2123 }
0x10c7   : > { %v2126_v27 = vpop.permute.xlu1 %2125 }
0x10d6   : > { %v2115_v23 = vpop.f32.mrf.mxu0 }
0x10d7   : > { %2910 = vmatmul.msk.f32.vlgmr.msrb.gmra.mxu3 %vm1341_vm4, %v2115_v23 }
0x10db   : > { %v2092_v25 = vpop.f32.mrf.mxu3 }
0x10dc   : > { %v2129_v44 = vsel %vm1341_vm4, %v2092_v25, %v2124_v24 }
0x10dd   : > { %2156 = vmatmul.f32.vlgmr.msrb.gmra.mxu1 %v2129_v44 }
0x10de   : > { %v2118_v26 = vpop.f32.mrf.mxu0 }
0x10df   : > { %2911 = vmatmul.msk.f32.gmra.mxu3 %vm1341_vm4, %v2118_v26 }
0x10e3   : > { %v2095_v28 = vpop.f32.mrf.mxu3 }
0x10e4   : > { %v2130_v29 = vsel %vm1341_vm4, %v2095_v28, %v2126_v27 }
0x10e5   : > { %2159 = vmatmul.f32.gmra.mxu1 %v2130_v29 }
0x115a   : > { %v2157_v31 = vpop.f32.mrf.mxu1  ;;  %v2180_v32 = vpop.f32.mrf.mxu3 }
0x115b   : > { %v2158_v36 = vadd.f32 %v2985_v30, %v2157_v31 }
0x115d   : > { %v2181_v37 = vadd.f32 %v2180_v32, %v2158_v36 }
0x115f   : > { %v2186_v39 = vmul.f32 %v3276_v11, %v2181_v37 }
0x1161   : > { %v2188_v34 = vadd.f32 %v2186_v39, %v3695_v3 }
0x1162   : > { %v2160_v40 = vpop.f32.mrf.mxu1  ;;  %v2183_v41 = vpop.f32.mrf.mxu3 }
0x1163   : > { %v2161_v42 = vadd.f32 %v2985_v30, %v2160_v40  ;;  %v2194_v38 = vsel %vm901_vm1, %v2188_v34, 0.0 }
0x1164   : > { %2195 = vadd.xlane.f32.xlu0 %v2194_v38  ;;  %v2314_v38 = vld [vmem:[%s4094_s17 + $0x68] sm:$0xff] }
0x1165   : > { %v2184_v43 = vadd.f32 %v2183_v41, %v2161_v42  ;;  %v2316_v41 = vld [vmem:[%s4094_s17 + $0x78] sm:$0xff]  ;;  %v2315_v42 = vld [vmem:[%s4094_s17 + $0x70] sm:$0xff] }
0x1166   : > { %2394 = vmatpush.msra.mxu2 %v2316_v41 }
0x1167   : > { %v2187_v45 = vmul.f32 %v3287_v14, %v2184_v43  ;;  %v2313_v43 = vld [vmem:[%s4094_s17 + $0x60] sm:$0xff] }
0x1168   : > { %2395 = vmatpush.msra.mxu2 %v2315_v42 }
0x1169   : > { %v2189_v58 = vadd.f32 %v2187_v45, %v3700_v20  ;;  %v2318_v45 = vld [vmem:[%s4094_s17 + $0x88] sm:$0xff] }
0x116a   : > { %2396 = vmatpush.msra.mxu2 %v2314_v38 }
0x116b   : > { %v2197_v6 = vsel %vm901_vm1, %v2189_v58, 0.0 }
0x116c   : > { %2198 = vadd.xlane.f32.xlu2 %v2197_v6  ;;  %v2312_v6 = vld [vmem:[%s4094_s17 + $0x58] sm:$0xff]  ;;  %2397 = vmatpush.msra.mxu2 %v2313_v43 }
0x116e   : > { %2398 = vmatpush.msra.mxu2 %v2312_v6 }
0x1178   : > { %2294 = vrot.lane.b32.xlu0 %v2986_v48, %s4171_s28 }
0x11d7   : > { %v2196_v3 = vpop.xlane.xlu0 %2195 }
0x11d8   : > { %v2200_v7 = vmul.f32 %v2196_v3, %v3375_v59  ;;  %v2311_v3 = vld [vmem:[%s4094_s17 + $0x50] sm:$0xff] }
0x11d9   : > { %2399 = vmatpush.msra.mxu2 %v2311_v3 }
0x11da   : > { %v2202_v15 = vsub.f32 %v2188_v34, %v2200_v7 }
0x11dc   : > { %v2204_v33 = vmul.f32 %v2202_v15, %v2202_v15 }
0x11de   : > { %v2206_v10 = vsel %vm901_vm1, %v2204_v33, 0.0 }
0x11df   : > { %2207 = vadd.xlane.f32.xlu2 %v2206_v10  ;;  %v2199_v51 = vpop.xlane.xlu2 %2198  ;;  %v2309_v10 = vld [vmem:[%s4094_s17 + $0x40] sm:$0xff] }
0x11e0   : > { %v2201_v52 = vmul.f32 %v2199_v51, %v3375_v59  ;;  %v2308_v51 = vld [vmem:[%s4094_s17 + $0x38] sm:$0xff] }
0x11e2   : > { %v2203_v53 = vsub.f32 %v2189_v58, %v2201_v52  ;;  %v2989_v58 = vld [vmem:[%s4093_s16] ss:$0 sm:$0xff] }
0x11e4   : > { %v2205_v54 = vmul.f32 %v2203_v53, %v2203_v53 }
0x11e6   : > { %v2209_v20 = vsel %vm901_vm1, %v2205_v54, 0.0 }
0x11e7   : > { %2210 = vadd.xlane.f32.xlu1 %v2209_v20  ;;  %v2306_v20 = vld [vmem:[%s4094_s17 + $0x28] sm:$0xff] }
0x11ea   : > { %v2295_v27 = vpop.permute.xlu0 %2294 }
0x1252   : > { %v2208_v60 = vpop.xlane.xlu2 %2207 }
0x1253   : > { %v2212_v61 = vmul.f32 %v2208_v60, %v3375_v59  ;;  %v2303_v60 = vld [vmem:[%s4094_s17 + $0x10] sm:$0xff] }
0x1255   : > { %v2214_v62 = vadd.f32 0.0001, %v2212_v61  ;;  %v2302_v61 = vld [vmem:[%s4094_s17 + $0x8] sm:$0xff] }
0x1257   : > { %3044 = vrsqrt.f32 %v2214_v62  ;;  %vm2222_vm9 = vweird.f32 %v2214_v62 }
0x125a   : > { %v2211_v63 = vpop.xlane.xlu1 %2210 }
0x125b   : > { %v2213_v0 = vmul.f32 %v2211_v63, %v3375_v59  ;;  %v2317_v63 = vld [vmem:[%s4094_s17 + $0x80] sm:$0xff] }
0x125d   : > { %v3045_v2 = vpop.eup %3044  ;;  %v2215_v4 = vadd.f32 0.0001, %v2213_v0  ;;  %v2301_v0 = vld [vmem:[%s4094_s17] sm:$0xff] }
0x125e   : > { %v2217_v5 = vmul.f32 %v3045_v2, %v2214_v62  ;;  %vm2223_vm8 = vweird.f32 %v3045_v2 }
0x125f   : > { %3046 = vrsqrt.f32 %v2215_v4  ;;  %vm2224_vm10 = vmor %vm2222_vm9, %vm2223_vm8  ;;  %vm2232_vm12 = vweird.f32 %v2215_v4 }
0x1260   : > { %v2218_v8 = vmul.f32 %v3045_v2, %v2217_v5 }
0x1262   : > { %v2219_v9 = vmul.f32 0.5, %v2218_v8 }
0x1264   : > { %v2220_v1 = vsub.f32 1.5, %v2219_v9 }
0x1265   : > { %v3047_v13 = vpop.eup %3046 }
0x1266   : > { %v2221_v16 = vmul.f32 %v3045_v2, %v2220_v1  ;;  %v2227_v17 = vmul.f32 %v3047_v13, %v2215_v4  ;;  %vm2233_vm11 = vweird.f32 %v3047_v13 }
0x1267   : > { %vm2234_vm13 = vmor %vm2232_vm12, %vm2233_vm11  ;;  %vm2689_vm12 = vcmask 7168  }
0x1268   : > { %v2225_v19 = vsel %vm2224_vm10, %v3045_v2, %v2221_v16  ;;  %v2228_v35 = vmul.f32 %v3047_v13, %v2227_v17 }
0x1269   : > { %v2236_v21 = vmul.f32 %v2225_v19, %v2202_v15  ;;  %v2310_v15 = vld [vmem:[%s4094_s17 + $0x48] sm:$0xff]  ;;  %v2990_v19 = vld [vmem:[%s4095_s18] ss:$0 sm:$0xff] }
0x126a   : > { %v2229_v23 = vmul.f32 0.5, %v2228_v35  ;;  %2400 = vmatpush.msra.mxu2 %v2310_v15 }
0x126b   : > { %v2241_v24 = vmul.f32 %v2987_v18, %v2236_v21 }
0x126c   : > { %v2230_v25 = vsub.f32 1.5, %v2229_v23  ;;  %2401 = vmatpush.msra.mxu2 %v2309_v10  ;;  %v2991_v10 = vld [vmem:[%s4096_s19] ss:$0 sm:$0xff] }
0x126d   : > { %v2246_v44 = vadd.f32 %v2988_v22, %v2241_v24 }
0x126e   : > { %v2231_v26 = vmul.f32 %v3047_v13, %v2230_v25  ;;  %2402 = vmatpush.msra.mxu2 %v2308_v51 }
0x126f   : > { %v2248_v28 = vmul.f32 %v3276_v11, %v2246_v44 }
0x1270   : > { %v2235_v29 = vsel %vm2234_vm13, %v3047_v13, %v2231_v26 }
0x1271   : > { %v2237_v30 = vmul.f32 %v2235_v29, %v2203_v53  ;;  %v2297_v31 = vsel %vm901_vm1, %v2248_v28, %v2295_v27  ;;  %2914 = vmatmul.msk.f32.vlgmr.msrb.gmra.mxu2 %vm901_vm1, %v2248_v28  ;;  %v2307_v53 = vld [vmem:[%s4094_s17 + $0x30] sm:$0xff] }
0x1272   : > { %v2299_v32 = vmul.f32 %v3276_v11, %v2297_v31  ;;  %2403 = vmatpush.msra.mxu2 %v2307_v53  ;;  %v2992_v53 = vld [vmem:[%s4097_s20] ss:$0 sm:$0xff] }
0x1273   : > { %v2242_v36 = vmul.f32 %v2987_v18, %v2237_v30 }
0x1274   : > { %2368 = vrot.lane.b32.xlu1 %v2299_v32, %s3086_s21  ;;  %2404 = vmatpush.msra.mxu2 %v2306_v20 }
0x1275   : > { %v2247_v37 = vadd.f32 %v2988_v22, %v2242_v36 }
0x1276   : > { %2405 = vmatpush.msra.mxu2 %v2305_v56 }
0x1277   : > { %v2249_v39 = vmul.f32 %v3287_v14, %v2247_v37 }
0x1278   : > { %2406 = vmatpush.msra.mxu2 %v2304_v57 }
0x1279   : > { %v2298_v34 = vsel %vm901_vm1, %v2249_v39, %v2295_v27  ;;  %2915 = vmatmul.msk.f32.gmra.mxu2 %vm901_vm1, %v2249_v39 }
0x127a   : > { %v2300_v40 = vmul.f32 %v3287_v14, %v2298_v34  ;;  %2407 = vmatpush.msra.mxu2 %v2303_v60 }
0x127c   : > { %2370 = vrot.lane.b32.xlu0 %v2300_v40, %s3086_s21  ;;  %2334 = vmatpush.msra.mxu0 %v2300_v40 }
0x127d   : > { %2357 = vmatpush.msra.mxu3 %v2300_v40  ;;  %2408 = vmatpush.msra.mxu2 %v2302_v61 }
0x127e   : > { %2335 = vmatpush.msra.mxu0 %v2299_v32 }
0x127f   : > { %2358 = vmatpush.msra.mxu3 %v2299_v32  ;;  %2916 = vmatmul.msk.f32.vlgmr.msra.gmra.mxu0 %vm949_vm3, %v3404_v46 }
0x1280   : > { %2918 = vmatmul.msk.f32.vlgmr.msra.gmra.mxu3 %vm949_vm3, %v3407_v47  ;;  %2431 = vmatpush.msrb.mxu0 %v2318_v45 }
0x1281   : > { %2409 = vmatpush.msra.mxu2 %v2301_v0 }
0x1282   : > { %2432 = vmatpush.msrb.mxu0 %v2317_v63 }
0x1287   : > { %2917 = vmatmul.msk.f32.gmra.mxu0 %vm949_vm3, %v3418_v49 }
0x1288   : > { %2919 = vmatmul.msk.f32.gmra.mxu3 %vm949_vm3, %v3421_v50 }
0x12e6   : > { %v2369_v4 = vpop.permute.xlu1 %2368 }
0x12ee   : > { %v2371_v13 = vpop.permute.xlu0 %2370 }
0x12f4   : > { %v2281_v48 = vpop.f32.mrf.mxu2 }
0x12f5   : > { %v2282_v7 = vadd.f32 %v2989_v58, %v2281_v48 }
0x12f7   : > { %v2287_v33 = vmul.f32 %v3276_v11, %v2282_v7 }
0x12f9   : > { %2289 = vst.msk [vmem:[%s851_s2] sm:$0xff] %vm949_vm3, %v2287_v33 }
0x12fc   : > { %v2284_v52 = vpop.f32.mrf.mxu2  ;;  %v2337_v2 = vpop.f32.mrf.mxu0 }
0x12fd   : > { %v2285_v54 = vadd.f32 %v2989_v58, %v2284_v52  ;;  %v2383_v5 = vsel %vm2382_vm5, %v2337_v2, %v2369_v4 }
0x12ff   : > { %v2288_v55 = vmul.f32 %v3287_v14, %v2285_v54 }
0x1301   : > { %2290 = vst.msk [vmem:[%s851_s2 + $0x8] sm:$0xff] %vm949_vm3, %v2288_v55  ;;  %s4173_s2 = sld [smem:[#allocation20_spill]] }
0x1303   : > { %v2360_v12 = vpop.f32.mrf.mxu3 }
0x1304   : > { %2376 = vrot.lane.b32.xlu2 %v2360_v12, %s4169_s7  ;;  %v2340_v1 = vpop.f32.mrf.mxu0 }
0x1305   : > { %v2384_v16 = vsel %vm2382_vm5, %v2340_v1, %v2371_v13 }
0x1307   : > { %v2511_v13 = vld [vmem:[%s4173_s2 + $0x58] sm:$0xff] }
0x1308   : > { %2592 = vmatpush.msra.mxu0 %v2511_v13 }
0x130b   : > { %v2363_v62 = vpop.f32.mrf.mxu3 }
0x130c   : > { %2378 = vrot.lane.b32.xlu1 %v2363_v62, %s4169_s7  ;;  %s4176_s7 = sld [smem:[#allocation23_spill]] }
0x135e   : > { %v2377_v8 = vpop.permute.xlu2 %2376 }
0x135f   : > { %v2385_v9 = vsel %vm1347_vm7, %v2383_v5, %v2377_v8  ;;  %2920 = vmatmul.msk.f32.vlgmr.msrb.gmra.mxu0 %vm949_vm3, %v2377_v8 }
0x1360   : > { %2410 = vmatmul.f32.vlgmr.msra.gmra.mxu2 %v2385_v9 }
0x137e   : > { %v2379_v17 = vpop.permute.xlu1 %2378 }
0x137f   : > { %2921 = vmatmul.msk.f32.gmra.mxu0 %vm949_vm3, %v2379_v17  ;;  %v2386_v18 = vsel %vm1347_vm7, %v2384_v16, %v2379_v17  ;;  %v2510_v16 = vld [vmem:[%s4173_s2 + $0x50] sm:$0xff]  ;;  %v2507_v17 = vld [vmem:[%s4173_s2 + $0x38] sm:$0xff] }
0x1380   : > { %2413 = vmatmul.f32.gmra.mxu2 %v2386_v18  ;;  %2593 = vmatpush.msra.mxu0 %v2510_v16  ;;  %v2506_v18 = vld [vmem:[%s4173_s2 + $0x30] sm:$0xff] }
0x13dc   : > { %v2434_v22 = vpop.f32.mrf.mxu0 }
0x13e3   : > { %v2411_v35 = vpop.f32.mrf.mxu2 }
0x13e4   : > { %v2412_v21 = vadd.f32 %v2990_v19, %v2411_v35  ;;  %v2504_v35 = vld [vmem:[%s4173_s2 + $0x20] sm:$0xff] }
0x13e6   : > { %v2435_v23 = vadd.f32 %v2434_v22, %v2412_v21  ;;  %v2503_v21 = vld [vmem:[%s4173_s2 + $0x18] sm:$0xff]  ;;  %v2502_v22 = vld [vmem:[%s4173_s2 + $0x10] sm:$0xff] }
0x13e8   : > { %v2440_v24 = vmax.f32 %v2435_v23, 0.0  ;;  %v2501_v23 = vld [vmem:[%s4173_s2 + $0x8] sm:$0xff] }
0x13ea   : > { %v2444_v25 = vsel %vm901_vm1, %v2440_v24, 0.0 }
0x13eb   : > { %2445 = vadd.xlane.f32.xlu2 %v2444_v25 }
0x13fc   : > { %v2437_v27 = vpop.f32.mrf.mxu0 }
0x1403   : > { %v2414_v44 = vpop.f32.mrf.mxu2 }
0x1404   : > { %v2415_v26 = vadd.f32 %v2990_v19, %v2414_v44  ;;  %v2505_v19 = vld [vmem:[%s4173_s2 + $0x28] sm:$0xff] }
0x1406   : > { %v2438_v28 = vadd.f32 %v2437_v27, %v2415_v26 }
0x1408   : > { %v2441_v29 = vmax.f32 %v2438_v28, 0.0 }
0x140a   : > { %v2447_v30 = vsel %vm901_vm1, %v2441_v29, 0.0 }
0x140b   : > { %2448 = vadd.xlane.f32.xlu0 %v2447_v30 }
0x145e   : > { %v2446_v31 = vpop.xlane.xlu2 %2445 }
0x145f   : > { %v2450_v32 = vmul.f32 %v2446_v31, %v3375_v59 }
0x1461   : > { %v2452_v36 = vsub.f32 %v2440_v24, %v2450_v32  ;;  %v2500_v24 = vld [vmem:[%s4173_s2] sm:$0xff] }
0x1463   : > { %v2454_v37 = vmul.f32 %v2452_v36, %v2452_v36 }
0x1465   : > { %v2456_v39 = vsel %vm901_vm1, %v2454_v37, 0.0  ;;  %v2993_v37 = vld [vmem:[%s4174_s1] ss:$0 sm:$0xff]  ;;  %s856_s1 = scalar_lea.vmem %s4178_s4, %s3263_s5 }
0x1466   : > { %2457 = vadd.xlane.f32.xlu0 %v2456_v39 }
0x147e   : > { %v2449_v34 = vpop.xlane.xlu0 %2448 }
0x147f   : > { %v2451_v40 = vmul.f32 %v2449_v34, %v3375_v59 }
0x1481   : > { %v2453_v41 = vsub.f32 %v2441_v29, %v2451_v40 }
0x1483   : > { %v2455_v42 = vmul.f32 %v2453_v41, %v2453_v41 }
0x1485   : > { %v2459_v38 = vsel %vm901_vm1, %v2455_v42, 0.0 }
0x1486   : > { %2460 = vadd.xlane.f32.xlu1 %v2459_v38 }
0x14d9   : > { %v2458_v43 = vpop.xlane.xlu0 %2457 }
0x14da   : > { %v2462_v45 = vmul.f32 %v2458_v43, %v3375_v59 }
0x14dc   : > { %v2464_v58 = vadd.f32 0.0001, %v2462_v45 }
0x14de   : > { %3048 = vrsqrt.f32 %v2464_v58  ;;  %vm2472_vm14 = vweird.f32 %v2464_v58 }
0x14e4   : > { %v3049_v6 = vpop.eup %3048 }
0x14e5   : > { %v2467_v48 = vmul.f32 %v3049_v6, %v2464_v58  ;;  %vm2473_vm6 = vweird.f32 %v3049_v6 }
0x14e6   : > { %vm2474_vm15 = vmor %vm2472_vm14, %vm2473_vm6 }
0x14e7   : > { %v2468_v3 = vmul.f32 %v3049_v6, %v2467_v48 }
0x14e9   : > { %v2469_v7 = vmul.f32 0.5, %v2468_v3 }
0x14eb   : > { %v2470_v15 = vsub.f32 1.5, %v2469_v7 }
0x14ed   : > { %v2471_v33 = vmul.f32 %v3049_v6, %v2470_v15 }
0x14ef   : > { %v2475_v51 = vsel %vm2474_vm15, %v3049_v6, %v2471_v33 }
0x14f0   : > { %v2486_v52 = vmul.f32 %v2475_v51, %v2452_v36 }
0x14f2   : > { %v2491_v54 = vmul.f32 %v2991_v10, %v2486_v52 }
0x14f4   : > { %v2496_v20 = vadd.f32 %v2992_v53, %v2491_v54 }
0x14f6   : > { %v2498_v55 = vmul.f32 %v3276_v11, %v2496_v20 }
0x14f8   : > { %2561 = vrot.lane.b32.xlu2 %v2498_v55, %s4171_s28 }
0x14f9   : > { %v2461_v56 = vpop.xlane.xlu1 %2460 }
0x14fa   : > { %v2463_v57 = vmul.f32 %v2461_v56, %v3375_v59 }
0x14fc   : > { %v2465_v12 = vadd.f32 0.0001, %v2463_v57 }
0x14fe   : > { %3050 = vrsqrt.f32 %v2465_v12  ;;  %vm2482_vm2 = vweird.f32 %v2465_v12 }
0x1504   : > { %v3051_v60 = vpop.eup %3050 }
0x1505   : > { %v2477_v61 = vmul.f32 %v3051_v60, %v2465_v12  ;;  %vm2483_vm0 = vweird.f32 %v3051_v60 }
0x1506   : > { %vm2484_vm8 = vmor %vm2482_vm2, %vm2483_vm0 }
0x1507   : > { %v2478_v62 = vmul.f32 %v3051_v60, %v2477_v61 }
0x1509   : > { %v2479_v63 = vmul.f32 0.5, %v2478_v62 }
0x150b   : > { %v2480_v0 = vsub.f32 1.5, %v2479_v63 }
0x150d   : > { %v2481_v2 = vmul.f32 %v3051_v60, %v2480_v0 }
0x150f   : > { %v2485_v4 = vsel %vm2484_vm8, %v3051_v60, %v2481_v2 }
0x1510   : > { %v2487_v5 = vmul.f32 %v2485_v4, %v2453_v41 }
0x1512   : > { %v2492_v8 = vmul.f32 %v2991_v10, %v2487_v5 }
0x1514   : > { %v2497_v9 = vadd.f32 %v2992_v53, %v2492_v8 }
0x1516   : > { %v2499_v1 = vmul.f32 %v3287_v14, %v2497_v9 }
0x1518   : > { %2527 = vmatpush.msra.mxu1 %v2499_v1  ;;  %2550 = vmatpush.msrb.mxu3 %v2499_v1 }
0x1519   : > { %2563 = vrot.lane.b32.xlu0 %v2499_v1, %s4171_s28  ;;  %s4175_s28 = sld [smem:[#allocation22_spill]]  ;;  %v2995_v1 = vld [vmem:[%s4176_s7] ss:$0 sm:$0xff] }
0x151a   : > { %2528 = vmatpush.msra.mxu1 %v2498_v55  ;;  %2551 = vmatpush.msrb.mxu3 %v2498_v55 }
0x151b   : > { %2922 = vmatmul.msk.f32.vlgmr.msra.gmra.mxu1 %vm949_vm3, %v3404_v46  ;;  %2924 = vmatmul.msk.f32.vlgmr.msrb.gmra.mxu3 %vm949_vm3, %v3407_v47  ;;  %v2509_v46 = vld [vmem:[%s4173_s2 + $0x48] sm:$0xff] }
0x151c   : > { %2594 = vmatpush.msra.mxu0 %v2509_v46 }
0x151f   : > { %v2994_v5 = vld [vmem:[%s4175_s28] ss:$0 sm:$0xff] }
0x1523   : > { %2923 = vmatmul.msk.f32.gmra.mxu1 %vm949_vm3, %v3418_v49  ;;  %2925 = vmatmul.msk.f32.gmra.mxu3 %vm949_vm3, %v3421_v50  ;;  %v2508_v50 = vld [vmem:[%s4173_s2 + $0x40] sm:$0xff] }
0x1524   : > { %2595 = vmatpush.msra.mxu0 %v2508_v50 }
0x1526   : > { %2596 = vmatpush.msra.mxu0 %v2507_v17 }
0x1528   : > { %2597 = vmatpush.msra.mxu0 %v2506_v18 }
0x152a   : > { %2598 = vmatpush.msra.mxu0 %v2505_v19 }
0x152c   : > { %2599 = vmatpush.msra.mxu0 %v2504_v35 }
0x152e   : > { %2600 = vmatpush.msra.mxu0 %v2503_v21 }
0x1530   : > { %2601 = vmatpush.msra.mxu0 %v2502_v22 }
0x1532   : > { %2602 = vmatpush.msra.mxu0 %v2501_v23 }
0x1534   : > { %2603 = vmatpush.msra.mxu0 %v2500_v24 }
0x1552   : > { %v2562_v44 = vpop.permute.xlu2 %2561 }
0x158b   : > { %v2564_v31 = vpop.permute.xlu0 %2563 }
0x1598   : > { %v2530_v25 = vpop.f32.mrf.mxu1 }
0x1599   : > { %v2575_v26 = vsel %vm901_vm1, %v2530_v25, %v2562_v44 }
0x159e   : > { %v2553_v47 = vpop.f32.mrf.mxu3 }
0x159f   : > { %2569 = vrot.lane.b32.xlu1 %v2553_v47, %s4164_s8 }
0x15a0   : > { %v2533_v29 = vpop.f32.mrf.mxu1 }
0x15a1   : > { %v2576_v32 = vsel %vm901_vm1, %v2533_v29, %v2564_v31 }
0x15a6   : > { %v2556_v49 = vpop.f32.mrf.mxu3 }
0x15a7   : > { %2571 = vrot.lane.b32.xlu2 %v2556_v49, %s4164_s8  ;;  %v2996_v49 = vld [vmem:[%s4177_s23] ss:$0 sm:$0xff] }
0x1601   : > { %v2572_v30 = vpop.permute.xlu2 %2571 }
0x1602   : > { %v2578_v36 = vsel %vm1341_vm4, %v2576_v32, %v2572_v30 }
0x1611   : > { %v2570_v27 = vpop.permute.xlu1 %2569 }
0x1612   : > { %v2577_v28 = vsel %vm1341_vm4, %v2575_v26, %v2570_v27  ;;  %v2997_v26 = vld [vmem:[#allocation4] ss:$0 sm:$0xff] }
0x1613   : > { %2926 = vmatmul.msk.f32.vlgmr.msra.gmra.mxu0 %vm1347_vm7, %v2577_v28 }
0x161b   : > { %2927 = vmatmul.msk.f32.gmra.mxu0 %vm1347_vm7, %v2578_v36 }
0x1690   : > { %v2605_v39 = vpop.f32.mrf.mxu0 }
0x1691   : > { %v2606_v34 = vadd.f32 %v2993_v37, %v2605_v39 }
0x1693   : > { %v2611_v40 = vmax.f32 %v2606_v34, 0.0 }
0x1695   : > { %v2615_v41 = vsel %vm901_vm1, %v2611_v40, 0.0 }
0x1696   : > { %2616 = vadd.xlane.f32.xlu0 %v2615_v41 }
0x1698   : > { %v2608_v42 = vpop.f32.mrf.mxu0 }
0x1699   : > { %v2609_v38 = vadd.f32 %v2993_v37, %v2608_v42 }
0x169b   : > { %v2612_v43 = vmax.f32 %v2609_v38, 0.0 }
0x169d   : > { %v2618_v45 = vsel %vm901_vm1, %v2612_v43, 0.0 }
0x169e   : > { %2619 = vadd.xlane.f32.xlu1 %v2618_v45 }
0x1709   : > { %v2617_v58 = vpop.xlane.xlu0 %2616 }
0x170a   : > { %v2621_v6 = vmul.f32 %v2617_v58, %v3375_v59 }
0x170c   : > { %v2623_v48 = vsub.f32 %v2611_v40, %v2621_v6 }
0x170e   : > { %v2625_v3 = vmul.f32 %v2623_v48, %v2623_v48 }
0x1710   : > { %v2627_v7 = vsel %vm901_vm1, %v2625_v3, 0.0 }
0x1711   : > { %v2620_v15 = vpop.xlane.xlu1 %2619  ;;  %2628 = vadd.xlane.f32.xlu2 %v2627_v7 }
0x1712   : > { %v2622_v33 = vmul.f32 %v2620_v15, %v3375_v59 }
0x1714   : > { %v2624_v10 = vsub.f32 %v2612_v43, %v2622_v33 }
0x1716   : > { %v2626_v51 = vmul.f32 %v2624_v10, %v2624_v10 }
0x1718   : > { %v2630_v52 = vsel %vm901_vm1, %v2626_v51, 0.0 }
0x1719   : > { %2631 = vadd.xlane.f32.xlu0 %v2630_v52 }
0x1784   : > { %v2629_v53 = vpop.xlane.xlu2 %2628 }
0x1785   : > { %v2633_v54 = vmul.f32 %v2629_v53, %v3375_v59 }
0x1787   : > { %v2635_v20 = vadd.f32 0.0001, %v2633_v54 }
0x1789   : > { %3052 = vrsqrt.f32 %v2635_v20  ;;  %vm2643_vm4 = vweird.f32 %v2635_v20 }
0x178c   : > { %v2632_v55 = vpop.xlane.xlu0 %2631 }
0x178d   : > { %v2634_v56 = vmul.f32 %v2632_v55, %v3375_v59 }
0x178f   : > { %v3053_v57 = vpop.eup %3052  ;;  %v2636_v12 = vadd.f32 0.0001, %v2634_v56 }
0x1790   : > { %v2638_v60 = vmul.f32 %v3053_v57, %v2635_v20  ;;  %vm2644_vm3 = vweird.f32 %v3053_v57 }
0x1791   : > { %3054 = vrsqrt.f32 %v2636_v12  ;;  %vm2645_vm7 = vmor %vm2643_vm4, %vm2644_vm3  ;;  %vm2653_vm10 = vweird.f32 %v2636_v12 }
0x1792   : > { %v2639_v61 = vmul.f32 %v3053_v57, %v2638_v60 }
0x1794   : > { %v2640_v62 = vmul.f32 0.5, %v2639_v61 }
0x1796   : > { %v2641_v63 = vsub.f32 1.5, %v2640_v62 }
0x1797   : > { %v3055_v0 = vpop.eup %3054 }
0x1798   : > { %v2642_v2 = vmul.f32 %v3053_v57, %v2641_v63  ;;  %v2648_v4 = vmul.f32 %v3055_v0, %v2636_v12  ;;  %vm2654_vm9 = vweird.f32 %v3055_v0 }
0x1799   : > { %vm2655_vm11 = vmor %vm2653_vm10, %vm2654_vm9 }
0x179a   : > { %v2646_v8 = vsel %vm2645_vm7, %v3053_v57, %v2642_v2  ;;  %v2649_v9 = vmul.f32 %v3055_v0, %v2648_v4 }
0x179b   : > { %v2657_v59 = vmul.f32 %v2646_v8, %v2623_v48 }
0x179c   : > { %v2650_v13 = vmul.f32 0.5, %v2649_v9 }
0x179d   : > { %v2662_v16 = vmul.f32 %v2994_v5, %v2657_v59 }
0x179e   : > { %v2651_v46 = vsub.f32 1.5, %v2650_v13 }
0x179f   : > { %v2667_v47 = vadd.f32 %v2995_v1, %v2662_v16 }
0x17a0   : > { %v2652_v50 = vmul.f32 %v3055_v0, %v2651_v46 }
0x17a1   : > { %v2669_v17 = vmul.f32 %v3276_v11, %v2667_v47 }
0x17a2   : > { %v2656_v18 = vsel %vm2655_vm11, %v3055_v0, %v2652_v50 }
0x17a3   : > { %v2658_v19 = vmul.f32 %v2656_v18, %v2624_v10  ;;  %v2675_v35 = vmul.f32 %v2996_v49, %v2669_v17 }
0x17a5   : > { %v2677_v21 = vsel %vm901_vm1, %v2675_v35, 0.0  ;;  %v2663_v22 = vmul.f32 %v2994_v5, %v2658_v19 }
0x17a6   : > { %2678 = vadd.xlane.f32.xlu1 %v2677_v21 }
0x17a7   : > { %v2668_v23 = vadd.f32 %v2995_v1, %v2663_v22 }
0x17a9   : > { %v2670_v24 = vmul.f32 %v3287_v14, %v2668_v23 }
0x17ab   : > { %v2676_v25 = vmul.f32 %v2996_v49, %v2670_v24 }
0x17ad   : > { %v2680_v44 = vsel %vm901_vm1, %v2676_v25, 0.0 }
0x17ae   : > { %2681 = vadd.xlane.f32.xlu2 %v2680_v44 }
0x1819   : > { %v2679_v11 = vpop.xlane.xlu1 %2678 }
0x181a   : > { %v2687_v27 = vadd.f32 %v2997_v26, %v2679_v11 }
0x181c   : > { %2690 = vst.msk [vmem:[%s856_s1] sm:$0xff] %vm2689_vm12, %v2687_v27 }
0x1821   : > { %v2682_v28 = vpop.xlane.xlu2 %2681 }
0x1822   : > { %v2688_v29 = vadd.f32 %v2997_v26, %v2682_v28 }
0x1824   : > { %2691 = vst.msk [vmem:[%s856_s1 + $0x8] sm:$0xff] %vm2689_vm12, %v2688_v29 }
0x1825 PF: > { %s4179_s8 = sld [smem:[#allocation6_spill]] }
0x182b   : > { %s49_s10 = sadd.s32 1, %s4179_s8  }
0x182c   : > { %p46_p4 = scmp.ge.s32.totalorder %s49_s10, 4  }
0x182e   :  { %48 = sbr.rel (!%p46_p4) target bundleno = 32 (0x20), region = 181 }

</bundles_post_ra>
